<compile_context>
chip_gen: v6e
topology: v6e:2x2x1
jax: 0.10.0
libtpu: 0.0.40
codegen_flags: <defaults>
</compile_context>

<pallas_src>
import functools

import numpy as np

import jax
import jax.numpy as jnp
from jax.experimental import pallas as pl
from jax.experimental.pallas import tpu as pltpu


# ----------------------------------------------------------------------------
# Static shift tables for the in-kernel patch gathers
# ----------------------------------------------------------------------------
# conv1 output rows are ordered (n, ph, pw, hq, wq) where the conv1 output
# coordinate (h1,w1) in [0,8)^2 is split as h1 = 2*hq + ph, w1 = 2*wq + pw.
# For a stride-2 3x3 tap (i,j) of conv2, the needed conv1 pixel (2ho+i-1,
# 2wo+j-1) then lives at a *constant* row offset from the output row
# n*64 + 4*ho + wo:
_PHASE = (1, 0, 1)     # parity of 2*ho + i - 1  (i = 0,1,2)
_DELTA = (-1, 0, 0)    # (2*ho + i - 1) // 2 - ho
_SHIFT2 = tuple((_PHASE[i] * 2 + _PHASE[j]) * 16 + _DELTA[i] * 4 + _DELTA[j]
                for i in range(3) for j in range(3))
# conv3 is stride 1 on a 4x4 map: constant shift (i-1)*4 + (j-1).
_SHIFT3 = tuple((i - 1) * 4 + (j - 1) for i in range(3) for j in range(3))


def _tap_mask(hin, stride):
    """(16, 9) 0/1 mask: tap (i,j) valid (inside the zero-padding) at output
    position q = 4*ho + wo of a 4x4 output map."""
    m = np.zeros((16, 9), np.float32)
    for q in range(16):
        ho, wo = divmod(q, 4)
        for i in range(3):
            for j in range(3):
                hi, wi = stride * ho + i - 1, stride * wo + j - 1
                if 0 <= hi < hin and 0 <= wi < hin:
                    m[q, i * 3 + j] = 1.0
    return m


# ----------------------------------------------------------------------------
# Parameters (PyTorch layouts) and one-time repacking for the fused kernel
# ----------------------------------------------------------------------------
def init_params(key):
    ks = jax.random.split(key, 7)
    scale = 0.05
    return {
        "conv1_w": scale * jax.random.normal(ks[0], (32, 3, 3, 3), jnp.float32),
        "conv2_w": scale * jax.random.normal(ks[1], (64, 32, 3, 3), jnp.float32),
        "conv3_w": scale * jax.random.normal(ks[2], (64, 64, 3, 3), jnp.float32),
        "fc1_w": scale * jax.random.normal(ks[3], (128, 64 * 4 * 4 + 5), jnp.float32),
        "fc1_b": scale * jax.random.normal(ks[4], (128,), jnp.float32),
        "fc2_w": scale * jax.random.normal(ks[5], (1, 128), jnp.float32),
        "fc2_b": scale * jax.random.normal(ks[6], (1,), jnp.float32),
    }


def prepare_params(params, batch):
    """Repack PyTorch-layout params into im2col-friendly matrices (runs once)."""
    w1 = jnp.asarray(params["conv1_w"], jnp.float32)     # (32, 3, 3, 3)  [co,c,i,j]
    w2 = jnp.asarray(params["conv2_w"], jnp.float32)     # (64, 32, 3, 3)
    w3 = jnp.asarray(params["conv3_w"], jnp.float32)     # (64, 64, 3, 3)
    fc1_w = jnp.asarray(params["fc1_w"], jnp.float32)    # (128, 1029)
    return {
        # im2col weights: row = (i*3+j)*Cin + ci, col = co
        "w1": jnp.transpose(w1, (2, 3, 1, 0)).reshape(9 * 3, 32),
        "w2": jnp.transpose(w2, (2, 3, 1, 0)).reshape(9 * 32, 64),
        "w3": jnp.transpose(w3, (2, 3, 1, 0)).reshape(9 * 64, 64),
        # fc1 conv-part weight, blocked by spatial position p (torch f = c*16+p):
        # wfc1[c, p*128 + k] = fc1_w[k, c*16 + p]
        "wfc1": jnp.transpose(fc1_w[:, :1024].reshape(128, 64, 16),
                              (1, 2, 0)).reshape(64, 16 * 128),
        "wy": fc1_w[:, 1024:].T,                                        # (5, 128)
        "b1": jnp.asarray(params["fc1_b"], jnp.float32).reshape(1, 128),
        "wfc2": jnp.asarray(params["fc2_w"], jnp.float32).reshape(1, 128),
        "bfc2": jnp.asarray(params["fc2_b"], jnp.float32).reshape(1, 1),
        # per-output-row tap validity masks (tiled over batch)
        "m2": jnp.asarray(np.tile(_tap_mask(8, 2), (batch, 1))),        # (N*16, 9)
        "m3": jnp.asarray(np.tile(_tap_mask(4, 1), (batch, 1))),        # (N*16, 9)
    }


# ----------------------------------------------------------------------------
# Small in-kernel helpers (static shapes / static shifts only)
# ----------------------------------------------------------------------------
def _rotup(x, shift):
    """out[r] = x[(r + shift) % nrows] — circular row shift toward lower rows."""
    n = x.shape[0]
    s = shift % n
    if s == 0:
        return x
    return jnp.concatenate([x[s:], x[:s]], axis=0)


def _compact_rows(x, n_img, frame, keep):
    """Keep the first `keep` rows of each image's `frame`-row block."""
    if n_img == 1:
        return x[:keep]
    return jnp.concatenate([x[i * frame:i * frame + keep] for i in range(n_img)],
                           axis=0)


def _leaky(v):
    return jnp.where(v > 0, v, 0.2 * v)


# ----------------------------------------------------------------------------
# Fused kernel: conv1 + conv2 + conv3 + flatten/concat + fc1 + fc2 + sigmoid
# ----------------------------------------------------------------------------
def _disc_kernel(xcol_ref, y_ref, w1_ref, w2_ref, m2_ref, m3_ref, wy_ref,
                 b1_ref, wfc2_ref, bfc2_ref, w3_hbm, wfc1_hbm,
                 o_ref, w3_buf, wfc1_buf, sem, *, n_img):
    # Prefetch the two big, late-used weights HBM -> VMEM; their DMA overlaps
    # with the conv1/conv2 (and conv3) compute below.
    cp3 = pltpu.make_async_copy(w3_hbm, w3_buf, sem.at[0])
    cp4 = pltpu.make_async_copy(wfc1_hbm, wfc1_buf, sem.at[1])
    cp3.start()
    cp4.start()

    # --- conv1: patch gather already done by the wrapper im2col --------------
    h1 = _leaky(jnp.dot(xcol_ref[...], w1_ref[...],
                        preferred_element_type=jnp.float32))        # (N*64, 32)

    # --- conv2 (stride 2): 9 static row shifts + mask, then ONE matmul -------
    m2 = m2_ref[...]                                                 # (N*16, 9)
    pieces = []
    for t in range(9):
        g = _rotup(h1, _SHIFT2[t])                                   # (N*64, 32)
        g = _compact_rows(g, n_img, 64, 16)                          # (N*16, 32)
        pieces.append(g * m2[:, t:t + 1])
    g2 = jnp.concatenate(pieces, axis=1)                             # (N*16, 288)
    h2 = _leaky(jnp.dot(g2, w2_ref[...],
                        preferred_element_type=jnp.float32))         # (N*16, 64)

    # --- conv3 (stride 1): same pattern, weight arrives via async DMA --------
    cp3.wait()
    m3 = m3_ref[...]
    pieces = []
    for t in range(9):
        pieces.append(_rotup(h2, _SHIFT3[t]) * m3[:, t:t + 1])       # (N*16, 64)
    g3 = jnp.concatenate(pieces, axis=1)                             # (N*16, 576)
    h3 = _leaky(jnp.dot(g3, w3_buf[...],
                        preferred_element_type=jnp.float32))         # (N*16, 64)

    # --- fc1 over [flatten(conv, torch (C,H,W) order), y] --------------------
    # One matmul against the position-blocked weight, then a rotate-and-add
    # block-diagonal reduction (replaces the 16 selector matmuls).
    cp4.wait()
    t4 = jnp.dot(h3, wfc1_buf[...], preferred_element_type=jnp.float32)  # (N*16, 2048)
    acc = t4[:, 0:128]
    for p in range(1, 16):
        acc = acc + _rotup(t4[:, p * 128:(p + 1) * 128], p)          # row n*16 holds img n
    d = jnp.concatenate([acc[n * 16:n * 16 + 1] for n in range(n_img)], axis=0)  # (N,128)
    d = d + jnp.dot(y_ref[...], wy_ref[...], preferred_element_type=jnp.float32)
    d = _leaky(d + b1_ref[...])                                      # LeakyReLU(0.2)

    # --- fc2 + numerically stable sigmoid (VPU multiply + lane reduction) ----
    z = jnp.sum(d * wfc2_ref[...], axis=1, keepdims=True) + bfc2_ref[...]  # (N, 1)
    e = jnp.exp(-jnp.abs(z))
    r = 1.0 / (1.0 + e)
    o_ref[...] = jnp.where(z >= 0, r, e * r)


# ----------------------------------------------------------------------------
# Wrapper
# ----------------------------------------------------------------------------
def _im2col_conv1(x):
    """(N,3,16,16) NCHW -> (N*64, 27) im2col, rows in phase-decomposed order
    (n, h1%2, w1%2, h1//2, w1//2), columns ordered (tap i*3+j, cin).  Tiny
    one-time-traced XLA gather on a 6 KiB tensor (replaces the 2.25 MiB S1)."""
    n = x.shape[0]
    xp = jnp.pad(x.astype(jnp.float32), ((0, 0), (0, 0), (1, 1), (1, 1)))   # (N,3,18,18)
    taps = [xp[:, :, i:i + 16:2, j:j + 16:2] for i in range(3) for j in range(3)]
    xcol = jnp.stack(taps, axis=1)                     # (N,9,3,8,8)  [n,t,c,h1,w1]
    xcol = xcol.reshape(n, 9, 3, 4, 2, 4, 2)           # [n,t,c,hq,ph,wq,pw]
    xcol = xcol.transpose(0, 4, 6, 3, 5, 1, 2)         # [n,ph,pw,hq,wq,t,c]
    return xcol.reshape(n * 64, 27)


def discriminator_forward(prep, x, y):
    """x: (N, 3, 16, 16) NCHW float32, y: (N, 5) float32  ->  (N, 1) in [0, 1]."""
    n = x.shape[0]
    xcol = _im2col_conv1(x)
    y = y.astype(jnp.float32)

    vmem = pl.BlockSpec(memory_space=pltpu.MemorySpace.VMEM)
    hbm = pl.BlockSpec(memory_space=pl.ANY)

    flops = 2 * (n * 64 * 27 * 32 + n * 16 * 288 * 64 + n * 16 * 576 * 64
                 + n * 16 * 64 * 2048 + n * 5 * 128 + n * 128)
    bytes_accessed = 4 * (xcol.size + y.size + sum(v.size for v in prep.values()) + n)

    return pl.pallas_call(
        functools.partial(_disc_kernel, n_img=n),
        out_shape=jax.ShapeDtypeStruct((n, 1), jnp.float32),
        in_specs=[vmem] * 10 + [hbm] * 2,
        out_specs=vmem,
        scratch_shapes=[
            pltpu.VMEM((9 * 64, 64), jnp.float32),     # conv3 im2col weight
            pltpu.VMEM((64, 16 * 128), jnp.float32),   # fc1 conv-part weight
            pltpu.SemaphoreType.DMA((2,)),
        ],
        cost_estimate=pl.CostEstimate(flops=flops, transcendentals=2 * n,
                                      bytes_accessed=bytes_accessed),
    )(xcol, y, prep["w1"], prep["w2"], prep["m2"], prep["m3"], prep["wy"],
      prep["b1"], prep["wfc2"], prep["bfc2"], prep["w3"], prep["wfc1"])


# ----------------------------------------------------------------------------
# Pure-JAX reference (same semantics as the PyTorch module, eval mode)
# ----------------------------------------------------------------------------
def reference_forward(params, x, y):
    def conv(a, w, stride):
        return jax.lax.conv_general_dilated(
            a, w, (stride, stride), ((1, 1), (1, 1)),
            dimension_numbers=("NCHW", "OIHW", "NCHW"))
    h = _leaky(conv(x, params["conv1_w"], 2))
    h = _leaky(conv(h, params["conv2_w"], 2))
    h = _leaky(conv(h, params["conv3_w"], 1))
    flat = h.reshape(x.shape[0], -1)                       # torch (C,H,W) flatten
    d = jnp.concatenate([flat, y], axis=1)
    d = _leaky(d @ params["fc1_w"].T + params["fc1_b"])
    z = d @ params["fc2_w"].T + params["fc2_b"]
    return jax.nn.sigmoid(z)


if __name__ == "__main__":
    key = jax.random.PRNGKey(0)
    k_param, k_x, k_y = jax.random.split(key, 3)

    batch = 2
    params = init_params(k_param)
    prep = prepare_params(params, batch)   # one-time weight repack (off hot path)

    x = jax.random.normal(k_x, (batch, 3, 16, 16), jnp.float32)  # NCHW like PyTorch
    y = jax.random.normal(k_y, (batch, 5), jnp.float32)

    fwd = jax.jit(discriminator_forward)
    out = jax.block_until_ready(fwd(prep, x, y))
    ref = reference_forward(params, x, y)

    assert out.shape == (batch, 1), out.shape
    assert bool(jnp.all(jnp.isfinite(out)))
    assert bool(jnp.all((out >= 0.0) & (out <= 1.0)))
    err = float(jnp.max(jnp.abs(out - ref)))
    assert err < 5e-3, f"kernel/reference mismatch: max abs err = {err}"
    print("KERNEL_OK")
</pallas_src>

<mosaic_0001>
module attributes {stable_mosaic.version = 11 : i64} {
  func.func @_disc_kernel(%arg0: memref<128x27xf32, #tpu.memory_space<vmem>>, %arg1: memref<2x5xf32, #tpu.memory_space<vmem>>, %arg2: memref<27x32xf32, #tpu.memory_space<vmem>>, %arg3: memref<288x64xf32, #tpu.memory_space<vmem>>, %arg4: memref<32x9xf32, #tpu.memory_space<vmem>>, %arg5: memref<32x9xf32, #tpu.memory_space<vmem>>, %arg6: memref<5x128xf32, #tpu.memory_space<vmem>>, %arg7: memref<1x128xf32, #tpu.memory_space<vmem>>, %arg8: memref<1x128xf32, #tpu.memory_space<vmem>>, %arg9: memref<1x1xf32, #tpu.memory_space<vmem>>, %arg10: memref<576x64xf32, #tpu.memory_space<any>>, %arg11: memref<64x2048xf32, #tpu.memory_space<any>>, %arg12: memref<2x1xf32, #tpu.memory_space<vmem>>, %arg13: memref<576x64xf32, #tpu.memory_space<vmem>>, %arg14: memref<64x2048xf32, #tpu.memory_space<vmem>>, %arg15: memref<2x!tpu.dma_semaphore, #tpu.memory_space<semaphore_mem>>) attributes {dimension_semantics = [], scalar_prefetch = 0 : i64, scratch_operands = 3 : i64, tpu.core_type = #tpu.core_type<tc>} {
    %c0_i32 = arith.constant 0 : i32
    %0 = tpu.memref_slice %arg15[%c0_i32] : memref<2x!tpu.dma_semaphore, #tpu.memory_space<semaphore_mem>> -> memref<1x!tpu.dma_semaphore, #tpu.memory_space<semaphore_mem>>
    %1 = tpu.memref_squeeze %0 : memref<1x!tpu.dma_semaphore, #tpu.memory_space<semaphore_mem>> -> memref<!tpu.dma_semaphore, #tpu.memory_space<semaphore_mem>>
    tpu.enqueue_dma source(%arg10 : memref<576x64xf32, #tpu.memory_space<any>>) target(%arg13 : memref<576x64xf32, #tpu.memory_space<vmem>>) target_semaphore(%1 : memref<!tpu.dma_semaphore, #tpu.memory_space<semaphore_mem>>)
    %c1_i32 = arith.constant 1 : i32
    %2 = tpu.memref_slice %arg15[%c1_i32] : memref<2x!tpu.dma_semaphore, #tpu.memory_space<semaphore_mem>> -> memref<1x!tpu.dma_semaphore, #tpu.memory_space<semaphore_mem>>
    %3 = tpu.memref_squeeze %2 : memref<1x!tpu.dma_semaphore, #tpu.memory_space<semaphore_mem>> -> memref<!tpu.dma_semaphore, #tpu.memory_space<semaphore_mem>>
    tpu.enqueue_dma source(%arg11 : memref<64x2048xf32, #tpu.memory_space<any>>) target(%arg14 : memref<64x2048xf32, #tpu.memory_space<vmem>>) target_semaphore(%3 : memref<!tpu.dma_semaphore, #tpu.memory_space<semaphore_mem>>)
    %c0 = arith.constant 0 : index
    %c0_0 = arith.constant 0 : index
    %4 = vector.load %arg0[%c0, %c0_0] : memref<128x27xf32, #tpu.memory_space<vmem>>, vector<128x27xf32>
    %c0_1 = arith.constant 0 : index
    %c0_2 = arith.constant 0 : index
    %5 = vector.load %arg2[%c0_1, %c0_2] : memref<27x32xf32, #tpu.memory_space<vmem>>, vector<27x32xf32>
    %cst = arith.constant dense<0.000000e+00> : vector<128x32xf32>
    %6 = tpu.matmul %4, %5, %cst {dimension_numbers = #tpu.dot_dimension_numbers<[1], [0], [0], [1], [0, 0, 1, 1], [], []>} : vector<128x27xf32>, vector<27x32xf32>, vector<128x32xf32> -> vector<128x32xf32>
    %cst_3 = arith.constant 0.000000e+00 : f32
    %7 = vector.broadcast %cst_3 : f32 to vector<128x32xf32>
    %8 = arith.cmpf ogt, %6, %7 : vector<128x32xf32>
    %cst_4 = arith.constant 2.000000e-01 : f32
    %9 = vector.broadcast %cst_4 : f32 to vector<128x32xf32>
    %10 = arith.mulf %9, %6 : vector<128x32xf32>
    %11 = arith.select %8, %6, %10 : vector<128x32xi1>, vector<128x32xf32>
    %c0_5 = arith.constant 0 : index
    %c0_6 = arith.constant 0 : index
    %12 = vector.load %arg4[%c0_5, %c0_6] : memref<32x9xf32, #tpu.memory_space<vmem>>, vector<32x9xf32>
    %13 = vector.extract_strided_slice %11 {offsets = [43, 0], sizes = [85, 32], strides = [1, 1]} : vector<128x32xf32> to vector<85x32xf32>
    %14 = vector.extract_strided_slice %11 {offsets = [0, 0], sizes = [43, 32], strides = [1, 1]} : vector<128x32xf32> to vector<43x32xf32>
    %15 = tpu.concatenate %13, %14 in 0 : vector<85x32xf32>, vector<43x32xf32> -> vector<128x32xf32>
    %16 = vector.extract_strided_slice %15 {offsets = [0, 0], sizes = [16, 32], strides = [1, 1]} : vector<128x32xf32> to vector<16x32xf32>
    %17 = vector.extract_strided_slice %15 {offsets = [64, 0], sizes = [16, 32], strides = [1, 1]} : vector<128x32xf32> to vector<16x32xf32>
    %18 = tpu.concatenate %16, %17 in 0 : vector<16x32xf32>, vector<16x32xf32> -> vector<32x32xf32>
    %19 = vector.extract_strided_slice %12 {offsets = [0, 0], sizes = [32, 1], strides = [1, 1]} : vector<32x9xf32> to vector<32x1xf32>
    %20 = vector.broadcast %19 : vector<32x1xf32> to vector<32x32xf32>
    %21 = arith.mulf %18, %20 : vector<32x32xf32>
    %22 = vector.extract_strided_slice %11 {offsets = [28, 0], sizes = [100, 32], strides = [1, 1]} : vector<128x32xf32> to vector<100x32xf32>
    %23 = vector.extract_strided_slice %11 {offsets = [0, 0], sizes = [28, 32], strides = [1, 1]} : vector<128x32xf32> to vector<28x32xf32>
    %24 = tpu.concatenate %22, %23 in 0 : vector<100x32xf32>, vector<28x32xf32> -> vector<128x32xf32>
    %25 = vector.extract_strided_slice %24 {offsets = [0, 0], sizes = [16, 32], strides = [1, 1]} : vector<128x32xf32> to vector<16x32xf32>
    %26 = vector.extract_strided_slice %24 {offsets = [64, 0], sizes = [16, 32], strides = [1, 1]} : vector<128x32xf32> to vector<16x32xf32>
    %27 = tpu.concatenate %25, %26 in 0 : vector<16x32xf32>, vector<16x32xf32> -> vector<32x32xf32>
    %28 = vector.extract_strided_slice %12 {offsets = [0, 1], sizes = [32, 1], strides = [1, 1]} : vector<32x9xf32> to vector<32x1xf32>
    %29 = vector.broadcast %28 : vector<32x1xf32> to vector<32x32xf32>
    %30 = arith.mulf %27, %29 : vector<32x32xf32>
    %31 = vector.extract_strided_slice %11 {offsets = [44, 0], sizes = [84, 32], strides = [1, 1]} : vector<128x32xf32> to vector<84x32xf32>
    %32 = vector.extract_strided_slice %11 {offsets = [0, 0], sizes = [44, 32], strides = [1, 1]} : vector<128x32xf32> to vector<44x32xf32>
    %33 = tpu.concatenate %31, %32 in 0 : vector<84x32xf32>, vector<44x32xf32> -> vector<128x32xf32>
    %34 = vector.extract_strided_slice %33 {offsets = [0, 0], sizes = [16, 32], strides = [1, 1]} : vector<128x32xf32> to vector<16x32xf32>
    %35 = vector.extract_strided_slice %33 {offsets = [64, 0], sizes = [16, 32], strides = [1, 1]} : vector<128x32xf32> to vector<16x32xf32>
    %36 = tpu.concatenate %34, %35 in 0 : vector<16x32xf32>, vector<16x32xf32> -> vector<32x32xf32>
    %37 = vector.extract_strided_slice %12 {offsets = [0, 2], sizes = [32, 1], strides = [1, 1]} : vector<32x9xf32> to vector<32x1xf32>
    %38 = vector.broadcast %37 : vector<32x1xf32> to vector<32x32xf32>
    %39 = arith.mulf %36, %38 : vector<32x32xf32>
    %40 = vector.extract_strided_slice %11 {offsets = [15, 0], sizes = [113, 32], strides = [1, 1]} : vector<128x32xf32> to vector<113x32xf32>
    %41 = vector.extract_strided_slice %11 {offsets = [0, 0], sizes = [15, 32], strides = [1, 1]} : vector<128x32xf32> to vector<15x32xf32>
    %42 = tpu.concatenate %40, %41 in 0 : vector<113x32xf32>, vector<15x32xf32> -> vector<128x32xf32>
    %43 = vector.extract_strided_slice %42 {offsets = [0, 0], sizes = [16, 32], strides = [1, 1]} : vector<128x32xf32> to vector<16x32xf32>
    %44 = vector.extract_strided_slice %42 {offsets = [64, 0], sizes = [16, 32], strides = [1, 1]} : vector<128x32xf32> to vector<16x32xf32>
    %45 = tpu.concatenate %43, %44 in 0 : vector<16x32xf32>, vector<16x32xf32> -> vector<32x32xf32>
    %46 = vector.extract_strided_slice %12 {offsets = [0, 3], sizes = [32, 1], strides = [1, 1]} : vector<32x9xf32> to vector<32x1xf32>
    %47 = vector.broadcast %46 : vector<32x1xf32> to vector<32x32xf32>
    %48 = arith.mulf %45, %47 : vector<32x32xf32>
    %49 = vector.extract_strided_slice %11 {offsets = [0, 0], sizes = [16, 32], strides = [1, 1]} : vector<128x32xf32> to vector<16x32xf32>
    %50 = vector.extract_strided_slice %11 {offsets = [64, 0], sizes = [16, 32], strides = [1, 1]} : vector<128x32xf32> to vector<16x32xf32>
    %51 = tpu.concatenate %49, %50 in 0 : vector<16x32xf32>, vector<16x32xf32> -> vector<32x32xf32>
    %52 = vector.extract_strided_slice %12 {offsets = [0, 4], sizes = [32, 1], strides = [1, 1]} : vector<32x9xf32> to vector<32x1xf32>
    %53 = vector.broadcast %52 : vector<32x1xf32> to vector<32x32xf32>
    %54 = arith.mulf %51, %53 : vector<32x32xf32>
    %55 = vector.extract_strided_slice %11 {offsets = [16, 0], sizes = [112, 32], strides = [1, 1]} : vector<128x32xf32> to vector<112x32xf32>
    %56 = vector.extract_strided_slice %11 {offsets = [0, 0], sizes = [16, 32], strides = [1, 1]} : vector<128x32xf32> to vector<16x32xf32>
    %57 = tpu.concatenate %55, %56 in 0 : vector<112x32xf32>, vector<16x32xf32> -> vector<128x32xf32>
    %58 = vector.extract_strided_slice %57 {offsets = [0, 0], sizes = [16, 32], strides = [1, 1]} : vector<128x32xf32> to vector<16x32xf32>
    %59 = vector.extract_strided_slice %57 {offsets = [64, 0], sizes = [16, 32], strides = [1, 1]} : vector<128x32xf32> to vector<16x32xf32>
    %60 = tpu.concatenate %58, %59 in 0 : vector<16x32xf32>, vector<16x32xf32> -> vector<32x32xf32>
    %61 = vector.extract_strided_slice %12 {offsets = [0, 5], sizes = [32, 1], strides = [1, 1]} : vector<32x9xf32> to vector<32x1xf32>
    %62 = vector.broadcast %61 : vector<32x1xf32> to vector<32x32xf32>
    %63 = arith.mulf %60, %62 : vector<32x32xf32>
    %64 = vector.extract_strided_slice %11 {offsets = [47, 0], sizes = [81, 32], strides = [1, 1]} : vector<128x32xf32> to vector<81x32xf32>
    %65 = vector.extract_strided_slice %11 {offsets = [0, 0], sizes = [47, 32], strides = [1, 1]} : vector<128x32xf32> to vector<47x32xf32>
    %66 = tpu.concatenate %64, %65 in 0 : vector<81x32xf32>, vector<47x32xf32> -> vector<128x32xf32>
    %67 = vector.extract_strided_slice %66 {offsets = [0, 0], sizes = [16, 32], strides = [1, 1]} : vector<128x32xf32> to vector<16x32xf32>
    %68 = vector.extract_strided_slice %66 {offsets = [64, 0], sizes = [16, 32], strides = [1, 1]} : vector<128x32xf32> to vector<16x32xf32>
    %69 = tpu.concatenate %67, %68 in 0 : vector<16x32xf32>, vector<16x32xf32> -> vector<32x32xf32>
    %70 = vector.extract_strided_slice %12 {offsets = [0, 6], sizes = [32, 1], strides = [1, 1]} : vector<32x9xf32> to vector<32x1xf32>
    %71 = vector.broadcast %70 : vector<32x1xf32> to vector<32x32xf32>
    %72 = arith.mulf %69, %71 : vector<32x32xf32>
    %73 = vector.extract_strided_slice %11 {offsets = [32, 0], sizes = [96, 32], strides = [1, 1]} : vector<128x32xf32> to vector<96x32xf32>
    %74 = vector.extract_strided_slice %11 {offsets = [0, 0], sizes = [32, 32], strides = [1, 1]} : vector<128x32xf32> to vector<32x32xf32>
    %75 = tpu.concatenate %73, %74 in 0 : vector<96x32xf32>, vector<32x32xf32> -> vector<128x32xf32>
    %76 = vector.extract_strided_slice %75 {offsets = [0, 0], sizes = [16, 32], strides = [1, 1]} : vector<128x32xf32> to vector<16x32xf32>
    %77 = vector.extract_strided_slice %75 {offsets = [64, 0], sizes = [16, 32], strides = [1, 1]} : vector<128x32xf32> to vector<16x32xf32>
    %78 = tpu.concatenate %76, %77 in 0 : vector<16x32xf32>, vector<16x32xf32> -> vector<32x32xf32>
    %79 = vector.extract_strided_slice %12 {offsets = [0, 7], sizes = [32, 1], strides = [1, 1]} : vector<32x9xf32> to vector<32x1xf32>
    %80 = vector.broadcast %79 : vector<32x1xf32> to vector<32x32xf32>
    %81 = arith.mulf %78, %80 : vector<32x32xf32>
    %82 = vector.extract_strided_slice %11 {offsets = [48, 0], sizes = [80, 32], strides = [1, 1]} : vector<128x32xf32> to vector<80x32xf32>
    %83 = vector.extract_strided_slice %11 {offsets = [0, 0], sizes = [48, 32], strides = [1, 1]} : vector<128x32xf32> to vector<48x32xf32>
    %84 = tpu.concatenate %82, %83 in 0 : vector<80x32xf32>, vector<48x32xf32> -> vector<128x32xf32>
    %85 = vector.extract_strided_slice %84 {offsets = [0, 0], sizes = [16, 32], strides = [1, 1]} : vector<128x32xf32> to vector<16x32xf32>
    %86 = vector.extract_strided_slice %84 {offsets = [64, 0], sizes = [16, 32], strides = [1, 1]} : vector<128x32xf32> to vector<16x32xf32>
    %87 = tpu.concatenate %85, %86 in 0 : vector<16x32xf32>, vector<16x32xf32> -> vector<32x32xf32>
    %88 = vector.extract_strided_slice %12 {offsets = [0, 8], sizes = [32, 1], strides = [1, 1]} : vector<32x9xf32> to vector<32x1xf32>
    %89 = vector.broadcast %88 : vector<32x1xf32> to vector<32x32xf32>
    %90 = arith.mulf %87, %89 : vector<32x32xf32>
    %91 = tpu.concatenate %21, %30, %39, %48, %54, %63, %72, %81, %90 in 1 : vector<32x32xf32>, vector<32x32xf32>, vector<32x32xf32>, vector<32x32xf32>, vector<32x32xf32>, vector<32x32xf32>, vector<32x32xf32>, vector<32x32xf32>, vector<32x32xf32> -> vector<32x288xf32>
    %c0_7 = arith.constant 0 : index
    %c0_8 = arith.constant 0 : index
    %92 = vector.load %arg3[%c0_7, %c0_8] : memref<288x64xf32, #tpu.memory_space<vmem>>, vector<288x64xf32>
    %cst_9 = arith.constant dense<0.000000e+00> : vector<32x64xf32>
    %93 = tpu.matmul %91, %92, %cst_9 {dimension_numbers = #tpu.dot_dimension_numbers<[1], [0], [0], [1], [0, 0, 1, 1], [], []>} : vector<32x288xf32>, vector<288x64xf32>, vector<32x64xf32> -> vector<32x64xf32>
    %cst_10 = arith.constant 0.000000e+00 : f32
    %94 = vector.broadcast %cst_10 : f32 to vector<32x64xf32>
    %95 = arith.cmpf ogt, %93, %94 : vector<32x64xf32>
    %cst_11 = arith.constant 2.000000e-01 : f32
    %96 = vector.broadcast %cst_11 : f32 to vector<32x64xf32>
    %97 = arith.mulf %96, %93 : vector<32x64xf32>
    %98 = arith.select %95, %93, %97 : vector<32x64xi1>, vector<32x64xf32>
    %c0_i32_12 = arith.constant 0 : i32
    %99 = tpu.memref_slice %arg15[%c0_i32_12] : memref<2x!tpu.dma_semaphore, #tpu.memory_space<semaphore_mem>> -> memref<1x!tpu.dma_semaphore, #tpu.memory_space<semaphore_mem>>
    %100 = tpu.memref_squeeze %99 : memref<1x!tpu.dma_semaphore, #tpu.memory_space<semaphore_mem>> -> memref<!tpu.dma_semaphore, #tpu.memory_space<semaphore_mem>>
    tpu.wait_dma2 semaphore(%100 : memref<!tpu.dma_semaphore, #tpu.memory_space<semaphore_mem>>) src(%arg10 : memref<576x64xf32, #tpu.memory_space<any>>) dst(%arg13 : memref<576x64xf32, #tpu.memory_space<vmem>>)
    %c0_13 = arith.constant 0 : index
    %c0_14 = arith.constant 0 : index
    %101 = vector.load %arg5[%c0_13, %c0_14] : memref<32x9xf32, #tpu.memory_space<vmem>>, vector<32x9xf32>
    %102 = vector.extract_strided_slice %98 {offsets = [27, 0], sizes = [5, 64], strides = [1, 1]} : vector<32x64xf32> to vector<5x64xf32>
    %103 = vector.extract_strided_slice %98 {offsets = [0, 0], sizes = [27, 64], strides = [1, 1]} : vector<32x64xf32> to vector<27x64xf32>
    %104 = tpu.concatenate %102, %103 in 0 : vector<5x64xf32>, vector<27x64xf32> -> vector<32x64xf32>
    %105 = vector.extract_strided_slice %101 {offsets = [0, 0], sizes = [32, 1], strides = [1, 1]} : vector<32x9xf32> to vector<32x1xf32>
    %106 = vector.broadcast %105 : vector<32x1xf32> to vector<32x64xf32>
    %107 = arith.mulf %104, %106 : vector<32x64xf32>
    %108 = vector.extract_strided_slice %98 {offsets = [28, 0], sizes = [4, 64], strides = [1, 1]} : vector<32x64xf32> to vector<4x64xf32>
    %109 = vector.extract_strided_slice %98 {offsets = [0, 0], sizes = [28, 64], strides = [1, 1]} : vector<32x64xf32> to vector<28x64xf32>
    %110 = tpu.concatenate %108, %109 in 0 : vector<4x64xf32>, vector<28x64xf32> -> vector<32x64xf32>
    %111 = vector.extract_strided_slice %101 {offsets = [0, 1], sizes = [32, 1], strides = [1, 1]} : vector<32x9xf32> to vector<32x1xf32>
    %112 = vector.broadcast %111 : vector<32x1xf32> to vector<32x64xf32>
    %113 = arith.mulf %110, %112 : vector<32x64xf32>
    %114 = vector.extract_strided_slice %98 {offsets = [29, 0], sizes = [3, 64], strides = [1, 1]} : vector<32x64xf32> to vector<3x64xf32>
    %115 = vector.extract_strided_slice %98 {offsets = [0, 0], sizes = [29, 64], strides = [1, 1]} : vector<32x64xf32> to vector<29x64xf32>
    %116 = tpu.concatenate %114, %115 in 0 : vector<3x64xf32>, vector<29x64xf32> -> vector<32x64xf32>
    %117 = vector.extract_strided_slice %101 {offsets = [0, 2], sizes = [32, 1], strides = [1, 1]} : vector<32x9xf32> to vector<32x1xf32>
    %118 = vector.broadcast %117 : vector<32x1xf32> to vector<32x64xf32>
    %119 = arith.mulf %116, %118 : vector<32x64xf32>
    %120 = vector.extract_strided_slice %98 {offsets = [31, 0], sizes = [1, 64], strides = [1, 1]} : vector<32x64xf32> to vector<1x64xf32>
    %121 = vector.extract_strided_slice %98 {offsets = [0, 0], sizes = [31, 64], strides = [1, 1]} : vector<32x64xf32> to vector<31x64xf32>
    %122 = tpu.concatenate %120, %121 in 0 : vector<1x64xf32>, vector<31x64xf32> -> vector<32x64xf32>
    %123 = vector.extract_strided_slice %101 {offsets = [0, 3], sizes = [32, 1], strides = [1, 1]} : vector<32x9xf32> to vector<32x1xf32>
    %124 = vector.broadcast %123 : vector<32x1xf32> to vector<32x64xf32>
    %125 = arith.mulf %122, %124 : vector<32x64xf32>
    %126 = vector.extract_strided_slice %101 {offsets = [0, 4], sizes = [32, 1], strides = [1, 1]} : vector<32x9xf32> to vector<32x1xf32>
    %127 = vector.broadcast %126 : vector<32x1xf32> to vector<32x64xf32>
    %128 = arith.mulf %98, %127 : vector<32x64xf32>
    %129 = vector.extract_strided_slice %98 {offsets = [1, 0], sizes = [31, 64], strides = [1, 1]} : vector<32x64xf32> to vector<31x64xf32>
    %130 = vector.extract_strided_slice %98 {offsets = [0, 0], sizes = [1, 64], strides = [1, 1]} : vector<32x64xf32> to vector<1x64xf32>
    %131 = tpu.concatenate %129, %130 in 0 : vector<31x64xf32>, vector<1x64xf32> -> vector<32x64xf32>
    %132 = vector.extract_strided_slice %101 {offsets = [0, 5], sizes = [32, 1], strides = [1, 1]} : vector<32x9xf32> to vector<32x1xf32>
    %133 = vector.broadcast %132 : vector<32x1xf32> to vector<32x64xf32>
    %134 = arith.mulf %131, %133 : vector<32x64xf32>
    %135 = vector.extract_strided_slice %98 {offsets = [3, 0], sizes = [29, 64], strides = [1, 1]} : vector<32x64xf32> to vector<29x64xf32>
    %136 = vector.extract_strided_slice %98 {offsets = [0, 0], sizes = [3, 64], strides = [1, 1]} : vector<32x64xf32> to vector<3x64xf32>
    %137 = tpu.concatenate %135, %136 in 0 : vector<29x64xf32>, vector<3x64xf32> -> vector<32x64xf32>
    %138 = vector.extract_strided_slice %101 {offsets = [0, 6], sizes = [32, 1], strides = [1, 1]} : vector<32x9xf32> to vector<32x1xf32>
    %139 = vector.broadcast %138 : vector<32x1xf32> to vector<32x64xf32>
    %140 = arith.mulf %137, %139 : vector<32x64xf32>
    %141 = vector.extract_strided_slice %98 {offsets = [4, 0], sizes = [28, 64], strides = [1, 1]} : vector<32x64xf32> to vector<28x64xf32>
    %142 = vector.extract_strided_slice %98 {offsets = [0, 0], sizes = [4, 64], strides = [1, 1]} : vector<32x64xf32> to vector<4x64xf32>
    %143 = tpu.concatenate %141, %142 in 0 : vector<28x64xf32>, vector<4x64xf32> -> vector<32x64xf32>
    %144 = vector.extract_strided_slice %101 {offsets = [0, 7], sizes = [32, 1], strides = [1, 1]} : vector<32x9xf32> to vector<32x1xf32>
    %145 = vector.broadcast %144 : vector<32x1xf32> to vector<32x64xf32>
    %146 = arith.mulf %143, %145 : vector<32x64xf32>
    %147 = vector.extract_strided_slice %98 {offsets = [5, 0], sizes = [27, 64], strides = [1, 1]} : vector<32x64xf32> to vector<27x64xf32>
    %148 = vector.extract_strided_slice %98 {offsets = [0, 0], sizes = [5, 64], strides = [1, 1]} : vector<32x64xf32> to vector<5x64xf32>
    %149 = tpu.concatenate %147, %148 in 0 : vector<27x64xf32>, vector<5x64xf32> -> vector<32x64xf32>
    %150 = vector.extract_strided_slice %101 {offsets = [0, 8], sizes = [32, 1], strides = [1, 1]} : vector<32x9xf32> to vector<32x1xf32>
    %151 = vector.broadcast %150 : vector<32x1xf32> to vector<32x64xf32>
    %152 = arith.mulf %149, %151 : vector<32x64xf32>
    %153 = tpu.concatenate %107, %113, %119, %125, %128, %134, %140, %146, %152 in 1 : vector<32x64xf32>, vector<32x64xf32>, vector<32x64xf32>, vector<32x64xf32>, vector<32x64xf32>, vector<32x64xf32>, vector<32x64xf32>, vector<32x64xf32>, vector<32x64xf32> -> vector<32x576xf32>
    %c0_15 = arith.constant 0 : index
    %c0_16 = arith.constant 0 : index
    %154 = vector.load %arg13[%c0_15, %c0_16] : memref<576x64xf32, #tpu.memory_space<vmem>>, vector<576x64xf32>
    %cst_17 = arith.constant dense<0.000000e+00> : vector<32x64xf32>
    %155 = tpu.matmul %153, %154, %cst_17 {dimension_numbers = #tpu.dot_dimension_numbers<[1], [0], [0], [1], [0, 0, 1, 1], [], []>} : vector<32x576xf32>, vector<576x64xf32>, vector<32x64xf32> -> vector<32x64xf32>
    %cst_18 = arith.constant 0.000000e+00 : f32
    %156 = vector.broadcast %cst_18 : f32 to vector<32x64xf32>
    %157 = arith.cmpf ogt, %155, %156 : vector<32x64xf32>
    %cst_19 = arith.constant 2.000000e-01 : f32
    %158 = vector.broadcast %cst_19 : f32 to vector<32x64xf32>
    %159 = arith.mulf %158, %155 : vector<32x64xf32>
    %160 = arith.select %157, %155, %159 : vector<32x64xi1>, vector<32x64xf32>
    %c1_i32_20 = arith.constant 1 : i32
    %161 = tpu.memref_slice %arg15[%c1_i32_20] : memref<2x!tpu.dma_semaphore, #tpu.memory_space<semaphore_mem>> -> memref<1x!tpu.dma_semaphore, #tpu.memory_space<semaphore_mem>>
    %162 = tpu.memref_squeeze %161 : memref<1x!tpu.dma_semaphore, #tpu.memory_space<semaphore_mem>> -> memref<!tpu.dma_semaphore, #tpu.memory_space<semaphore_mem>>
    tpu.wait_dma2 semaphore(%162 : memref<!tpu.dma_semaphore, #tpu.memory_space<semaphore_mem>>) src(%arg11 : memref<64x2048xf32, #tpu.memory_space<any>>) dst(%arg14 : memref<64x2048xf32, #tpu.memory_space<vmem>>)
    %c0_21 = arith.constant 0 : index
    %c0_22 = arith.constant 0 : index
    %163 = vector.load %arg14[%c0_21, %c0_22] : memref<64x2048xf32, #tpu.memory_space<vmem>>, vector<64x2048xf32>
    %cst_23 = arith.constant dense<0.000000e+00> : vector<32x2048xf32>
    %164 = tpu.matmul %160, %163, %cst_23 {dimension_numbers = #tpu.dot_dimension_numbers<[1], [0], [0], [1], [0, 0, 1, 1], [], []>} : vector<32x64xf32>, vector<64x2048xf32>, vector<32x2048xf32> -> vector<32x2048xf32>
    %165 = vector.extract_strided_slice %164 {offsets = [0, 0], sizes = [32, 128], strides = [1, 1]} : vector<32x2048xf32> to vector<32x128xf32>
    %166 = vector.extract_strided_slice %164 {offsets = [0, 128], sizes = [32, 128], strides = [1, 1]} : vector<32x2048xf32> to vector<32x128xf32>
    %167 = vector.extract_strided_slice %166 {offsets = [1, 0], sizes = [31, 128], strides = [1, 1]} : vector<32x128xf32> to vector<31x128xf32>
    %168 = vector.extract_strided_slice %166 {offsets = [0, 0], sizes = [1, 128], strides = [1, 1]} : vector<32x128xf32> to vector<1x128xf32>
    %169 = tpu.concatenate %167, %168 in 0 : vector<31x128xf32>, vector<1x128xf32> -> vector<32x128xf32>
    %170 = arith.addf %165, %169 : vector<32x128xf32>
    %171 = vector.extract_strided_slice %164 {offsets = [0, 256], sizes = [32, 128], strides = [1, 1]} : vector<32x2048xf32> to vector<32x128xf32>
    %172 = vector.extract_strided_slice %171 {offsets = [2, 0], sizes = [30, 128], strides = [1, 1]} : vector<32x128xf32> to vector<30x128xf32>
    %173 = vector.extract_strided_slice %171 {offsets = [0, 0], sizes = [2, 128], strides = [1, 1]} : vector<32x128xf32> to vector<2x128xf32>
    %174 = tpu.concatenate %172, %173 in 0 : vector<30x128xf32>, vector<2x128xf32> -> vector<32x128xf32>
    %175 = arith.addf %170, %174 : vector<32x128xf32>
    %176 = vector.extract_strided_slice %164 {offsets = [0, 384], sizes = [32, 128], strides = [1, 1]} : vector<32x2048xf32> to vector<32x128xf32>
    %177 = vector.extract_strided_slice %176 {offsets = [3, 0], sizes = [29, 128], strides = [1, 1]} : vector<32x128xf32> to vector<29x128xf32>
    %178 = vector.extract_strided_slice %176 {offsets = [0, 0], sizes = [3, 128], strides = [1, 1]} : vector<32x128xf32> to vector<3x128xf32>
    %179 = tpu.concatenate %177, %178 in 0 : vector<29x128xf32>, vector<3x128xf32> -> vector<32x128xf32>
    %180 = arith.addf %175, %179 : vector<32x128xf32>
    %181 = vector.extract_strided_slice %164 {offsets = [0, 512], sizes = [32, 128], strides = [1, 1]} : vector<32x2048xf32> to vector<32x128xf32>
    %182 = vector.extract_strided_slice %181 {offsets = [4, 0], sizes = [28, 128], strides = [1, 1]} : vector<32x128xf32> to vector<28x128xf32>
    %183 = vector.extract_strided_slice %181 {offsets = [0, 0], sizes = [4, 128], strides = [1, 1]} : vector<32x128xf32> to vector<4x128xf32>
    %184 = tpu.concatenate %182, %183 in 0 : vector<28x128xf32>, vector<4x128xf32> -> vector<32x128xf32>
    %185 = arith.addf %180, %184 : vector<32x128xf32>
    %186 = vector.extract_strided_slice %164 {offsets = [0, 640], sizes = [32, 128], strides = [1, 1]} : vector<32x2048xf32> to vector<32x128xf32>
    %187 = vector.extract_strided_slice %186 {offsets = [5, 0], sizes = [27, 128], strides = [1, 1]} : vector<32x128xf32> to vector<27x128xf32>
    %188 = vector.extract_strided_slice %186 {offsets = [0, 0], sizes = [5, 128], strides = [1, 1]} : vector<32x128xf32> to vector<5x128xf32>
    %189 = tpu.concatenate %187, %188 in 0 : vector<27x128xf32>, vector<5x128xf32> -> vector<32x128xf32>
    %190 = arith.addf %185, %189 : vector<32x128xf32>
    %191 = vector.extract_strided_slice %164 {offsets = [0, 768], sizes = [32, 128], strides = [1, 1]} : vector<32x2048xf32> to vector<32x128xf32>
    %192 = vector.extract_strided_slice %191 {offsets = [6, 0], sizes = [26, 128], strides = [1, 1]} : vector<32x128xf32> to vector<26x128xf32>
    %193 = vector.extract_strided_slice %191 {offsets = [0, 0], sizes = [6, 128], strides = [1, 1]} : vector<32x128xf32> to vector<6x128xf32>
    %194 = tpu.concatenate %192, %193 in 0 : vector<26x128xf32>, vector<6x128xf32> -> vector<32x128xf32>
    %195 = arith.addf %190, %194 : vector<32x128xf32>
    %196 = vector.extract_strided_slice %164 {offsets = [0, 896], sizes = [32, 128], strides = [1, 1]} : vector<32x2048xf32> to vector<32x128xf32>
    %197 = vector.extract_strided_slice %196 {offsets = [7, 0], sizes = [25, 128], strides = [1, 1]} : vector<32x128xf32> to vector<25x128xf32>
    %198 = vector.extract_strided_slice %196 {offsets = [0, 0], sizes = [7, 128], strides = [1, 1]} : vector<32x128xf32> to vector<7x128xf32>
    %199 = tpu.concatenate %197, %198 in 0 : vector<25x128xf32>, vector<7x128xf32> -> vector<32x128xf32>
    %200 = arith.addf %195, %199 : vector<32x128xf32>
    %201 = vector.extract_strided_slice %164 {offsets = [0, 1024], sizes = [32, 128], strides = [1, 1]} : vector<32x2048xf32> to vector<32x128xf32>
    %202 = vector.extract_strided_slice %201 {offsets = [8, 0], sizes = [24, 128], strides = [1, 1]} : vector<32x128xf32> to vector<24x128xf32>
    %203 = vector.extract_strided_slice %201 {offsets = [0, 0], sizes = [8, 128], strides = [1, 1]} : vector<32x128xf32> to vector<8x128xf32>
    %204 = tpu.concatenate %202, %203 in 0 : vector<24x128xf32>, vector<8x128xf32> -> vector<32x128xf32>
    %205 = arith.addf %200, %204 : vector<32x128xf32>
    %206 = vector.extract_strided_slice %164 {offsets = [0, 1152], sizes = [32, 128], strides = [1, 1]} : vector<32x2048xf32> to vector<32x128xf32>
    %207 = vector.extract_strided_slice %206 {offsets = [9, 0], sizes = [23, 128], strides = [1, 1]} : vector<32x128xf32> to vector<23x128xf32>
    %208 = vector.extract_strided_slice %206 {offsets = [0, 0], sizes = [9, 128], strides = [1, 1]} : vector<32x128xf32> to vector<9x128xf32>
    %209 = tpu.concatenate %207, %208 in 0 : vector<23x128xf32>, vector<9x128xf32> -> vector<32x128xf32>
    %210 = arith.addf %205, %209 : vector<32x128xf32>
    %211 = vector.extract_strided_slice %164 {offsets = [0, 1280], sizes = [32, 128], strides = [1, 1]} : vector<32x2048xf32> to vector<32x128xf32>
    %212 = vector.extract_strided_slice %211 {offsets = [10, 0], sizes = [22, 128], strides = [1, 1]} : vector<32x128xf32> to vector<22x128xf32>
    %213 = vector.extract_strided_slice %211 {offsets = [0, 0], sizes = [10, 128], strides = [1, 1]} : vector<32x128xf32> to vector<10x128xf32>
    %214 = tpu.concatenate %212, %213 in 0 : vector<22x128xf32>, vector<10x128xf32> -> vector<32x128xf32>
    %215 = arith.addf %210, %214 : vector<32x128xf32>
    %216 = vector.extract_strided_slice %164 {offsets = [0, 1408], sizes = [32, 128], strides = [1, 1]} : vector<32x2048xf32> to vector<32x128xf32>
    %217 = vector.extract_strided_slice %216 {offsets = [11, 0], sizes = [21, 128], strides = [1, 1]} : vector<32x128xf32> to vector<21x128xf32>
    %218 = vector.extract_strided_slice %216 {offsets = [0, 0], sizes = [11, 128], strides = [1, 1]} : vector<32x128xf32> to vector<11x128xf32>
    %219 = tpu.concatenate %217, %218 in 0 : vector<21x128xf32>, vector<11x128xf32> -> vector<32x128xf32>
    %220 = arith.addf %215, %219 : vector<32x128xf32>
    %221 = vector.extract_strided_slice %164 {offsets = [0, 1536], sizes = [32, 128], strides = [1, 1]} : vector<32x2048xf32> to vector<32x128xf32>
    %222 = vector.extract_strided_slice %221 {offsets = [12, 0], sizes = [20, 128], strides = [1, 1]} : vector<32x128xf32> to vector<20x128xf32>
    %223 = vector.extract_strided_slice %221 {offsets = [0, 0], sizes = [12, 128], strides = [1, 1]} : vector<32x128xf32> to vector<12x128xf32>
    %224 = tpu.concatenate %222, %223 in 0 : vector<20x128xf32>, vector<12x128xf32> -> vector<32x128xf32>
    %225 = arith.addf %220, %224 : vector<32x128xf32>
    %226 = vector.extract_strided_slice %164 {offsets = [0, 1664], sizes = [32, 128], strides = [1, 1]} : vector<32x2048xf32> to vector<32x128xf32>
    %227 = vector.extract_strided_slice %226 {offsets = [13, 0], sizes = [19, 128], strides = [1, 1]} : vector<32x128xf32> to vector<19x128xf32>
    %228 = vector.extract_strided_slice %226 {offsets = [0, 0], sizes = [13, 128], strides = [1, 1]} : vector<32x128xf32> to vector<13x128xf32>
    %229 = tpu.concatenate %227, %228 in 0 : vector<19x128xf32>, vector<13x128xf32> -> vector<32x128xf32>
    %230 = arith.addf %225, %229 : vector<32x128xf32>
    %231 = vector.extract_strided_slice %164 {offsets = [0, 1792], sizes = [32, 128], strides = [1, 1]} : vector<32x2048xf32> to vector<32x128xf32>
    %232 = vector.extract_strided_slice %231 {offsets = [14, 0], sizes = [18, 128], strides = [1, 1]} : vector<32x128xf32> to vector<18x128xf32>
    %233 = vector.extract_strided_slice %231 {offsets = [0, 0], sizes = [14, 128], strides = [1, 1]} : vector<32x128xf32> to vector<14x128xf32>
    %234 = tpu.concatenate %232, %233 in 0 : vector<18x128xf32>, vector<14x128xf32> -> vector<32x128xf32>
    %235 = arith.addf %230, %234 : vector<32x128xf32>
    %236 = vector.extract_strided_slice %164 {offsets = [0, 1920], sizes = [32, 128], strides = [1, 1]} : vector<32x2048xf32> to vector<32x128xf32>
    %237 = vector.extract_strided_slice %236 {offsets = [15, 0], sizes = [17, 128], strides = [1, 1]} : vector<32x128xf32> to vector<17x128xf32>
    %238 = vector.extract_strided_slice %236 {offsets = [0, 0], sizes = [15, 128], strides = [1, 1]} : vector<32x128xf32> to vector<15x128xf32>
    %239 = tpu.concatenate %237, %238 in 0 : vector<17x128xf32>, vector<15x128xf32> -> vector<32x128xf32>
    %240 = arith.addf %235, %239 : vector<32x128xf32>
    %241 = vector.extract_strided_slice %240 {offsets = [0, 0], sizes = [1, 128], strides = [1, 1]} : vector<32x128xf32> to vector<1x128xf32>
    %242 = vector.extract_strided_slice %240 {offsets = [16, 0], sizes = [1, 128], strides = [1, 1]} : vector<32x128xf32> to vector<1x128xf32>
    %243 = tpu.concatenate %241, %242 in 0 : vector<1x128xf32>, vector<1x128xf32> -> vector<2x128xf32>
    %c0_24 = arith.constant 0 : index
    %c0_25 = arith.constant 0 : index
    %244 = vector.load %arg1[%c0_24, %c0_25] : memref<2x5xf32, #tpu.memory_space<vmem>>, vector<2x5xf32>
    %c0_26 = arith.constant 0 : index
    %c0_27 = arith.constant 0 : index
    %245 = vector.load %arg6[%c0_26, %c0_27] : memref<5x128xf32, #tpu.memory_space<vmem>>, vector<5x128xf32>
    %cst_28 = arith.constant dense<0.000000e+00> : vector<2x128xf32>
    %246 = tpu.matmul %244, %245, %cst_28 {dimension_numbers = #tpu.dot_dimension_numbers<[1], [0], [0], [1], [0, 0, 1, 1], [], []>} : vector<2x5xf32>, vector<5x128xf32>, vector<2x128xf32> -> vector<2x128xf32>
    %247 = arith.addf %243, %246 : vector<2x128xf32>
    %c0_29 = arith.constant 0 : index
    %c0_30 = arith.constant 0 : index
    %248 = vector.load %arg7[%c0_29, %c0_30] : memref<1x128xf32, #tpu.memory_space<vmem>>, vector<1x128xf32>
    %249 = vector.broadcast %248 : vector<1x128xf32> to vector<2x128xf32>
    %250 = arith.addf %247, %249 : vector<2x128xf32>
    %cst_31 = arith.constant 0.000000e+00 : f32
    %251 = vector.broadcast %cst_31 : f32 to vector<2x128xf32>
    %252 = arith.cmpf ogt, %250, %251 : vector<2x128xf32>
    %cst_32 = arith.constant 2.000000e-01 : f32
    %253 = vector.broadcast %cst_32 : f32 to vector<2x128xf32>
    %254 = arith.mulf %253, %250 : vector<2x128xf32>
    %255 = arith.select %252, %250, %254 : vector<2x128xi1>, vector<2x128xf32>
    %c0_33 = arith.constant 0 : index
    %c0_34 = arith.constant 0 : index
    %256 = vector.load %arg8[%c0_33, %c0_34] : memref<1x128xf32, #tpu.memory_space<vmem>>, vector<1x128xf32>
    %257 = vector.broadcast %256 : vector<1x128xf32> to vector<2x128xf32>
    %258 = arith.mulf %255, %257 : vector<2x128xf32>
    %cst_35 = arith.constant dense<0.000000e+00> : vector<2xf32>
    %259 = vector.multi_reduction <add>, %258, %cst_35 [1] : vector<2x128xf32> to vector<2xf32>
    %260 = vector.shape_cast %259 : vector<2xf32> to vector<2x1xf32>
    %c0_36 = arith.constant 0 : index
    %c0_37 = arith.constant 0 : index
    %261 = vector.load %arg9[%c0_36, %c0_37] : memref<1x1xf32, #tpu.memory_space<vmem>>, vector<1x1xf32>
    %262 = vector.broadcast %261 : vector<1x1xf32> to vector<2x1xf32>
    %263 = arith.addf %260, %262 : vector<2x1xf32>
    %264 = math.absf %263 : vector<2x1xf32>
    %cst_38 = arith.constant 0.000000e+00 : f32
    %265 = vector.broadcast %cst_38 : f32 to vector<2x1xf32>
    %266 = arith.subf %265, %264 : vector<2x1xf32>
    %267 = math.exp %266 : vector<2x1xf32>
    %cst_39 = arith.constant 1.000000e+00 : f32
    %268 = vector.broadcast %cst_39 : f32 to vector<2x1xf32>
    %269 = arith.addf %268, %267 : vector<2x1xf32>
    %cst_40 = arith.constant 1.000000e+00 : f32
    %270 = vector.broadcast %cst_40 : f32 to vector<2x1xf32>
    %271 = arith.divf %270, %269 : vector<2x1xf32>
    %cst_41 = arith.constant 0.000000e+00 : f32
    %272 = vector.broadcast %cst_41 : f32 to vector<2x1xf32>
    %273 = arith.cmpf oge, %263, %272 : vector<2x1xf32>
    %274 = arith.mulf %267, %271 : vector<2x1xf32>
    %275 = arith.select %273, %271, %274 : vector<2x1xi1>, vector<2x1xf32>
    %c0_42 = arith.constant 0 : index
    %c0_43 = arith.constant 0 : index
    %276 = vector.load %arg12[%c0_42, %c0_43] : memref<2x1xf32, #tpu.memory_space<vmem>>, vector<2x1xf32>
    tpu.vector_store %arg12[%c0_42, %c0_43], %275 {strides = array<i32>} : memref<2x1xf32, #tpu.memory_space<vmem>>, vector<2x1xf32>,
    return
  }
}

</mosaic_0001>

<bundles_post_ra>
// kernel: discriminator_forward.1
= control target key start
LH: loop header
LB: loop body
LE: loop exit
PB: predicated region body
PF: predicated region fallthrough
CT: control target
= control target key end

     0   :  { %s5989_s0 = inlined_call_operand.vmem [shape: f32[128,27], index: 0, kind: input, shape index: {}]   ;;  %s5990_s1 = inlined_call_operand.vmem [shape: f32[2,5], index: 1, kind: input, shape index: {}]   ;;  %s5991_s2 = inlined_call_operand.vmem [shape: f32[27,32], index: 2, kind: input, shape index: {}]   ;;  %s5992_s3 = inlined_call_operand.vmem [shape: f32[288,64], index: 3, kind: input, shape index: {}]   ;;  %s5993_s4 = inlined_call_operand.vmem [shape: f32[32,9], index: 4, kind: input, shape index: {}]   ;;  %s5994_s5 = inlined_call_operand.vmem [shape: f32[32,9], index: 5, kind: input, shape index: {}]   ;;  %s5995_s6 = inlined_call_operand.vmem [shape: f32[5,128], index: 6, kind: input, shape index: {}]   ;;  %s5996_s7 = inlined_call_operand.vmem [shape: f32[1,128], index: 7, kind: input, shape index: {}]   ;;  %s5997_s8 = inlined_call_operand.vmem [shape: f32[1,128], index: 8, kind: input, shape index: {}]   ;;  %s5998_s9 = inlined_call_operand.<no memory space> [shape: f32[1,1], index: 9, kind: input, shape index: {}]   ;;  %s5999_s10 = inlined_call_operand.vmem [shape: f32[576,64], index: 10, kind: input, shape index: {}]   ;;  %s6000_s11 = inlined_call_operand.vmem [shape: f32[64,2048], index: 11, kind: input, shape index: {}]   ;;  %s6001_s12 = inlined_call_operand.vmem [shape: f32[2,1], index: 12, kind: output, shape index: {}]  }
   0x1   :  { %v17_v0 = vstv %s5998_s9  ;;  %v3895_v1 = vld [vmem:[%s5999_s10] sm:$0xff]  ;;  %v3900_v2 = vld [vmem:[%s5999_s10 + $0x8] sm:$0xff]  ;;  %v3905_v3 = vld [vmem:[%s5999_s10 + $0x10] sm:$0xff] }
   0x2   :  { %6032 = vst [vmem:[#allocation10_spill] sm:$0xff] %v3895_v1  ;;  %6033 = vst [vmem:[#allocation11_spill] sm:$0xff] %v3900_v2  ;;  %v3910_v4 = vld [vmem:[%s5999_s10 + $0x18] sm:$0xff]  ;;  %v3915_v5 = vld [vmem:[%s5999_s10 + $0x20] sm:$0xff] }
   0x3   :  { %6034 = vst [vmem:[#allocation12_spill] sm:$0xff] %v3905_v3  ;;  %18 = vst [vmem:[#allocation5] sm:$0x1] %v17_v0  ;;  %v3920_v6 = vld [vmem:[%s5999_s10 + $0x28] sm:$0xff]  ;;  %v3925_v7 = vld [vmem:[%s5999_s10 + $0x30] sm:$0xff] }
   0x4   :  { %6035 = vst [vmem:[#allocation13_spill] sm:$0xff] %v3910_v4  ;;  %6036 = vst [vmem:[#allocation14_spill] sm:$0xff] %v3915_v5  ;;  %v3930_v8 = vld [vmem:[%s5999_s10 + $0x38] sm:$0xff]  ;;  %v3935_v9 = vld [vmem:[%s5999_s10 + $0x40] sm:$0xff] }
   0x5   :  { %6037 = vst [vmem:[#allocation15_spill] sm:$0xff] %v3920_v6  ;;  %6038 = vst [vmem:[#allocation16_spill] sm:$0xff] %v3925_v7  ;;  %v3940_v10 = vld [vmem:[%s5999_s10 + $0x48] sm:$0xff]  ;;  %v3945_v11 = vld [vmem:[%s5999_s10 + $0x50] sm:$0xff] }
   0x6   :  { %6039 = vst [vmem:[#allocation17_spill] sm:$0xff] %v3930_v8  ;;  %6040 = vst [vmem:[#allocation18_spill] sm:$0xff] %v3935_v9  ;;  %v3950_v12 = vld [vmem:[%s5999_s10 + $0x58] sm:$0xff]  ;;  %v3955_v13 = vld [vmem:[%s5999_s10 + $0x60] sm:$0xff] }
   0x7   :  { %6041 = vst [vmem:[#allocation19_spill] sm:$0xff] %v3940_v10  ;;  %6042 = vst [vmem:[#allocation20_spill] sm:$0xff] %v3945_v11  ;;  %v3960_v14 = vld [vmem:[%s5999_s10 + $0x68] sm:$0xff]  ;;  %v3965_v15 = vld [vmem:[%s5999_s10 + $0x70] sm:$0xff] }
   0x8   :  { %6043 = vst [vmem:[#allocation21_spill] sm:$0xff] %v3950_v12  ;;  %6044 = vst [vmem:[#allocation22_spill] sm:$0xff] %v3955_v13  ;;  %v3970_v16 = vld [vmem:[%s5999_s10 + $0x78] sm:$0xff]  ;;  %v3975_v17 = vld [vmem:[%s5999_s10 + $0x80] sm:$0xff] }
   0x9   :  { %6045 = vst [vmem:[#allocation23_spill] sm:$0xff] %v3960_v14  ;;  %6046 = vst [vmem:[#allocation24_spill] sm:$0xff] %v3975_v17  ;;  %v3980_v18 = vld [vmem:[%s5999_s10 + $0x88] sm:$0xff]  ;;  %v3985_v19 = vld [vmem:[%s5999_s10 + $0x90] sm:$0xff] }
   0xa   :  { %6047 = vst [vmem:[#allocation25_spill] sm:$0xff] %v3980_v18  ;;  %6048 = vst [vmem:[#allocation26_spill] sm:$0xff] %v3985_v19  ;;  %v3990_v20 = vld [vmem:[%s5999_s10 + $0x98] sm:$0xff]  ;;  %v3995_v21 = vld [vmem:[%s5999_s10 + $0xa0] sm:$0xff] }
   0xb   :  { %6049 = vst [vmem:[#allocation27_spill] sm:$0xff] %v3990_v20  ;;  %6050 = vst [vmem:[#allocation28_spill] sm:$0xff] %v3995_v21  ;;  %v4000_v22 = vld [vmem:[%s5999_s10 + $0xa8] sm:$0xff]  ;;  %v4005_v23 = vld [vmem:[%s5999_s10 + $0xb0] sm:$0xff] }
   0xc   :  { %6051 = vst [vmem:[#allocation29_spill] sm:$0xff] %v4000_v22  ;;  %6052 = vst [vmem:[#allocation30_spill] sm:$0xff] %v4005_v23  ;;  %v4010_v24 = vld [vmem:[%s5999_s10 + $0xb8] sm:$0xff]  ;;  %v4015_v25 = vld [vmem:[%s5999_s10 + $0xc0] sm:$0xff] }
   0xd   :  { %6053 = vst [vmem:[#allocation31_spill] sm:$0xff] %v4010_v24  ;;  %6054 = vst [vmem:[#allocation32_spill] sm:$0xff] %v4015_v25  ;;  %v4020_v26 = vld [vmem:[%s5999_s10 + $0xc8] sm:$0xff]  ;;  %v4025_v27 = vld [vmem:[%s5999_s10 + $0xd0] sm:$0xff] }
   0xe   :  { %6055 = vst [vmem:[#allocation33_spill] sm:$0xff] %v4020_v26  ;;  %6056 = vst [vmem:[#allocation34_spill] sm:$0xff] %v4025_v27  ;;  %v4030_v28 = vld [vmem:[%s5999_s10 + $0xd8] sm:$0xff]  ;;  %v4035_v29 = vld [vmem:[%s5999_s10 + $0xe0] sm:$0xff] }
   0xf   :  { %6057 = vst [vmem:[#allocation35_spill] sm:$0xff] %v4030_v28  ;;  %6058 = vst [vmem:[#allocation36_spill] sm:$0xff] %v4035_v29  ;;  %v4040_v30 = vld [vmem:[%s5999_s10 + $0xe8] sm:$0xff]  ;;  %v4045_v31 = vld [vmem:[%s5999_s10 + $0xf0] sm:$0xff] }
  0x10   :  { %6059 = vst [vmem:[#allocation37_spill] sm:$0xff] %v4040_v30  ;;  %v4050_v32 = vld [vmem:[%s5999_s10 + $0xf8] sm:$0xff]  ;;  %v4055_v33 = vld [vmem:[%s5999_s10 + $0x100] sm:$0xff]  ;;  %v4060_v34 = vld [vmem:[%s5999_s10 + $0x108] sm:$0xff] }
  0x11   :  { %6060 = vst [vmem:[#allocation38_spill] sm:$0xff] %v4055_v33  ;;  %6061 = vst [vmem:[#allocation39_spill] sm:$0xff] %v4060_v34  ;;  %v4065_v35 = vld [vmem:[%s5999_s10 + $0x110] sm:$0xff]  ;;  %v4070_v36 = vld [vmem:[%s5999_s10 + $0x118] sm:$0xff] }
  0x12   :  { %6062 = vst [vmem:[#allocation40_spill] sm:$0xff] %v4065_v35  ;;  %6063 = vst [vmem:[#allocation41_spill] sm:$0xff] %v4070_v36  ;;  %v4075_v37 = vld [vmem:[%s5999_s10 + $0x120] sm:$0xff]  ;;  %v4080_v38 = vld [vmem:[%s5999_s10 + $0x128] sm:$0xff] }
  0x13   :  { %6064 = vst [vmem:[#allocation42_spill] sm:$0xff] %v4075_v37  ;;  %6065 = vst [vmem:[#allocation43_spill] sm:$0xff] %v4080_v38  ;;  %v4085_v39 = vld [vmem:[%s5999_s10 + $0x130] sm:$0xff]  ;;  %v4090_v40 = vld [vmem:[%s5999_s10 + $0x138] sm:$0xff] }
  0x14   :  { %6066 = vst [vmem:[#allocation44_spill] sm:$0xff] %v4085_v39  ;;  %6067 = vst [vmem:[#allocation45_spill] sm:$0xff] %v4090_v40  ;;  %v4095_v41 = vld [vmem:[%s5999_s10 + $0x140] sm:$0xff]  ;;  %v4100_v42 = vld [vmem:[%s5999_s10 + $0x148] sm:$0xff] }
  0x15   :  { %6068 = vst [vmem:[#allocation46_spill] sm:$0xff] %v4095_v41  ;;  %6069 = vst [vmem:[#allocation47_spill] sm:$0xff] %v4100_v42  ;;  %v4105_v43 = vld [vmem:[%s5999_s10 + $0x150] sm:$0xff]  ;;  %v4110_v44 = vld [vmem:[%s5999_s10 + $0x158] sm:$0xff] }
  0x16   :  { %6070 = vst [vmem:[#allocation48_spill] sm:$0xff] %v4105_v43  ;;  %6071 = vst [vmem:[#allocation49_spill] sm:$0xff] %v4110_v44  ;;  %v4115_v45 = vld [vmem:[%s5999_s10 + $0x160] sm:$0xff]  ;;  %v4120_v46 = vld [vmem:[%s5999_s10 + $0x168] sm:$0xff] }
  0x17   :  { %6072 = vst [vmem:[#allocation50_spill] sm:$0xff] %v4115_v45  ;;  %6073 = vst [vmem:[#allocation51_spill] sm:$0xff] %v4120_v46  ;;  %v4125_v47 = vld [vmem:[%s5999_s10 + $0x170] sm:$0xff]  ;;  %v4130_v48 = vld [vmem:[%s5999_s10 + $0x178] sm:$0xff] }
  0x18   :  { %v4135_v49 = vld [vmem:[%s5999_s10 + $0x180] sm:$0xff]  ;;  %v4140_v50 = vld [vmem:[%s5999_s10 + $0x188] sm:$0xff]  ;;  %v4145_v51 = vld [vmem:[%s5999_s10 + $0x190] sm:$0xff] }
  0x19   :  { %6074 = vst [vmem:[#allocation52_spill] sm:$0xff] %v4135_v49  ;;  %6075 = vst [vmem:[#allocation53_spill] sm:$0xff] %v4140_v50  ;;  %v4150_v52 = vld [vmem:[%s5999_s10 + $0x198] sm:$0xff]  ;;  %v4155_v53 = vld [vmem:[%s5999_s10 + $0x1a0] sm:$0xff] }
  0x1a   :  { %6076 = vst [vmem:[#allocation54_spill] sm:$0xff] %v4145_v51  ;;  %6077 = vst [vmem:[#allocation55_spill] sm:$0xff] %v4150_v52  ;;  %v4160_v54 = vld [vmem:[%s5999_s10 + $0x1a8] sm:$0xff]  ;;  %v4165_v55 = vld [vmem:[%s5999_s10 + $0x1b0] sm:$0xff] }
  0x1b   :  { %6078 = vst [vmem:[#allocation56_spill] sm:$0xff] %v4155_v53  ;;  %6079 = vst [vmem:[#allocation57_spill] sm:$0xff] %v4160_v54  ;;  %v4170_v56 = vld [vmem:[%s5999_s10 + $0x1b8] sm:$0xff]  ;;  %v4175_v57 = vld [vmem:[%s5999_s10 + $0x1c0] sm:$0xff] }
  0x1c   :  { %6080 = vst [vmem:[#allocation58_spill] sm:$0xff] %v4165_v55  ;;  %6081 = vst [vmem:[#allocation59_spill] sm:$0xff] %v4170_v56  ;;  %v4180_v58 = vld [vmem:[%s5999_s10 + $0x1c8] sm:$0xff]  ;;  %v4185_v59 = vld [vmem:[%s5999_s10 + $0x1d0] sm:$0xff] }
  0x1d   :  { %6082 = vst [vmem:[#allocation60_spill] sm:$0xff] %v4175_v57  ;;  %6083 = vst [vmem:[#allocation61_spill] sm:$0xff] %v4180_v58  ;;  %v4190_v60 = vld [vmem:[%s5999_s10 + $0x1d8] sm:$0xff]  ;;  %v4195_v61 = vld [vmem:[%s5999_s10 + $0x1e0] sm:$0xff] }
  0x1e   :  { %6084 = vst [vmem:[#allocation62_spill] sm:$0xff] %v4185_v59  ;;  %6085 = vst [vmem:[#allocation63_spill] sm:$0xff] %v4190_v60  ;;  %v4200_v62 = vld [vmem:[%s5999_s10 + $0x1e8] sm:$0xff]  ;;  %v4205_v63 = vld [vmem:[%s5999_s10 + $0x1f0] sm:$0xff] }
  0x1f   :  { %6086 = vst [vmem:[#allocation64_spill] sm:$0xff] %v4195_v61  ;;  %6087 = vst [vmem:[#allocation65_spill] sm:$0xff] %v4200_v62  ;;  %v4210_v0 = vld [vmem:[%s5999_s10 + $0x1f8] sm:$0xff]  ;;  %v4215_v1 = vld [vmem:[%s5999_s10 + $0x200] sm:$0xff] }
  0x20   :  { %6088 = vst [vmem:[#allocation66_spill] sm:$0xff] %v4215_v1  ;;  %v4220_v33 = vld [vmem:[%s5999_s10 + $0x208] sm:$0xff]  ;;  %v4225_v17 = vld [vmem:[%s5999_s10 + $0x210] sm:$0xff]  ;;  %v4230_v49 = vld [vmem:[%s5999_s10 + $0x218] sm:$0xff] }
  0x21   :  { %6089 = vst [vmem:[#allocation67_spill] sm:$0xff] %v4220_v33  ;;  %6090 = vst [vmem:[#allocation68_spill] sm:$0xff] %v4225_v17  ;;  %v4235_v2 = vld [vmem:[%s5999_s10 + $0x220] sm:$0xff]  ;;  %v4240_v1 = vld [vmem:[%s5999_s10 + $0x228] sm:$0xff] }
  0x22   :  { %6091 = vst [vmem:[#allocation69_spill] sm:$0xff] %v4230_v49  ;;  %6092 = vst [vmem:[#allocation70_spill] sm:$0xff] %v4235_v2  ;;  %v4245_v33 = vld [vmem:[%s5999_s10 + $0x230] sm:$0xff]  ;;  %v4250_v17 = vld [vmem:[%s5999_s10 + $0x238] sm:$0xff] }
  0x23   :  { %6093 = vst [vmem:[#allocation71_spill] sm:$0xff] %v4240_v1  ;;  %6094 = vst [vmem:[#allocation72_spill] sm:$0xff] %v4245_v33 }
  0x24   :  { %6095 = vst [vmem:[#allocation73_spill] sm:$0xff] %v4250_v17 }
  0x25   :  { %223 = vsyncadd [#allocation4], 9216  ;;  %v4255_v49 = vld [vmem:[%s6000_s11] sm:$0xff]  ;;  %v4260_v2 = vld [vmem:[%s6000_s11 + $0x8] sm:$0xff] }
  0x26   :  { %6096 = vst [vmem:[#allocation74_spill] sm:$0xff] %v4255_v49  ;;  %6097 = vst [vmem:[#allocation75_spill] sm:$0xff] %v4260_v2  ;;  %v4265_v1 = vld [vmem:[%s6000_s11 + $0x10] sm:$0xff]  ;;  %v4270_v33 = vld [vmem:[%s6000_s11 + $0x18] sm:$0xff] }
  0x27   :  { %6098 = vst [vmem:[#allocation76_spill] sm:$0xff] %v4265_v1  ;;  %6099 = vst [vmem:[#allocation77_spill] sm:$0xff] %v4270_v33  ;;  %v4275_v17 = vld [vmem:[%s6000_s11 + $0x20] sm:$0xff]  ;;  %v4280_v49 = vld [vmem:[%s6000_s11 + $0x28] sm:$0xff] }
  0x28   :  { %6100 = vst [vmem:[#allocation78_spill] sm:$0xff] %v4275_v17  ;;  %6101 = vst [vmem:[#allocation79_spill] sm:$0xff] %v4280_v49  ;;  %v4285_v2 = vld [vmem:[%s6000_s11 + $0x30] sm:$0xff]  ;;  %v4290_v1 = vld [vmem:[%s6000_s11 + $0x38] sm:$0xff] }
  0x29   :  { %6102 = vst [vmem:[#allocation80_spill] sm:$0xff] %v4285_v2  ;;  %6103 = vst [vmem:[#allocation81_spill] sm:$0xff] %v4290_v1  ;;  %v4295_v33 = vld [vmem:[%s6000_s11 + $0x40] sm:$0xff]  ;;  %v4300_v17 = vld [vmem:[%s6000_s11 + $0x48] sm:$0xff] }
  0x2a   :  { %6104 = vst [vmem:[#allocation82_spill] sm:$0xff] %v4295_v33  ;;  %6105 = vst [vmem:[#allocation83_spill] sm:$0xff] %v4300_v17  ;;  %v4305_v49 = vld [vmem:[%s6000_s11 + $0x50] sm:$0xff]  ;;  %v4310_v2 = vld [vmem:[%s6000_s11 + $0x58] sm:$0xff] }
  0x2b   :  { %6106 = vst [vmem:[#allocation84_spill] sm:$0xff] %v4305_v49  ;;  %6107 = vst [vmem:[#allocation85_spill] sm:$0xff] %v4310_v2  ;;  %v4315_v1 = vld [vmem:[%s6000_s11 + $0x60] sm:$0xff]  ;;  %v4320_v33 = vld [vmem:[%s6000_s11 + $0x68] sm:$0xff] }
  0x2c   :  { %6108 = vst [vmem:[#allocation86_spill] sm:$0xff] %v4315_v1  ;;  %6109 = vst [vmem:[#allocation87_spill] sm:$0xff] %v4320_v33  ;;  %v4325_v17 = vld [vmem:[%s6000_s11 + $0x70] sm:$0xff]  ;;  %v4330_v49 = vld [vmem:[%s6000_s11 + $0x78] sm:$0xff] }
  0x2d   :  { %6110 = vst [vmem:[#allocation88_spill] sm:$0xff] %v4325_v17  ;;  %6111 = vst [vmem:[#allocation89_spill] sm:$0xff] %v4330_v49  ;;  %v4335_v2 = vld [vmem:[%s6000_s11 + $0x80] sm:$0xff]  ;;  %v4340_v1 = vld [vmem:[%s6000_s11 + $0x88] sm:$0xff] }
  0x2e   :  { %6112 = vst [vmem:[#allocation90_spill] sm:$0xff] %v4335_v2  ;;  %6113 = vst [vmem:[#allocation91_spill] sm:$0xff] %v4340_v1  ;;  %v4345_v33 = vld [vmem:[%s6000_s11 + $0x90] sm:$0xff]  ;;  %v4350_v17 = vld [vmem:[%s6000_s11 + $0x98] sm:$0xff] }
  0x2f   :  { %6114 = vst [vmem:[#allocation92_spill] sm:$0xff] %v4345_v33  ;;  %6115 = vst [vmem:[#allocation93_spill] sm:$0xff] %v4350_v17  ;;  %v4355_v49 = vld [vmem:[%s6000_s11 + $0xa0] sm:$0xff]  ;;  %v4360_v2 = vld [vmem:[%s6000_s11 + $0xa8] sm:$0xff] }
  0x30   :  { %6116 = vst [vmem:[#allocation94_spill] sm:$0xff] %v4355_v49  ;;  %6117 = vst [vmem:[#allocation95_spill] sm:$0xff] %v4360_v2  ;;  %v4365_v1 = vld [vmem:[%s6000_s11 + $0xb0] sm:$0xff]  ;;  %v4370_v33 = vld [vmem:[%s6000_s11 + $0xb8] sm:$0xff] }
  0x31   :  { %6118 = vst [vmem:[#allocation96_spill] sm:$0xff] %v4365_v1  ;;  %6119 = vst [vmem:[#allocation97_spill] sm:$0xff] %v4370_v33  ;;  %v4375_v17 = vld [vmem:[%s6000_s11 + $0xc0] sm:$0xff]  ;;  %v4380_v49 = vld [vmem:[%s6000_s11 + $0xc8] sm:$0xff] }
  0x32   :  { %6120 = vst [vmem:[#allocation98_spill] sm:$0xff] %v4375_v17  ;;  %6121 = vst [vmem:[#allocation99_spill] sm:$0xff] %v4380_v49  ;;  %v4385_v2 = vld [vmem:[%s6000_s11 + $0xd0] sm:$0xff]  ;;  %v4390_v1 = vld [vmem:[%s6000_s11 + $0xd8] sm:$0xff] }
  0x33   :  { %6122 = vst [vmem:[#allocation100_spill] sm:$0xff] %v4385_v2  ;;  %6123 = vst [vmem:[#allocation101_spill] sm:$0xff] %v4390_v1  ;;  %v4395_v33 = vld [vmem:[%s6000_s11 + $0xe0] sm:$0xff]  ;;  %v4400_v17 = vld [vmem:[%s6000_s11 + $0xe8] sm:$0xff] }
  0x34   :  { %6124 = vst [vmem:[#allocation102_spill] sm:$0xff] %v4395_v33  ;;  %6125 = vst [vmem:[#allocation103_spill] sm:$0xff] %v4400_v17  ;;  %v4405_v49 = vld [vmem:[%s6000_s11 + $0xf0] sm:$0xff]  ;;  %v4410_v2 = vld [vmem:[%s6000_s11 + $0xf8] sm:$0xff] }
  0x35   :  { %6126 = vst [vmem:[#allocation104_spill] sm:$0xff] %v4405_v49  ;;  %6127 = vst [vmem:[#allocation105_spill] sm:$0xff] %v4410_v2  ;;  %v4415_v1 = vld [vmem:[%s6000_s11 + $0x100] sm:$0xff]  ;;  %v4420_v33 = vld [vmem:[%s6000_s11 + $0x108] sm:$0xff] }
  0x36   :  { %6128 = vst [vmem:[#allocation106_spill] sm:$0xff] %v4415_v1  ;;  %6129 = vst [vmem:[#allocation107_spill] sm:$0xff] %v4420_v33  ;;  %v4425_v17 = vld [vmem:[%s6000_s11 + $0x110] sm:$0xff]  ;;  %v4430_v49 = vld [vmem:[%s6000_s11 + $0x118] sm:$0xff] }
  0x37   :  { %6130 = vst [vmem:[#allocation108_spill] sm:$0xff] %v4425_v17  ;;  %6131 = vst [vmem:[#allocation109_spill] sm:$0xff] %v4430_v49  ;;  %v4435_v2 = vld [vmem:[%s6000_s11 + $0x120] sm:$0xff]  ;;  %v4440_v1 = vld [vmem:[%s6000_s11 + $0x128] sm:$0xff] }
  0x38   :  { %6132 = vst [vmem:[#allocation110_spill] sm:$0xff] %v4435_v2  ;;  %6133 = vst [vmem:[#allocation111_spill] sm:$0xff] %v4440_v1  ;;  %v4445_v33 = vld [vmem:[%s6000_s11 + $0x130] sm:$0xff]  ;;  %v4450_v17 = vld [vmem:[%s6000_s11 + $0x138] sm:$0xff] }
  0x39   :  { %6134 = vst [vmem:[#allocation112_spill] sm:$0xff] %v4445_v33  ;;  %6135 = vst [vmem:[#allocation113_spill] sm:$0xff] %v4450_v17  ;;  %v4455_v49 = vld [vmem:[%s6000_s11 + $0x140] sm:$0xff]  ;;  %v4460_v2 = vld [vmem:[%s6000_s11 + $0x148] sm:$0xff] }
  0x3a   :  { %6136 = vst [vmem:[#allocation114_spill] sm:$0xff] %v4455_v49  ;;  %6137 = vst [vmem:[#allocation115_spill] sm:$0xff] %v4460_v2  ;;  %v4465_v1 = vld [vmem:[%s6000_s11 + $0x150] sm:$0xff]  ;;  %v4470_v33 = vld [vmem:[%s6000_s11 + $0x158] sm:$0xff] }
  0x3b   :  { %6138 = vst [vmem:[#allocation116_spill] sm:$0xff] %v4465_v1  ;;  %6139 = vst [vmem:[#allocation117_spill] sm:$0xff] %v4470_v33  ;;  %v4475_v17 = vld [vmem:[%s6000_s11 + $0x160] sm:$0xff]  ;;  %v4480_v49 = vld [vmem:[%s6000_s11 + $0x168] sm:$0xff] }
  0x3c   :  { %6140 = vst [vmem:[#allocation118_spill] sm:$0xff] %v4475_v17  ;;  %6141 = vst [vmem:[#allocation119_spill] sm:$0xff] %v4480_v49  ;;  %v4485_v2 = vld [vmem:[%s6000_s11 + $0x170] sm:$0xff]  ;;  %v4490_v1 = vld [vmem:[%s6000_s11 + $0x178] sm:$0xff] }
  0x3d   :  { %6142 = vst [vmem:[#allocation120_spill] sm:$0xff] %v4485_v2  ;;  %6143 = vst [vmem:[#allocation121_spill] sm:$0xff] %v4490_v1  ;;  %v4495_v33 = vld [vmem:[%s6000_s11 + $0x180] sm:$0xff]  ;;  %v4500_v17 = vld [vmem:[%s6000_s11 + $0x188] sm:$0xff] }
  0x3e   :  { %6144 = vst [vmem:[#allocation122_spill] sm:$0xff] %v4495_v33  ;;  %6145 = vst [vmem:[#allocation123_spill] sm:$0xff] %v4500_v17  ;;  %v4505_v49 = vld [vmem:[%s6000_s11 + $0x190] sm:$0xff]  ;;  %v4510_v2 = vld [vmem:[%s6000_s11 + $0x198] sm:$0xff] }
  0x3f   :  { %6146 = vst [vmem:[#allocation124_spill] sm:$0xff] %v4505_v49  ;;  %6147 = vst [vmem:[#allocation125_spill] sm:$0xff] %v4510_v2  ;;  %v4515_v1 = vld [vmem:[%s6000_s11 + $0x1a0] sm:$0xff]  ;;  %v4520_v33 = vld [vmem:[%s6000_s11 + $0x1a8] sm:$0xff] }
  0x40   :  { %6148 = vst [vmem:[#allocation126_spill] sm:$0xff] %v4515_v1  ;;  %6149 = vst [vmem:[#allocation127_spill] sm:$0xff] %v4520_v33  ;;  %v4525_v17 = vld [vmem:[%s6000_s11 + $0x1b0] sm:$0xff]  ;;  %v4530_v49 = vld [vmem:[%s6000_s11 + $0x1b8] sm:$0xff] }
  0x41   :  { %6150 = vst [vmem:[#allocation128_spill] sm:$0xff] %v4525_v17  ;;  %6151 = vst [vmem:[#allocation129_spill] sm:$0xff] %v4530_v49  ;;  %v4535_v2 = vld [vmem:[%s6000_s11 + $0x1c0] sm:$0xff]  ;;  %v4540_v1 = vld [vmem:[%s6000_s11 + $0x1c8] sm:$0xff] }
  0x42   :  { %6152 = vst [vmem:[#allocation130_spill] sm:$0xff] %v4535_v2  ;;  %6153 = vst [vmem:[#allocation131_spill] sm:$0xff] %v4540_v1  ;;  %v4545_v33 = vld [vmem:[%s6000_s11 + $0x1d0] sm:$0xff]  ;;  %v4550_v17 = vld [vmem:[%s6000_s11 + $0x1d8] sm:$0xff] }
  0x43   :  { %6154 = vst [vmem:[#allocation132_spill] sm:$0xff] %v4545_v33  ;;  %6155 = vst [vmem:[#allocation133_spill] sm:$0xff] %v4550_v17  ;;  %v4555_v49 = vld [vmem:[%s6000_s11 + $0x1e0] sm:$0xff]  ;;  %v4560_v2 = vld [vmem:[%s6000_s11 + $0x1e8] sm:$0xff] }
  0x44   :  { %6156 = vst [vmem:[#allocation134_spill] sm:$0xff] %v4555_v49  ;;  %6157 = vst [vmem:[#allocation135_spill] sm:$0xff] %v4560_v2  ;;  %v4565_v1 = vld [vmem:[%s6000_s11 + $0x1f0] sm:$0xff]  ;;  %v4570_v33 = vld [vmem:[%s6000_s11 + $0x1f8] sm:$0xff] }
  0x45   :  { %6158 = vst [vmem:[#allocation136_spill] sm:$0xff] %v4565_v1  ;;  %6159 = vst [vmem:[#allocation137_spill] sm:$0xff] %v4570_v33  ;;  %v4575_v17 = vld [vmem:[%s6000_s11 + $0x200] sm:$0xff]  ;;  %v4580_v49 = vld [vmem:[%s6000_s11 + $0x208] sm:$0xff] }
  0x46   :  { %6160 = vst [vmem:[#allocation138_spill] sm:$0xff] %v4575_v17  ;;  %6161 = vst [vmem:[#allocation139_spill] sm:$0xff] %v4580_v49  ;;  %v4585_v2 = vld [vmem:[%s6000_s11 + $0x210] sm:$0xff]  ;;  %v4590_v1 = vld [vmem:[%s6000_s11 + $0x218] sm:$0xff] }
  0x47   :  { %6162 = vst [vmem:[#allocation140_spill] sm:$0xff] %v4585_v2  ;;  %6163 = vst [vmem:[#allocation141_spill] sm:$0xff] %v4590_v1  ;;  %v4595_v33 = vld [vmem:[%s6000_s11 + $0x220] sm:$0xff]  ;;  %v4600_v17 = vld [vmem:[%s6000_s11 + $0x228] sm:$0xff] }
  0x48   :  { %6164 = vst [vmem:[#allocation142_spill] sm:$0xff] %v4595_v33  ;;  %6165 = vst [vmem:[#allocation143_spill] sm:$0xff] %v4600_v17  ;;  %v4605_v49 = vld [vmem:[%s6000_s11 + $0x230] sm:$0xff]  ;;  %v4610_v2 = vld [vmem:[%s6000_s11 + $0x238] sm:$0xff] }
  0x49   :  { %6166 = vst [vmem:[#allocation144_spill] sm:$0xff] %v4605_v49  ;;  %6167 = vst [vmem:[#allocation145_spill] sm:$0xff] %v4610_v2  ;;  %v4615_v1 = vld [vmem:[%s6000_s11 + $0x240] sm:$0xff]  ;;  %v4620_v33 = vld [vmem:[%s6000_s11 + $0x248] sm:$0xff] }
  0x4a   :  { %6168 = vst [vmem:[#allocation146_spill] sm:$0xff] %v4615_v1  ;;  %6169 = vst [vmem:[#allocation147_spill] sm:$0xff] %v4620_v33  ;;  %v4625_v17 = vld [vmem:[%s6000_s11 + $0x250] sm:$0xff]  ;;  %v4630_v49 = vld [vmem:[%s6000_s11 + $0x258] sm:$0xff] }
  0x4b   :  { %6170 = vst [vmem:[#allocation148_spill] sm:$0xff] %v4625_v17  ;;  %6171 = vst [vmem:[#allocation149_spill] sm:$0xff] %v4630_v49  ;;  %v4635_v2 = vld [vmem:[%s6000_s11 + $0x260] sm:$0xff]  ;;  %v4640_v1 = vld [vmem:[%s6000_s11 + $0x268] sm:$0xff] }
  0x4c   :  { %6172 = vst [vmem:[#allocation150_spill] sm:$0xff] %v4635_v2  ;;  %6173 = vst [vmem:[#allocation151_spill] sm:$0xff] %v4640_v1  ;;  %v4645_v33 = vld [vmem:[%s6000_s11 + $0x270] sm:$0xff]  ;;  %v4650_v17 = vld [vmem:[%s6000_s11 + $0x278] sm:$0xff] }
  0x4d   :  { %6174 = vst [vmem:[#allocation152_spill] sm:$0xff] %v4645_v33  ;;  %6175 = vst [vmem:[#allocation153_spill] sm:$0xff] %v4650_v17  ;;  %v4655_v49 = vld [vmem:[%s6000_s11 + $0x280] sm:$0xff]  ;;  %v4660_v2 = vld [vmem:[%s6000_s11 + $0x288] sm:$0xff] }
  0x4e   :  { %6176 = vst [vmem:[#allocation154_spill] sm:$0xff] %v4655_v49  ;;  %6177 = vst [vmem:[#allocation155_spill] sm:$0xff] %v4660_v2  ;;  %v4665_v1 = vld [vmem:[%s6000_s11 + $0x290] sm:$0xff]  ;;  %v4670_v33 = vld [vmem:[%s6000_s11 + $0x298] sm:$0xff] }
  0x4f   :  { %6178 = vst [vmem:[#allocation156_spill] sm:$0xff] %v4665_v1  ;;  %6179 = vst [vmem:[#allocation157_spill] sm:$0xff] %v4670_v33  ;;  %v4675_v17 = vld [vmem:[%s6000_s11 + $0x2a0] sm:$0xff]  ;;  %v4680_v49 = vld [vmem:[%s6000_s11 + $0x2a8] sm:$0xff] }
  0x50   :  { %6180 = vst [vmem:[#allocation158_spill] sm:$0xff] %v4675_v17  ;;  %6181 = vst [vmem:[#allocation159_spill] sm:$0xff] %v4680_v49  ;;  %v4685_v2 = vld [vmem:[%s6000_s11 + $0x2b0] sm:$0xff]  ;;  %v4690_v1 = vld [vmem:[%s6000_s11 + $0x2b8] sm:$0xff] }
  0x51   :  { %6182 = vst [vmem:[#allocation160_spill] sm:$0xff] %v4685_v2  ;;  %6183 = vst [vmem:[#allocation161_spill] sm:$0xff] %v4690_v1  ;;  %v4695_v33 = vld [vmem:[%s6000_s11 + $0x2c0] sm:$0xff]  ;;  %v4700_v17 = vld [vmem:[%s6000_s11 + $0x2c8] sm:$0xff] }
  0x52   :  { %6184 = vst [vmem:[#allocation162_spill] sm:$0xff] %v4695_v33  ;;  %6185 = vst [vmem:[#allocation163_spill] sm:$0xff] %v4700_v17  ;;  %v4705_v49 = vld [vmem:[%s6000_s11 + $0x2d0] sm:$0xff]  ;;  %v4710_v2 = vld [vmem:[%s6000_s11 + $0x2d8] sm:$0xff] }
  0x53   :  { %6186 = vst [vmem:[#allocation164_spill] sm:$0xff] %v4705_v49  ;;  %6187 = vst [vmem:[#allocation165_spill] sm:$0xff] %v4710_v2  ;;  %v4715_v1 = vld [vmem:[%s6000_s11 + $0x2e0] sm:$0xff]  ;;  %v4720_v33 = vld [vmem:[%s6000_s11 + $0x2e8] sm:$0xff] }
  0x54   :  { %6188 = vst [vmem:[#allocation166_spill] sm:$0xff] %v4715_v1  ;;  %6189 = vst [vmem:[#allocation167_spill] sm:$0xff] %v4720_v33  ;;  %v4725_v17 = vld [vmem:[%s6000_s11 + $0x2f0] sm:$0xff]  ;;  %v4730_v49 = vld [vmem:[%s6000_s11 + $0x2f8] sm:$0xff] }
  0x55   :  { %6190 = vst [vmem:[#allocation168_spill] sm:$0xff] %v4725_v17  ;;  %6191 = vst [vmem:[#allocation169_spill] sm:$0xff] %v4730_v49  ;;  %v4735_v2 = vld [vmem:[%s6000_s11 + $0x300] sm:$0xff]  ;;  %v4740_v1 = vld [vmem:[%s6000_s11 + $0x308] sm:$0xff] }
  0x56   :  { %6192 = vst [vmem:[#allocation170_spill] sm:$0xff] %v4735_v2  ;;  %6193 = vst [vmem:[#allocation171_spill] sm:$0xff] %v4740_v1  ;;  %v4745_v33 = vld [vmem:[%s6000_s11 + $0x310] sm:$0xff]  ;;  %v4750_v17 = vld [vmem:[%s6000_s11 + $0x318] sm:$0xff] }
  0x57   :  { %6194 = vst [vmem:[#allocation172_spill] sm:$0xff] %v4745_v33  ;;  %6195 = vst [vmem:[#allocation173_spill] sm:$0xff] %v4750_v17  ;;  %v4755_v49 = vld [vmem:[%s6000_s11 + $0x320] sm:$0xff]  ;;  %v4760_v2 = vld [vmem:[%s6000_s11 + $0x328] sm:$0xff] }
  0x58   :  { %6196 = vst [vmem:[#allocation174_spill] sm:$0xff] %v4755_v49  ;;  %6197 = vst [vmem:[#allocation175_spill] sm:$0xff] %v4760_v2  ;;  %v4765_v1 = vld [vmem:[%s6000_s11 + $0x330] sm:$0xff]  ;;  %v4770_v33 = vld [vmem:[%s6000_s11 + $0x338] sm:$0xff] }
  0x59   :  { %6198 = vst [vmem:[#allocation176_spill] sm:$0xff] %v4765_v1  ;;  %6199 = vst [vmem:[#allocation177_spill] sm:$0xff] %v4770_v33  ;;  %v4775_v17 = vld [vmem:[%s6000_s11 + $0x340] sm:$0xff]  ;;  %v4780_v49 = vld [vmem:[%s6000_s11 + $0x348] sm:$0xff] }
  0x5a   :  { %6200 = vst [vmem:[#allocation178_spill] sm:$0xff] %v4775_v17  ;;  %6201 = vst [vmem:[#allocation179_spill] sm:$0xff] %v4780_v49  ;;  %v4785_v2 = vld [vmem:[%s6000_s11 + $0x350] sm:$0xff]  ;;  %v4790_v1 = vld [vmem:[%s6000_s11 + $0x358] sm:$0xff] }
  0x5b   :  { %6202 = vst [vmem:[#allocation180_spill] sm:$0xff] %v4785_v2  ;;  %6203 = vst [vmem:[#allocation181_spill] sm:$0xff] %v4790_v1  ;;  %v4795_v33 = vld [vmem:[%s6000_s11 + $0x360] sm:$0xff]  ;;  %v4800_v17 = vld [vmem:[%s6000_s11 + $0x368] sm:$0xff] }
  0x5c   :  { %6204 = vst [vmem:[#allocation182_spill] sm:$0xff] %v4795_v33  ;;  %6205 = vst [vmem:[#allocation183_spill] sm:$0xff] %v4800_v17  ;;  %v4805_v49 = vld [vmem:[%s6000_s11 + $0x370] sm:$0xff]  ;;  %v4810_v2 = vld [vmem:[%s6000_s11 + $0x378] sm:$0xff] }
  0x5d   :  { %6206 = vst [vmem:[#allocation184_spill] sm:$0xff] %v4805_v49  ;;  %6207 = vst [vmem:[#allocation185_spill] sm:$0xff] %v4810_v2  ;;  %v4815_v1 = vld [vmem:[%s6000_s11 + $0x380] sm:$0xff]  ;;  %v4820_v33 = vld [vmem:[%s6000_s11 + $0x388] sm:$0xff] }
  0x5e   :  { %6208 = vst [vmem:[#allocation186_spill] sm:$0xff] %v4815_v1  ;;  %6209 = vst [vmem:[#allocation187_spill] sm:$0xff] %v4820_v33  ;;  %v4825_v17 = vld [vmem:[%s6000_s11 + $0x390] sm:$0xff]  ;;  %v4830_v49 = vld [vmem:[%s6000_s11 + $0x398] sm:$0xff] }
  0x5f   :  { %6210 = vst [vmem:[#allocation188_spill] sm:$0xff] %v4825_v17  ;;  %6211 = vst [vmem:[#allocation189_spill] sm:$0xff] %v4830_v49  ;;  %v4835_v2 = vld [vmem:[%s6000_s11 + $0x3a0] sm:$0xff]  ;;  %v4840_v1 = vld [vmem:[%s6000_s11 + $0x3a8] sm:$0xff] }
  0x60   :  { %6212 = vst [vmem:[#allocation190_spill] sm:$0xff] %v4835_v2  ;;  %6213 = vst [vmem:[#allocation191_spill] sm:$0xff] %v4840_v1  ;;  %v4845_v33 = vld [vmem:[%s6000_s11 + $0x3b0] sm:$0xff]  ;;  %v4850_v17 = vld [vmem:[%s6000_s11 + $0x3b8] sm:$0xff] }
  0x61   :  { %6214 = vst [vmem:[#allocation192_spill] sm:$0xff] %v4845_v33  ;;  %6215 = vst [vmem:[#allocation193_spill] sm:$0xff] %v4850_v17  ;;  %v4855_v49 = vld [vmem:[%s6000_s11 + $0x3c0] sm:$0xff]  ;;  %v4860_v2 = vld [vmem:[%s6000_s11 + $0x3c8] sm:$0xff] }
  0x62   :  { %6216 = vst [vmem:[#allocation194_spill] sm:$0xff] %v4855_v49  ;;  %6217 = vst [vmem:[#allocation195_spill] sm:$0xff] %v4860_v2  ;;  %v4865_v1 = vld [vmem:[%s6000_s11 + $0x3d0] sm:$0xff]  ;;  %v4870_v33 = vld [vmem:[%s6000_s11 + $0x3d8] sm:$0xff] }
  0x63   :  { %6218 = vst [vmem:[#allocation196_spill] sm:$0xff] %v4865_v1  ;;  %6219 = vst [vmem:[#allocation197_spill] sm:$0xff] %v4870_v33  ;;  %v4875_v17 = vld [vmem:[%s6000_s11 + $0x3e0] sm:$0xff]  ;;  %v4880_v49 = vld [vmem:[%s6000_s11 + $0x3e8] sm:$0xff] }
  0x64   :  { %6220 = vst [vmem:[#allocation198_spill] sm:$0xff] %v4875_v17  ;;  %6221 = vst [vmem:[#allocation199_spill] sm:$0xff] %v4880_v49  ;;  %v4885_v2 = vld [vmem:[%s6000_s11 + $0x3f0] sm:$0xff]  ;;  %v4890_v1 = vld [vmem:[%s6000_s11 + $0x3f8] sm:$0xff] }
  0x65   :  { %6222 = vst [vmem:[#allocation200_spill] sm:$0xff] %v4885_v2  ;;  %6223 = vst [vmem:[#allocation201_spill] sm:$0xff] %v4890_v1 }
  0x66   :  { %521 = vsyncadd [#allocation4 + $0x1], 16384  ;;  %v541_v17 = vld [vmem:[%s5991_s2 + $0x18] sm:$0x7]  ;;  %vm591_vm0 = vcmask 1042432   ;;  %v6010_v33 = vmov 6  }
  0x67   :  { %3651 = vset.pattern.permute.xlu1 %v6010_v33  ;;  %3562 = vmatprep.subr.msk.mxu0 %vm591_vm0, %v541_v17  ;;  %v4900_v2 = vld [vmem:[%s5993_s4] sm:$0xff]  ;;  %v540_v1 = vld [vmem:[%s5991_s2 + $0x10] sm:$0xff]  ;;  %vm542_vm1 = vcmask 220160   ;;  %v539_v33 = vld [vmem:[%s5991_s2 + $0x8] sm:$0xff]  ;;  %v6018_v18 = vmov 5   ;;  %v6020_v19 = vmov 3  }
  0x68   :  { %1002 = vperm.xlu1 %3651, %v4900_v2   ;;  %3563 = vmatpush3.msk.msra.mxu0 %vm591_vm0, %v541_v17  ;;  %v522_v49 = vld [vmem:[%s5989_s0] sm:$0xff]  ;;  %v6012_v17 = vmov 2   ;;  %v523_v50 = vld [vmem:[%s5989_s0 + $0x8] sm:$0xff]  ;;  %v532_v35 = vld [vmem:[%s5989_s0 + $0x50] sm:$0xff]  ;;  %vm912_vm6 = vcmask 1040384   ;;  %vm841_vm10 = vcmask 1043456  }
  0x69   :  { %3564 = vmatprep.subr.mxu0 %v540_v1  ;;  %3570 = vmatprep.mubr.msk.f32.mxu0 %vm542_vm1, %v522_v49  ;;  %v538_v34 = vld [vmem:[%s5991_s2] sm:$0xff]  ;;  %v6016_v49 = vmov 1   ;;  %v536_v51 = vld [vmem:[%s5989_s0 + $0x70] sm:$0xff]  ;;  %v1197_v4 = vld [vmem:[%s5992_s3 + $0x68] sm:$0xff]  ;;  %vm1157_vm12 = vcmask 261120   ;;  %s3819_s23 = smov 96  }
  0x6a   :  { %3565 = vmatpush3.msra.mxu0 %v540_v1  ;;  %3649 = vset.pattern.permute.xlu0 %v6018_v18  ;;  %v524_v1 = vld [vmem:[%s5989_s0 + $0x10] sm:$0xff]  ;;  %v530_v3 = vld [vmem:[%s5989_s0 + $0x40] sm:$0xff]  ;;  %v1211_v36 = vld [vmem:[%s5992_s3 + $0xd8] sm:$0xff]  ;;  %s3820_s14 = smov 32  }
  0x6b   :  { %3566 = vmatprep.subr.mxu0 %v539_v33  ;;  %968 = vperm.xlu0 %3649, %v4900_v2   ;;  %v1194_v43 = vld [vmem:[%s5992_s3 + $0x50] sm:$0xff]  ;;  %v1209_v27 = vld [vmem:[%s5992_s3 + $0xc8] sm:$0xff] }
  0x6c   :  { %3652 = vset.pattern.permute.xlu1 %v6012_v17  ;;  %3567 = vmatpush3.msra.mxu0 %v539_v33  ;;  %v525_v33 = vld [vmem:[%s5989_s0 + $0x18] sm:$0xff]  ;;  %v6014_v17 = vmov 7  }
  0x6d   :  { %889 = vperm.xlu1 %3652, %v4900_v2   ;;  %3568 = vmatprep.subr.mxu0 %v538_v34 }
  0x6e   :  { %3569 = vmatpush3.msra.mxu0 %v538_v34  ;;  %v526_v34 = vld [vmem:[%s5989_s0 + $0x20] sm:$0xff] }
  0x6f   :  { %3571 = vmatmul.mubr.msk.f32.vlgmr.msra.gmra.mxu0 %vm542_vm1, %v523_v50  ;;  %3650 = vset.pattern.permute.xlu0 %v6016_v49  ;;  %v4944_v50 = vld [vmem:[%s5993_s4 + $0x8] sm:$0xff]  ;;  %v528_v49 = vld [vmem:[%s5989_s0 + $0x30] sm:$0xff] }
  0x70   :  { %3573 = vmatprep.mubr.msk.f32.mxu0 %vm542_vm1, %v524_v1  ;;  %857 = vperm.xlu0 %3650, %v4900_v2   ;;  %v527_v1 = vld [vmem:[%s5989_s0 + $0x28] sm:$0xff] }
  0x71   :  { %3653 = vset.pattern.permute.xlu1 %v6014_v17  ;;  %v6224_v17 = vmov 6  }
  0x72   :  { %1022 = vperm.xlu1 %3653, %v4900_v2  }
  0x73   :  { %3574 = vmatmul.mubr.msk.f32.gmra.mxu0 %vm542_vm1, %v525_v33  ;;  %v529_v33 = vld [vmem:[%s5989_s0 + $0x38] sm:$0xff] }
  0x74   :  { %3576 = vmatprep.mubr.msk.f32.mxu0 %vm542_vm1, %v526_v34  ;;  %3656 = vset.pattern.permute.xlu0 %v6224_v17  ;;  %v790_v34 = vld [vmem:[%s5993_s4 + $0x10] sm:$0xff]  ;;  %v6226_v17 = vmov 2  }
  0x75   :  { %1006 = vperm.xlu0 %3656, %v4944_v50  }
  0x76   :  { %3654 = vset.pattern.permute.xlu1 %v6018_v18  ;;  %v4970_v18 = vld [vmem:[%s5993_s4 + $0x18] sm:$0xff] }
  0x77   :  { %972 = vperm.xlu1 %3654, %v4944_v50   ;;  %3577 = vmatmul.mubr.msk.f32.gmra.mxu0 %vm542_vm1, %v527_v1  ;;  %v6225_v1 = vmov 1  }
  0x78   :  { %3579 = vmatprep.mubr.msk.f32.mxu0 %vm542_vm1, %v528_v49  ;;  %v531_v49 = vld [vmem:[%s5989_s0 + $0x48] sm:$0xff] }
  0x79   :  { %1010 = vperm.xlu0 %3656, %v790_v34  }
  0x7b   :  { %3655 = vset.pattern.permute.xlu1 %v6225_v1  ;;  %3580 = vmatmul.mubr.msk.f32.gmra.mxu0 %vm542_vm1, %v529_v33  ;;  %v534_v33 = vld [vmem:[%s5989_s0 + $0x60] sm:$0xff] }
  0x7c   :  { %861 = vperm.xlu1 %3655, %v4944_v50   ;;  %3582 = vmatprep.mubr.msk.f32.mxu0 %vm542_vm1, %v530_v3  ;;  %v533_v3 = vld [vmem:[%s5989_s0 + $0x58] sm:$0xff] }
  0x7d   :  { %1014 = vperm.xlu0 %3656, %v4970_v18  }
  0x7f   :  { %3583 = vmatmul.mubr.msk.f32.gmra.mxu0 %vm542_vm1, %v531_v49  ;;  %v6227_v49 = vmov 7  }
  0x80   :  { %3657 = vset.pattern.permute.xlu1 %v6226_v17  ;;  %3585 = vmatprep.mubr.msk.f32.mxu0 %vm542_vm1, %v532_v35  ;;  %v535_v35 = vld [vmem:[%s5989_s0 + $0x68] sm:$0xff] }
  0x81   :  { %893 = vperm.xlu1 %3657, %v4944_v50   ;;  %3665 = vset.pattern.permute.xlu0 %v6020_v19  ;;  %v6022_v19 = vmov 0  }
  0x82   :  { %928 = vperm.xlu0 %3665, %v4900_v2  }
  0x83   :  { %3586 = vmatmul.mubr.msk.f32.gmra.mxu0 %vm542_vm1, %v533_v3  ;;  %v537_v3 = vld [vmem:[%s5989_s0 + $0x78] sm:$0xff] }
  0x84   :  { %3588 = vmatprep.mubr.msk.f32.mxu0 %vm542_vm1, %v534_v33  ;;  %v6228_v33 = vmov 5  }
  0x85   :  { %3658 = vset.pattern.permute.xlu1 %v6227_v49 }
  0x86   :  { %1026 = vperm.xlu1 %3658, %v4944_v50   ;;  %932 = vperm.xlu0 %3665, %v4944_v50  }
  0x87   :  { %3589 = vmatmul.mubr.msk.f32.gmra.mxu0 %vm542_vm1, %v535_v35  ;;  %v6026_v35 = vmov 8  }
  0x88   :  { %3591 = vmatprep.mubr.msk.f32.mxu0 %vm542_vm1, %v536_v51  ;;  %v6024_v51 = vmov 4  }
  0x8a   :  { %3659 = vset.pattern.permute.xlu1 %v6228_v33  ;;  %936 = vperm.xlu0 %3665, %v790_v34  }
  0x8b   :  { %976 = vperm.xlu1 %3659, %v790_v34   ;;  %3592 = vmatmul.mubr.msk.f32.gmra.mxu0 %vm542_vm1, %v537_v3  ;;  %v1219_v3 = vld [vmem:[%s5992_s3 + $0x118] sm:$0xff] }
  0x8c   :  { %3594 = vmatprep.subr.mxu0 %v1219_v3 }
  0x8d   :  { %3595 = vmatpush3.msra.mxu0 %v1219_v3 }
  0x8e   :  { %940 = vperm.xlu0 %3665, %v4970_v18  }
  0x8f   :  { %3660 = vset.pattern.permute.xlu1 %v6225_v1 }
  0x90   :  { %865 = vperm.xlu1 %3660, %v790_v34  }
  0x92   :  { %3670 = vset.pattern.permute.xlu0 %v6022_v19 }
  0x93   :  { %825 = vperm.xlu0 %3670, %v790_v34  }
  0x94   :  { %3661 = vset.pattern.permute.xlu1 %v6226_v17 }
  0x95   :  { %897 = vperm.xlu1 %3661, %v790_v34  }
  0x97   :  { %3671 = vset.pattern.permute.xlu0 %v6024_v51 }
  0x98   :  { %952 = vperm.xlu0 %3671, %v4944_v50  }
  0x99   :  { %3662 = vset.pattern.permute.xlu1 %v6227_v49 }
  0x9a   :  { %1030 = vperm.xlu1 %3662, %v790_v34  }
  0x9c   :  { %956 = vperm.xlu0 %3671, %v790_v34  }
  0x9e   :  { %3663 = vset.pattern.permute.xlu1 %v6228_v33 }
  0x9f   :  { %980 = vperm.xlu1 %3663, %v4970_v18  }
  0xa0   :  { %960 = vperm.xlu0 %3671, %v4970_v18  }
  0xa3   :  { %3664 = vset.pattern.permute.xlu1 %v6225_v1 }
  0xa4   :  { %869 = vperm.xlu1 %3664, %v4970_v18   ;;  %3672 = vset.pattern.permute.xlu0 %v6026_v35 }
  0xa5   :  { %1042 = vperm.xlu0 %3672, %v4900_v2  }
  0xa8   :  { %3666 = vset.pattern.permute.xlu1 %v6226_v17 }
  0xa9   :  { %901 = vperm.xlu1 %3666, %v4970_v18   ;;  %1050 = vperm.xlu0 %3672, %v790_v34   ;;  %v1218_v34 = vld [vmem:[%s5992_s3 + $0x110] sm:$0xff] }
  0xaa   :  { %3596 = vmatprep.subr.mxu0 %v1218_v34 }
  0xab   :  { %3597 = vmatpush3.msra.mxu0 %v1218_v34  ;;  %v1215_v34 = vld [vmem:[%s5992_s3 + $0xf8] sm:$0xff] }
  0xac   :  { %3408 = vmatprep.subr.mxu1 %v1215_v34  ;;  %v1212_v34 = vld [vmem:[%s5992_s3 + $0xe0] sm:$0xff] }
  0xad   :  { %3667 = vset.pattern.permute.xlu1 %v6227_v49 }
  0xae   :  { %1034 = vperm.xlu1 %3667, %v4970_v18  }
  0xb2   :  { %3668 = vset.pattern.permute.xlu1 %v6024_v51  ;;  %v1214_v51 = vld [vmem:[%s5992_s3 + $0xf0] sm:$0xff] }
  0xb3   :  { %948 = vperm.xlu1 %3668, %v4900_v2  }
  0xb7   :  { %3669 = vset.pattern.permute.xlu1 %v6022_v19  ;;  %v1216_v19 = vld [vmem:[%s5992_s3 + $0x100] sm:$0xff] }
  0xb8   :  { %815 = vperm.xlu1 %3669, %v4900_v2   ;;  %v1217_v2 = vld [vmem:[%s5992_s3 + $0x108] sm:$0xff] }
  0xb9   :  { %3598 = vmatprep.subr.mxu0 %v1217_v2 }
  0xba   :  { %3599 = vmatpush3.msra.mxu0 %v1217_v2  ;;  %v1199_v2 = vld [vmem:[%s5992_s3 + $0x78] sm:$0xff] }
  0xbb   :  { %3600 = vmatprep.subr.mxu0 %v1216_v19  ;;  %3409 = vmatpush3.msra.mxu1 %v1199_v2  ;;  %v1196_v2 = vld [vmem:[%s5992_s3 + $0x60] sm:$0xff] }
  0xbc   :  { %820 = vperm.xlu1 %3669, %v4944_v50   ;;  %3601 = vmatpush3.msra.mxu0 %v1216_v19  ;;  %v1213_v19 = vld [vmem:[%s5992_s3 + $0xe8] sm:$0xff] }
  0xbd   :  { %3410 = vmatprep.subr.mxu1 %v1214_v51  ;;  %v1195_v51 = vld [vmem:[%s5992_s3 + $0x58] sm:$0xff] }
  0xc0   :  { %830 = vperm.xlu1 %3669, %v4970_v18  }
  0xc4   :  { %3673 = vset.pattern.permute.xlu1 %v6026_v35 }
  0xc5   :  { %1046 = vperm.xlu1 %3673, %v4944_v50   ;;  %v1198_v50 = vld [vmem:[%s5992_s3 + $0x70] sm:$0xff] }
  0xc6   :  { %3411 = vmatpush3.msra.mxu1 %v1198_v50 }
  0xc7   :  { %3412 = vmatprep.subr.mxu1 %v1213_v19  ;;  %v1210_v19 = vld [vmem:[%s5992_s3 + $0xd0] sm:$0xff] }
  0xc8   :  { %3413 = vmatpush3.msra.mxu1 %v1197_v4 }
  0xc9   :  { %3414 = vmatprep.subr.mxu1 %v1212_v34 }
  0xca   :  { %3415 = vmatpush3.msra.mxu1 %v1196_v2 }
  0xcb   :  { %3416 = vmatprep.subr.mxu1 %v1211_v36 }
  0xcc   :  { %3417 = vmatpush3.msra.mxu1 %v1195_v51 }
  0xcd   :  { %3418 = vmatprep.subr.mxu1 %v1210_v19 }
  0xce   :  { %3419 = vmatpush3.msra.mxu1 %v1194_v43  ;;  %v1192_v43 = vld [vmem:[%s5992_s3 + $0x40] sm:$0xff] }
  0xcf   :  { %3420 = vmatprep.subr.mxu1 %v1209_v27  ;;  %v1191_v27 = vld [vmem:[%s5992_s3 + $0x38] sm:$0xff] }
  0xe3   :  { %v5051_v3 = vpop.permute.xlu1 %1002 }
  0xe6   :  { %v5092_v20 = vpop.permute.xlu0 %968 }
  0xe8   :  { %v5068_v35 = vpop.permute.xlu1 %889 }
  0xeb   :  { %v5096_v34 = vpop.permute.xlu0 %857 }
  0xed   :  { %v5085_v50 = vpop.permute.xlu1 %1022 }
  0xf0   :  { %v5100_v5 = vpop.permute.xlu0 %1006 }
  0xf2   :  { %v5090_v4 = vpop.permute.xlu1 %972 }
  0xf4   :  { %v5104_v37 = vpop.permute.xlu0 %1010 }
  0xf7   :  { %v5094_v52 = vpop.permute.xlu1 %861 }
  0xf8   :  { %v5108_v36 = vpop.permute.xlu0 %1014 }
  0xfc   :  { %v5098_v17 = vpop.permute.xlu1 %893 }
  0xfd   :  { %v5114_v53 = vpop.permute.xlu0 %928 }
 0x101   :  { %v5102_v2 = vpop.permute.xlu1 %1026  ;;  %v5118_v38 = vpop.permute.xlu0 %932 }
 0x105   :  { %v5122_v54 = vpop.permute.xlu0 %936 }
 0x106   :  { %v5106_v21 = vpop.permute.xlu1 %976 }
 0x109   :  { %v5126_v39 = vpop.permute.xlu0 %940 }
 0x10b   :  { %v5110_v51 = vpop.permute.xlu1 %865 }
 0x10e   :  { %v5130_v55 = vpop.permute.xlu0 %825 }
 0x110   :  { %v5112_v19 = vpop.permute.xlu1 %897 }
 0x113   :  { %v953_v24 = vpop.permute.xlu0 %952 }
 0x115   :  { %v5116_v6 = vpop.permute.xlu1 %1030 }
 0x117   :  { %v5134_v10 = vpop.permute.xlu0 %956 }
 0x11a   :  { %v5120_v22 = vpop.permute.xlu1 %980 }
 0x11f   :  { %v5124_v7 = vpop.permute.xlu1 %869 }
 0x124   :  { %v5128_v23 = vpop.permute.xlu1 %901 }
 0x129   :  { %v5132_v8 = vpop.permute.xlu1 %1034 }
 0x12e   :  { %v949_v40 = vpop.permute.xlu1 %948 }
 0x12f   :  { %v3572_v56 = vpop.f32.mrf.mxu0 }
 0x130   :  { %vm741_vm2 = vcmp.gt.f32.partialorder %v3572_v56, 0.0  ;;  %v757_v9 = vmul.f32 0.2, %v3572_v56 }
 0x131   :  { %v661_v41 = vpop.f32.mrf.mxu0 }
 0x132   :  { %vm740_vm3 = vcmp.gt.f32.partialorder %v661_v41, 0.0  ;;  %v756_v25 = vmul.f32 0.2, %v661_v41  ;;  %v773_v57 = vsel %vm741_vm2, %v3572_v56, %v757_v9  ;;  %v1193_v9 = vld [vmem:[%s5992_s3 + $0x48] sm:$0xff] }
 0x133   :  { %v5136_v42 = vmul.f32 %v953_v24, %v773_v57  ;;  %v3575_v1 = vpop.f32.mrf.mxu0  ;;  %v5138_v26 = vpop.permute.xlu1 %815  ;;  %3421 = vmatpush3.msra.mxu1 %v1193_v9  ;;  %v913_v28 = vrot.slane %v773_v57, 7  ;;  %v1189_v57 = vld [vmem:[%s5992_s3 + $0x28] sm:$0xff] }
 0x134   :  { %v772_v58 = vsel %vm740_vm3, %v661_v41, %v756_v25  ;;  %vm743_vm4 = vcmp.gt.f32.partialorder %v3575_v1, 0.0  ;;  %v759_v11 = vmul.f32 0.2, %v3575_v1  ;;  %v1208_v25 = vld [vmem:[%s5992_s3 + $0xc0] sm:$0xff]  ;;  %v961_v9 = vpop.permute.xlu0 %960 }
 0x135   :  { %v5149_v24 = vmul.f32 %v949_v40, %v772_v58  ;;  %v671_v56 = vpop.f32.mrf.mxu0  ;;  %3422 = vmatprep.subr.mxu1 %v1208_v25 }
 0x136   :  { %v5154_v41 = vsel %vm743_vm4, %v3575_v1, %v759_v11  ;;  %vm742_vm5 = vcmp.gt.f32.partialorder %v671_v56, 0.0  ;;  %v758_v59 = vmul.f32 0.2, %v671_v56  ;;  %v1207_v11 = vld [vmem:[%s5992_s3 + $0xb8] sm:$0xff]  ;;  %3423 = vmatpush3.msra.mxu1 %v1192_v43  ;;  %vm798_vm4 = vcmask 1044480  }
 0x137   :  { %v3578_v33 = vpop.f32.mrf.mxu0  ;;  %v5156_v49 = vpop.permute.xlu1 %820  ;;  %v916_v58 = vrot.slane %v5154_v41, 7  ;;  %3424 = vmatprep.subr.mxu1 %v1207_v11 }
 0x138   :  { %v5158_v12 = vsel %vm742_vm5, %v671_v56, %v758_v59  ;;  %vm745_vm7 = vcmp.gt.f32.partialorder %v3578_v33, 0.0  ;;  %v761_v40 = vmul.f32 0.2, %v3578_v33  ;;  %v1206_v56 = vld [vmem:[%s5992_s3 + $0xb0] sm:$0xff]  ;;  %3425 = vmatpush3.msra.mxu1 %v1191_v27  ;;  %v842_v27 = vrot.slane %v5154_v41, 4  ;;  %v1043_v46 = vpop.permute.xlu0 %1042 }
 0x139   :  { %v914_v59 = vrot.slane %v5158_v12, 7  ;;  %v681_v1 = vpop.f32.mrf.mxu0  ;;  %3426 = vmatprep.subr.mxu1 %v1206_v56 }
 0x13a   :  { %v5174_v25 = vsel %vm745_vm7, %v3578_v33, %v761_v40  ;;  %vm744_vm8 = vcmp.gt.f32.partialorder %v681_v1, 0.0  ;;  %v760_v44 = vmul.f32 0.2, %v681_v1  ;;  %v1190_v33 = vld [vmem:[%s5992_s3 + $0x30] sm:$0xff]  ;;  %v1205_v40 = vld [vmem:[%s5992_s3 + $0xa8] sm:$0xff] }
 0x13b   :  { %v3581_v60 = vpop.f32.mrf.mxu0  ;;  %v5176_v13 = vpop.permute.xlu1 %830  ;;  %v917_v45 = vsel %vm912_vm6, %v914_v59, %v916_v58  ;;  %3427 = vmatpush3.msra.mxu1 %v1190_v33 }
 0x13c   :  { %v776_v29 = vsel %vm744_vm8, %v681_v1, %v760_v44  ;;  %v763_v61 = vmul.f32 0.2, %v3581_v60  ;;  %v944_v43 = vmul.f32 %v5118_v38, %v917_v45  ;;  %vm747_vm9 = vcmp.gt.f32.partialorder %v3581_v60, 0.0  ;;  %v1204_v45 = vld [vmem:[%s5992_s3 + $0xa0] sm:$0xff]  ;;  %3428 = vmatprep.subr.mxu1 %v1205_v40 }
 0x13d   :  { %v691_v11 = vpop.f32.mrf.mxu0  ;;  %v1038_v44 = vmul.f32 %v5102_v2, %v5174_v25  ;;  %v915_v38 = vsel %vm912_vm6, %v913_v28, %v914_v59  ;;  %v843_v1 = vrot.slane %v776_v29, 4  ;;  %v1037_v56 = vmul.f32 %v5085_v50, %v776_v29  ;;  %3429 = vmatpush3.msra.mxu1 %v1189_v57  ;;  %v1188_v40 = vld [vmem:[%s5992_s3 + $0x20] sm:$0xff]  ;;  %v1203_v29 = vld [vmem:[%s5992_s3 + $0x98] sm:$0xff] }
 0x13e   :  { %vm746_vm11 = vcmp.gt.f32.partialorder %v691_v11, 0.0  ;;  %v762_v58 = vmul.f32 0.2, %v691_v11  ;;  %v943_v28 = vmul.f32 %v5114_v53, %v915_v38  ;;  %v5199_v59 = vsel %vm747_vm9, %v3581_v60, %v763_v61  ;;  %3430 = vmatprep.subr.mxu1 %v1204_v45  ;;  %v1187_v53 = vld [vmem:[%s5992_s3 + $0x18] sm:$0xff] }
 0x13f   :  { %v3584_v14 = vpop.f32.mrf.mxu0  ;;  %v3674_v2 = vpack.i.bf16 %v944_v43, %v1038_v44  ;;  %v5214_v60 = vmul.f32 %v5090_v4, %v5154_v41  ;;  %v845_v61 = vrot.slane %v5174_v25, 4  ;;  %3431 = vmatpush3.msra.mxu1 %v1188_v40  ;;  %v983_v40 = vmul.f32 %v5092_v20, %v5158_v12 }
 0x140   :  { %v5201_v33 = vsel %vm746_vm11, %v691_v11, %v762_v58  ;;  %vm749_vm13 = vcmp.gt.f32.partialorder %v3584_v14, 0.0  ;;  %v765_v30 = vmul.f32 0.2, %v3584_v14  ;;  %v1047_v62 = vpop.permute.xlu1 %1046  ;;  %v1202_v11 = vld [vmem:[%s5992_s3 + $0x90] sm:$0xff]  ;;  %3432 = vmatprep.subr.mxu1 %v1203_v29  ;;  %v3679_v45 = vpack.i.bf16 %v943_v28, %v1037_v56 }
 0x141   :  { %v876_v50 = vrot.slane %v5201_v33, 4  ;;  %v1058_v43 = vmul.f32 %v1047_v62, %v5199_v59  ;;  %3675 = vrot.lane.b32.xlu1 %v3674_v2, %s3819_s23  ;;  %v701_v57 = vpop.f32.mrf.mxu0  ;;  %v1057_v4 = vmul.f32 %v1043_v46, %v5201_v33  ;;  %v844_v58 = vsel %vm841_vm10, %v842_v27, %v843_v1  ;;  %3433 = vmatpush3.msra.mxu1 %v1187_v53  ;;  %v1201_v27 = vld [vmem:[%s5992_s3 + $0x88] sm:$0xff] }
 0x142   :  { %v5224_v44 = vsel %vm749_vm13, %v3584_v14, %v765_v30  ;;  %vm748_vm14 = vcmp.gt.f32.partialorder %v701_v57, 0.0  ;;  %v764_v41 = vmul.f32 0.2, %v701_v57  ;;  %v846_v2 = vsel %vm841_vm10, %v843_v1, %v845_v61  ;;  %3434 = vmatprep.subr.mxu1 %v1202_v11 }
 0x143   :  { %v5228_v38 = vmul.f32 %v961_v9, %v5224_v44  ;;  %v3587_v62 = vpop.f32.mrf.mxu0  ;;  %3602 = vmatprep.mubr.msk.f32.mxu0 %vm1157_vm12, %v1057_v4  ;;  %v872_v46 = vmul.f32 %v5096_v34, %v844_v58  ;;  %v1186_v9 = vld [vmem:[%s5992_s3 + $0x10] sm:$0xff]  ;;  %v988_v1 = vrot.slane %v5201_v33, 7  ;;  %v873_v20 = vmul.f32 %v5094_v52, %v846_v2  ;;  %v1185_v34 = vld [vmem:[%s5992_s3 + $0x8] sm:$0xff] }
 0x144   :  { %v780_v14 = vsel %vm748_vm14, %v701_v57, %v764_v41  ;;  %v767_v30 = vmul.f32 0.2, %v3587_v62  ;;  %vm751_vm15 = vcmp.gt.f32.partialorder %v3587_v62, 0.0  ;;  %3603 = vmatmul.mubr.msk.f32.vlgmr.msra.gmra.mxu0 %vm1157_vm12, %v1058_v43  ;;  %v877_v29 = vsel %vm841_vm10, %v845_v61, %v876_v50  ;;  %3435 = vmatpush3.msra.mxu1 %v1186_v9 }
 0x145   :  { %v5244_v56 = vmul.f32 %v5134_v10, %v780_v14  ;;  %3680 = vrot.lane.b32.xlu1 %v3679_v45, %s3819_s23  ;;  %v711_v12 = vpop.f32.mrf.mxu0  ;;  %v1200_v10 = vld [vmem:[%s5992_s3 + $0x80] sm:$0xff]  ;;  %v987_v53 = vrot.slane %v5174_v25, 7  ;;  %v3684_v43 = vpack.i.bf16 %v872_v46, %v983_v40  ;;  %v3689_v11 = vpack.i.bf16 %v873_v20, %v5214_v60  ;;  %3436 = vmatprep.subr.mxu1 %v1201_v27 }
 0x146   :  { %vm750_vm1 = vcmp.gt.f32.partialorder %v711_v12, 0.0  ;;  %v766_v28 = vmul.f32 0.2, %v711_v12  ;;  %v878_v52 = vrot.slane %v5199_v59, 4  ;;  %v5260_v4 = vsel %vm751_vm15, %v3587_v62, %v767_v30  ;;  %3437 = vmatpush3.msra.mxu1 %v1185_v34  ;;  %v1184_v45 = vld [vmem:[%s5992_s3] sm:$0xff]  ;;  %s3821_s3 = smov 64  }
 0x147   :  { %v3590_v57 = vpop.f32.mrf.mxu0  ;;  %v904_v2 = vmul.f32 %v5068_v35, %v877_v29  ;;  %v989_v62 = vsel %vm912_vm6, %v987_v53, %v988_v1  ;;  %3438 = vmatprep.subr.mxu1 %v1200_v10  ;;  %v990_v46 = vrot.slane %v5199_v59, 7  ;;  %v918_v9 = vrot.slane %v5224_v44, 7 }
 0x148   :  { %v5262_v41 = vsel %vm750_vm1, %v711_v12, %v766_v28  ;;  %v769_v61 = vmul.f32 0.2, %v3590_v57  ;;  %vm753_vm2 = vcmp.gt.f32.partialorder %v3590_v57, 0.0  ;;  %v1017_v14 = vmul.f32 %v5051_v3, %v989_v62  ;;  %3439 = vmatpush3.msra.mxu1 %v1184_v45 }
 0x149   :  { %v919_v58 = vrot.slane %v5262_v41, 7  ;;  %3685 = vrot.lane.b32.xlu1 %v3684_v43, %s3820_s14  ;;  %v721_v60 = vpop.f32.mrf.mxu0  ;;  %v879_v30 = vsel %vm841_vm10, %v876_v50, %v878_v52  ;;  %v847_v27 = vrot.slane %v5260_v4, 4  ;;  %v991_v10 = vsel %vm912_vm6, %v988_v1, %v990_v46  ;;  %v1051_v43 = vpop.permute.xlu0 %1050 }
 0x14a   :  { %vm752_vm3 = vcmp.gt.f32.partialorder %v721_v60, 0.0  ;;  %v768_v40 = vmul.f32 0.2, %v721_v60  ;;  %v5277_v35 = vsel %vm753_vm2, %v3590_v57, %v769_v61  ;;  %v3694_v50 = vpack.i.bf16 %v904_v2, %v1017_v14 }
 0x14b   :  { %v3593_v12 = vpop.f32.mrf.mxu0  ;;  %v905_v29 = vmul.f32 %v5098_v17, %v879_v30  ;;  %v920_v57 = vsel %vm912_vm6, %v918_v9, %v919_v58  ;;  %v800_v17 = vrot.slane %v5201_v33, 3  ;;  %v985_v1 = vmul.f32 %v5106_v21, %v5262_v41 }
 0x14c   :  { %v784_v20 = vsel %vm752_vm3, %v721_v60, %v768_v40  ;;  %vm755_vm5 = vcmp.gt.f32.partialorder %v3593_v12, 0.0  ;;  %v771_v34 = vmul.f32 0.2, %v3593_v12  ;;  %v850_v62 = vrot.slane %v5277_v35, 4 }
 0x14d   :  { %v848_v28 = vrot.slane %v784_v20, 4  ;;  %3690 = vrot.lane.b32.xlu1 %v3689_v11, %s3820_s14  ;;  %v731_v3 = vpop.f32.mrf.mxu0  ;;  %v1018_v11 = vmul.f32 %v5100_v5, %v991_v10  ;;  %v992_v5 = vrot.slane %v5277_v35, 7  ;;  %v1039_v46 = vmul.f32 %v5116_v6, %v784_v20 }
 0x14e   :  { %v5282_v44 = vsel %vm755_vm5, %v3593_v12, %v771_v34  ;;  %vm754_vm7 = vcmp.gt.f32.partialorder %v731_v3, 0.0  ;;  %v770_v53 = vmul.f32 0.2, %v731_v3  ;;  %v945_v33 = vmul.f32 %v5122_v54, %v920_v57 }
 0x14f   :  { %v882_v52 = vrot.slane %v5282_v44, 4  ;;  %v995_v61 = vrot.slane %v5282_v44, 7  ;;  %v849_v45 = vsel %vm841_vm10, %v847_v27, %v848_v28  ;;  %v799_v21 = vrot.slane %v5174_v25, 3 }
 0x150   :  { %v786_v60 = vsel %vm754_vm7, %v731_v3, %v770_v53  ;;  %v874_v2 = vmul.f32 %v5110_v51, %v849_v45  ;;  %v3699_v27 = vpack.i.bf16 %v905_v29, %v1018_v11  ;;  %v807_v34 = vrot.slane %v5282_v44, 3 }
 0x151   :  { %v880_v40 = vrot.slane %v786_v60, 4  ;;  %v993_v14 = vrot.slane %v786_v60, 7  ;;  %3695 = vrot.lane.b32.xlu1 %v3694_v50, %s3821_s3  ;;  %v1059_v30 = vmul.f32 %v1051_v43, %v786_v60  ;;  %v805_v3 = vrot.slane %v786_v60, 3 }
 0x152   :  { %v3709_v9 = vpack.i.bf16 %v874_v2, %v985_v1  ;;  %v802_v54 = vrot.slane %v5199_v59, 3  ;;  %v804_v25 = vrot.slane %v5277_v35, 3  ;;  %v3704_v20 = vpack.i.bf16 %v945_v33, %v1039_v46 }
 0x153   :  { %3605 = vmatprep.mubr.msk.f32.mxu0 %vm1157_vm12, %v1059_v30  ;;  %v883_v51 = vsel %vm841_vm10, %v880_v40, %v882_v52  ;;  %v996_v12 = vsel %vm912_vm6, %v993_v14, %v995_v61  ;;  %v881_v50 = vsel %vm841_vm10, %v850_v62, %v880_v40  ;;  %v994_v6 = vsel %vm912_vm6, %v992_v5, %v993_v14 }
 0x154   :  { %3710 = vrot.lane.b32.xlu0 %v3709_v9, %s3820_s14  ;;  %v907_v29 = vmul.f32 %v5128_v23, %v883_v51  ;;  %v1020_v10 = vmul.f32 %v5108_v36, %v996_v12  ;;  %v801_v53 = vsel %vm798_vm4, %v799_v21, %v800_v17  ;;  %v906_v43 = vmul.f32 %v5112_v19, %v881_v50 }
 0x155   :  { %3700 = vrot.lane.b32.xlu1 %v3699_v27, %s3821_s3  ;;  %v1019_v57 = vmul.f32 %v5104_v37, %v994_v6  ;;  %v833_v52 = vmul.f32 %v5138_v26, %v801_v53  ;;  %v803_v61 = vsel %vm798_vm4, %v800_v17, %v802_v54  ;;  %v851_v59 = vsel %vm841_vm10, %v848_v28, %v850_v62 }
 0x156   :  { %v834_v11 = vmul.f32 %v5156_v49, %v803_v61  ;;  %v806_v23 = vsel %vm798_vm4, %v804_v25, %v805_v3  ;;  %v808_v36 = vsel %vm798_vm4, %v805_v3, %v807_v34  ;;  %v921_v37 = vrot.slane %v5260_v4, 7 }
 0x157   :  { %v5325_v19 = vmul.f32 %v5176_v13, %v808_v36  ;;  %v3724_v26 = vpack.i.bf16 %v907_v29, %v1020_v10  ;;  %v3714_v45 = vpack.i.bf16 %v906_v43, %v1019_v57  ;;  %v875_v17 = vmul.f32 %v5124_v7, %v851_v59 }
 0x158   :  { %1054 = vperm.xlu0 %3672, %v4970_v18   ;;  %v922_v18 = vsel %vm912_vm6, %v919_v58, %v921_v37  ;;  %v986_v49 = vmul.f32 %v5120_v22, %v5260_v4  ;;  %v1040_v1 = vmul.f32 %v5132_v8, %v5277_v35  ;;  %vm1162_vm8 = vcmask 523264  }
 0x159   :  { %3705 = vrot.lane.b32.xlu1 %v3704_v20, %s3819_s23  ;;  %v946_v13 = vmul.f32 %v5126_v39, %v922_v18  ;;  %vm1167_vm9 = vcmask 785408   ;;  %v835_v61 = vmul.f32 %v5130_v55, %v806_v23 }
 0x15a   :  { %v3719_v28 = vpack.i.bf16 %v875_v17, %v986_v49 }
 0x15b   :  { %v3729_v7 = vpack.i.bf16 %v946_v13, %v1040_v1 }
 0x15c   :  { %3725 = vrot.lane.b32.xlu0 %v3724_v26, %s3821_s3 }
 0x15d   :  { %3715 = vrot.lane.b32.xlu1 %v3714_v45, %s3821_s3 }
 0x161   :  { %3720 = vrot.lane.b32.xlu1 %v3719_v28, %s3820_s14 }
 0x165   :  { %3730 = vrot.lane.b32.xlu1 %v3729_v7, %s3819_s23 }
 0x1b3   :  { %v3676_v60 = vpop.permute.xlu1 %3675 }
 0x1b4   :  { %v3678_v3 = vunpack.i.h.bf16 %v3676_v60  ;;  %v3677_v50 = vunpack.i.l.bf16 %v3676_v60 }
 0x1b7   :  { %v3681_v41 = vpop.permute.xlu1 %3680 }
 0x1b8   :  { %v3683_v4 = vunpack.i.h.bf16 %v3681_v41  ;;  %v3682_v14 = vunpack.i.l.bf16 %v3681_v41 }
 0x1bb   :  { %v3686_v2 = vpop.permute.xlu1 %3685 }
 0x1bc   :  { %v3688_v62 = vunpack.i.h.bf16 %v3686_v2  ;;  %v3687_v40 = vunpack.i.l.bf16 %v3686_v2 }
 0x1be   :  { %v1172_v35 = vsel %vm1157_vm12, %v5149_v24, %v3687_v40  ;;  %v1158_v46 = vsel %vm1157_vm12, %v833_v52, %v3688_v62 }
 0x1bf   :  { %v3691_v58 = vpop.permute.xlu1 %3690 }
 0x1c0   :  { %v3693_v5 = vunpack.i.h.bf16 %v3691_v58  ;;  %v3692_v8 = vunpack.i.l.bf16 %v3691_v58 }
 0x1c2   :  { %v1173_v24 = vsel %vm1157_vm12, %v5136_v42, %v3692_v8  ;;  %v1159_v6 = vsel %vm1157_vm12, %v834_v11, %v3693_v5 }
 0x1c3   :  { %v3696_v22 = vpop.permute.xlu1 %3695 }
 0x1c4   :  { %v3698_v39 = vunpack.i.h.bf16 %v3696_v22  ;;  %v3697_v30 = vunpack.i.l.bf16 %v3696_v22 }
 0x1c6   :  { %v1176_v9 = vsel %vm1162_vm8, %v1172_v35, %v3697_v30  ;;  %v1163_v33 = vsel %vm1162_vm8, %v1158_v46, %v3698_v39  ;;  %v3711_v54 = vpop.permute.xlu0 %3710 }
 0x1c7   :  { %v3701_v21 = vpop.permute.xlu1 %3700  ;;  %v1180_v27 = vsel %vm1167_vm9, %v1176_v9, %v3682_v14  ;;  %v1168_v51 = vsel %vm1167_vm9, %v1163_v33, %v3683_v4  ;;  %v3713_v43 = vunpack.i.h.bf16 %v3711_v54  ;;  %v3712_v57 = vunpack.i.l.bf16 %v3711_v54 }
 0x1c8   :  { %v3703_v12 = vunpack.i.h.bf16 %v3701_v21  ;;  %v3702_v34 = vunpack.i.l.bf16 %v3701_v21  ;;  %1296 = vmatprep.mubr.f32.mxu1 %v1180_v27 }
 0x1c9   :  { %1297 = vmatmul.mubr.f32.vlgmr.msra.gmra.mxu1 %v1168_v51  ;;  %v1174_v37 = vsel %vm1157_vm12, %v5244_v56, %v3712_v57  ;;  %v1160_v26 = vsel %vm1157_vm12, %v835_v61, %v3713_v43 }
 0x1ca   :  { %v1177_v25 = vsel %vm1162_vm8, %v1173_v24, %v3702_v34  ;;  %v1164_v20 = vsel %vm1162_vm8, %v1159_v6, %v3703_v12 }
 0x1cb   :  { %v3706_v29 = vpop.permute.xlu1 %3705  ;;  %v1181_v10 = vsel %vm1167_vm9, %v1177_v25, %v3677_v50  ;;  %v1169_v53 = vsel %vm1167_vm9, %v1164_v20, %v3678_v3 }
 0x1cc   :  { %1301 = vmatprep.mubr.f32.mxu1 %v1181_v10  ;;  %v3708_v11 = vunpack.i.h.bf16 %v3706_v29  ;;  %v3707_v36 = vunpack.i.l.bf16 %v3706_v29 }
 0x1cd   :  { %1302 = vmatmul.mubr.f32.gmra.mxu1 %v1169_v53 }
 0x1cf   :  { %v3716_v52 = vpop.permute.xlu1 %3715 }
 0x1d0   :  { %v3718_v42 = vunpack.i.h.bf16 %v3716_v52  ;;  %v3717_v59 = vunpack.i.l.bf16 %v3716_v52 }
 0x1d2   :  { %v1178_v45 = vsel %vm1162_vm8, %v1174_v37, %v3717_v59  ;;  %v1165_v17 = vsel %vm1162_vm8, %v1160_v26, %v3718_v42 }
 0x1d3   :  { %v3721_v18 = vpop.permute.xlu1 %3720  ;;  %v1055_v49 = vpop.permute.xlu0 %1054  ;;  %v1182_v28 = vsel %vm1167_vm9, %v1178_v45, %v3707_v36  ;;  %v1170_v13 = vsel %vm1167_vm9, %v1165_v17, %v3708_v11 }
 0x1d4   :  { %v1060_v55 = vmul.f32 %v1055_v49, %v5282_v44  ;;  %1306 = vmatprep.mubr.f32.mxu1 %v1182_v28  ;;  %v3723_v23 = vunpack.i.h.bf16 %v3721_v18  ;;  %v3722_v1 = vunpack.i.l.bf16 %v3721_v18 }
 0x1d5   :  { %1307 = vmatmul.mubr.f32.gmra.mxu1 %v1170_v13 }
 0x1d6   :  { %3606 = vmatmul.mubr.msk.f32.gmra.mxu0 %vm1157_vm12, %v1060_v55  ;;  %v1175_v62 = vsel %vm1157_vm12, %v5228_v38, %v3722_v1  ;;  %v1161_v40 = vsel %vm1157_vm12, %v5325_v19, %v3723_v23 }
 0x1d7   :  { %v3731_v56 = vpop.permute.xlu1 %3730  ;;  %v3726_v7 = vpop.permute.xlu0 %3725 }
 0x1d8   :  { %v3728_v60 = vunpack.i.h.bf16 %v3726_v7  ;;  %v3727_v41 = vunpack.i.l.bf16 %v3726_v7  ;;  %v3733_v2 = vunpack.i.h.bf16 %v3731_v56  ;;  %v3732_v58 = vunpack.i.l.bf16 %v3731_v56 }
 0x1da   :  { %v1179_v44 = vsel %vm1162_vm8, %v1175_v62, %v3727_v41  ;;  %v1166_v22 = vsel %vm1162_vm8, %v1161_v40, %v3728_v60 }
 0x1db   :  { %v1183_v4 = vsel %vm1167_vm9, %v1179_v44, %v3732_v58  ;;  %v1171_v14 = vsel %vm1167_vm9, %v1166_v22, %v3733_v2 }
 0x1dc   :  { %1311 = vmatprep.mubr.f32.mxu1 %v1183_v4 }
 0x1dd   :  { %1312 = vmatmul.mubr.f32.gmra.mxu1 %v1171_v14 }
 0x204   :  { %v3604_v39 = vpop.f32.mrf.mxu0 }
 0x206   :  { %v1383_v35 = vpop.f32.mrf.mxu0 }
 0x289   :  { %v3440_v30 = vpop.f32.mrf.mxu1 }
 0x28b   :  { %v3441_v5 = vpop.f32.mrf.mxu1 }
 0x28c   :  { %v3442_v8 = vadd.f32 %v3441_v5, %v3440_v30 }
 0x28d   :  { %v3443_v46 = vpop.f32.mrf.mxu1 }
 0x28e   :  { %v1384_v38 = vadd.f32 %v3442_v8, %v1383_v35 }
 0x28f   :  { %v3444_v9 = vpop.f32.mrf.mxu1 }
 0x290   :  { %vm1402_vm11 = vcmp.gt.f32.partialorder %v1384_v38, 0.0  ;;  %v1406_v19 = vmul.f32 0.2, %v1384_v38  ;;  %v3445_v33 = vadd.f32 %v3444_v9, %v3443_v46 }
 0x292   :  { %v5373_v21 = vsel %vm1402_vm11, %v1384_v38, %v1406_v19  ;;  %v1389_v27 = vadd.f32 %v3604_v39, %v3445_v33 }
 0x294   :  { %vm1403_vm12 = vcmp.gt.f32.partialorder %v1389_v27, 0.0  ;;  %v1407_v51 = vmul.f32 0.2, %v1389_v27 }
 0x295   :  { %v3446_v12 = vpop.f32.mrf.mxu1 }
 0x296   :  { %v5375_v34 = vsel %vm1403_vm12, %v1389_v27, %v1407_v51  ;;  %v3607_v3 = vpop.f32.mrf.mxu0 }
 0x297   :  { %v3447_v50 = vpop.f32.mrf.mxu1 }
 0x298   :  { %v3448_v24 = vadd.f32 %v3447_v50, %v3446_v12  ;;  %v1393_v6 = vpop.f32.mrf.mxu0 }
 0x29a   :  { %v1394_v54 = vadd.f32 %v3448_v24, %v1393_v6 }
 0x29c   :  { %vm1404_vm13 = vcmp.gt.f32.partialorder %v1394_v54, 0.0  ;;  %v1408_v25 = vmul.f32 0.2, %v1394_v54 }
 0x29d   :  { %v3449_v20 = vpop.f32.mrf.mxu1 }
 0x29e   :  { %v5377_v29 = vsel %vm1404_vm13, %v1394_v54, %v1408_v25 }
 0x29f   :  { %v3450_v10 = vpop.f32.mrf.mxu1 }
 0x2a0   :  { %v3451_v53 = vadd.f32 %v3450_v10, %v3449_v20 }
 0x2a2   :  { %v1399_v43 = vadd.f32 %v3607_v3, %v3451_v53 }
 0x2a4   :  { %vm1405_vm14 = vcmp.gt.f32.partialorder %v1399_v43, 0.0  ;;  %v1409_v57 = vmul.f32 0.2, %v1399_v43 }
 0x2a6   :  { %v5379_v52 = vsel %vm1405_vm14, %v1399_v43, %v1409_v57 }
 0x2a7   :  { %3806 = dma.done.wait [#allocation4], 9216 }
 0x2a8   :  { %3807 = vsyncadd [#allocation4], 4294958080  ;;  %v6229_v61 = vmov 3   ;;  %3504 = vmatprep.subr.mxu0 %v4210_v0  ;;  %3460 = vmatprep.subr.mxu1 %v4050_v32  ;;  %v6230_v42 = vld [vmem:[#allocation65_spill] sm:$0xff]  ;;  %v6232_v11 = vld [vmem:[#allocation51_spill] sm:$0xff]  ;;  %v6242_v45 = vmov 7  }
 0x2a9   :  { %3735 = vset.pattern.permute.xlu1 %v6229_v61  ;;  %3734 = vset.pattern.permute.xlu0 %v6229_v61  ;;  %v6231_v59 = vld [vmem:[#allocation37_spill] sm:$0xff]  ;;  %v6233_v0 = vld [vmem:[#allocation23_spill] sm:$0xff]  ;;  %v6234_v32 = vld [vmem:[#allocation64_spill] sm:$0xff]  ;;  %v6243_v17 = vmov 5   ;;  %v6250_v1 = vmov 1   ;;  %v6273_v12 = vmov 2  }
 0x2aa   :  { %3505 = vmatpush3.msra.mxu0 %v4130_v48  ;;  %3461 = vmatpush3.msra.mxu1 %v3970_v16  ;;  %v5398_v16 = vld [vmem:[%s5994_s5 + $0x8] sm:$0xff]  ;;  %v6240_v37 = vld [vmem:[#allocation49_spill] sm:$0xff]  ;;  %v6246_v28 = vld [vmem:[#allocation48_spill] sm:$0xff]  ;;  %v6280_v20 = vmov 6   ;;  %vm1581_vm15 = vcmask 1046528  }
 0x2ab   :  { %3506 = vmatprep.subr.mxu0 %v4205_v63  ;;  %3462 = vmatprep.subr.mxu1 %v4045_v31  ;;  %v5403_v31 = vld [vmem:[%s5994_s5] sm:$0xff]  ;;  %v6238_v63 = vld [vmem:[#allocation63_spill] sm:$0xff]  ;;  %v6247_v13 = vld [vmem:[#allocation20_spill] sm:$0xff] }
 0x2ac   :  { %3507 = vmatpush3.msra.mxu0 %v4125_v47  ;;  %3463 = vmatpush3.msra.mxu1 %v3965_v15  ;;  %v6235_v15 = vld [vmem:[#allocation36_spill] sm:$0xff]  ;;  %v6236_v47 = vld [vmem:[#allocation50_spill] sm:$0xff]  ;;  %v6239_v36 = vld [vmem:[#allocation35_spill] sm:$0xff] }
 0x2ad   :  { %3508 = vmatprep.subr.mxu0 %v6230_v42  ;;  %3464 = vmatprep.subr.mxu1 %v6231_v59  ;;  %v6237_v48 = vld [vmem:[#allocation22_spill] sm:$0xff]  ;;  %v6241_v26 = vld [vmem:[#allocation21_spill] sm:$0xff]  ;;  %v6251_v56 = vld [vmem:[#allocation47_spill] sm:$0xff] }
 0x2ae   :  { %3509 = vmatpush3.msra.mxu0 %v6232_v11  ;;  %3465 = vmatpush3.msra.mxu1 %v6233_v0  ;;  %v6244_v18 = vld [vmem:[#allocation62_spill] sm:$0xff]  ;;  %v6248_v55 = vld [vmem:[#allocation61_spill] sm:$0xff]  ;;  %v6252_v7 = vld [vmem:[#allocation19_spill] sm:$0xff] }
 0x2af   :  { %3510 = vmatprep.subr.mxu0 %v6234_v32  ;;  %3466 = vmatprep.subr.mxu1 %v6235_v15  ;;  %v6245_v49 = vld [vmem:[#allocation34_spill] sm:$0xff]  ;;  %v6249_v23 = vld [vmem:[#allocation33_spill] sm:$0xff]  ;;  %v5434_v60 = vld [vmem:[%s5994_s5 + $0x10] sm:$0xff] }
 0x2b0   :  { %1546 = vperm.xlu1 %3735, %v5398_v16   ;;  %1542 = vperm.xlu0 %3734, %v5403_v31   ;;  %v6253_v41 = vld [vmem:[#allocation60_spill] sm:$0xff]  ;;  %v6255_v58 = vld [vmem:[#allocation46_spill] sm:$0xff]  ;;  %v6257_v40 = vld [vmem:[#allocation59_spill] sm:$0xff] }
 0x2b1   :  { %3511 = vmatpush3.msra.mxu0 %v6236_v47  ;;  %3467 = vmatpush3.msra.mxu1 %v6237_v48  ;;  %v6254_v2 = vld [vmem:[#allocation32_spill] sm:$0xff]  ;;  %v6256_v62 = vld [vmem:[#allocation18_spill] sm:$0xff]  ;;  %v6258_v44 = vld [vmem:[#allocation31_spill] sm:$0xff]  ;;  %v6292_v47 = vmov 4   ;;  %v6293_v48 = vmov 0  }
 0x2b2   :  { %3512 = vmatprep.subr.mxu0 %v6238_v63  ;;  %3468 = vmatprep.subr.mxu1 %v6239_v36  ;;  %v6259_v22 = vld [vmem:[#allocation45_spill] sm:$0xff]  ;;  %v6261_v14 = vld [vmem:[#allocation58_spill] sm:$0xff]  ;;  %v6263_v30 = vld [vmem:[#allocation44_spill] sm:$0xff]  ;;  %v6294_v63 = vmov 8   ;;  %v1530_v36 = vrot.slane %v5373_v21, 7 }
 0x2b3   :  { %3513 = vmatpush3.msra.mxu0 %v6240_v37  ;;  %3469 = vmatpush3.msra.mxu1 %v6241_v26  ;;  %v6260_v4 = vld [vmem:[#allocation17_spill] sm:$0xff]  ;;  %v6262_v39 = vld [vmem:[#allocation30_spill] sm:$0xff]  ;;  %v6264_v5 = vld [vmem:[#allocation16_spill] sm:$0xff]  ;;  %v1531_v37 = vrot.slane %v5375_v34, 7  ;;  %v1464_v26 = vrot.slane %v5373_v21, 4 }
 0x2b4   :  { %3736 = vset.pattern.permute.xlu1 %v6242_v45  ;;  %3738 = vset.pattern.permute.xlu0 %v6243_v17  ;;  %v6265_v8 = vld [vmem:[#allocation57_spill] sm:$0xff]  ;;  %v6267_v38 = vld [vmem:[#allocation43_spill] sm:$0xff]  ;;  %v6269_v19 = vld [vmem:[#allocation56_spill] sm:$0xff] }
 0x2b5   :  { %1636 = vperm.xlu1 %3736, %v5403_v31   ;;  %1596 = vperm.xlu0 %3738, %v5403_v31   ;;  %v5459_v35 = vld [vmem:[%s5994_s5 + $0x18] sm:$0xff]  ;;  %v6268_v9 = vld [vmem:[#allocation15_spill] sm:$0xff]  ;;  %v6271_v27 = vld [vmem:[#allocation42_spill] sm:$0xff] }
 0x2b6   :  { %3514 = vmatprep.subr.mxu0 %v6244_v18  ;;  %3470 = vmatprep.subr.mxu1 %v6245_v49  ;;  %v6266_v46 = vld [vmem:[#allocation29_spill] sm:$0xff]  ;;  %v6270_v33 = vld [vmem:[#allocation28_spill] sm:$0xff]  ;;  %v6272_v51 = vld [vmem:[#allocation14_spill] sm:$0xff]  ;;  %v1528_v49 = vrot.slane %v5379_v52, 7 }
 0x2b7   :  { %3515 = vmatpush3.msra.mxu0 %v6246_v28  ;;  %3471 = vmatpush3.msra.mxu1 %v6247_v13  ;;  %v6274_v3 = vld [vmem:[#allocation55_spill] sm:$0xff]  ;;  %v6276_v24 = vld [vmem:[#allocation41_spill] sm:$0xff]  ;;  %v6278_v54 = vld [vmem:[#allocation54_spill] sm:$0xff]  ;;  %v1582_v28 = vrot.slane %v5373_v21, 1  ;;  %v1583_v13 = vrot.slane %v5375_v34, 1 }
 0x2b8   :  { %3516 = vmatprep.subr.mxu0 %v6248_v55  ;;  %3472 = vmatprep.subr.mxu1 %v6249_v23  ;;  %v6275_v50 = vld [vmem:[#allocation27_spill] sm:$0xff]  ;;  %v6277_v6 = vld [vmem:[#allocation13_spill] sm:$0xff]  ;;  %v6279_v25 = vld [vmem:[#allocation26_spill] sm:$0xff]  ;;  %v1462_v23 = vrot.slane %v5379_v52, 4 }
 0x2b9   :  { %3737 = vset.pattern.permute.xlu1 %v6250_v1  ;;  %3739 = vset.pattern.permute.xlu0 %v6250_v1  ;;  %v6281_v10 = vld [vmem:[#allocation40_spill] sm:$0xff]  ;;  %v6283_v43 = vld [vmem:[#allocation53_spill] sm:$0xff]  ;;  %v6286_v42 = vld [vmem:[#allocation11_spill] sm:$0xff] }
 0x2ba   :  { %1480 = vperm.xlu1 %3737, %v5398_v16   ;;  %1476 = vperm.xlu0 %3739, %v5403_v31   ;;  %v6282_v53 = vld [vmem:[#allocation12_spill] sm:$0xff]  ;;  %v6284_v57 = vld [vmem:[#allocation25_spill] sm:$0xff]  ;;  %v6289_v0 = vld [vmem:[#allocation38_spill] sm:$0xff] }
 0x2bb   :  { %3517 = vmatpush3.msra.mxu0 %v6251_v56  ;;  %3473 = vmatpush3.msra.mxu1 %v6252_v7  ;;  %v6287_v59 = vld [vmem:[#allocation52_spill] sm:$0xff]  ;;  %v6290_v32 = vld [vmem:[#allocation10_spill] sm:$0xff]  ;;  %v6291_v15 = vld [vmem:[#allocation73_spill] sm:$0xff] }
 0x2bc   :  { %3518 = vmatprep.subr.mxu0 %v6253_v41  ;;  %3474 = vmatprep.subr.mxu1 %v6254_v2  ;;  %v6288_v11 = vld [vmem:[#allocation24_spill] sm:$0xff]  ;;  %v1584_v2 = vsel %vm1581_vm15, %v1582_v28, %v1583_v13 }
 0x2bd   :  { %3519 = vmatpush3.msra.mxu0 %v6255_v58  ;;  %3475 = vmatpush3.msra.mxu1 %v6256_v62  ;;  %v1474_v62 = vsel %vm841_vm10, %v1462_v23, %v1464_v26 }
 0x2be   :  { %3740 = vset.pattern.permute.xlu1 %v6229_v61  ;;  %1484 = vperm.xlu0 %3739, %v5434_v60  }
 0x2bf   :  { %1550 = vperm.xlu1 %3740, %v5434_v60   ;;  %3520 = vmatprep.subr.mxu0 %v6257_v40 }
 0x2c0   :  { %3476 = vmatprep.subr.mxu1 %v6258_v44  ;;  %3521 = vmatpush3.msra.mxu0 %v6259_v22 }
 0x2c1   :  { %3477 = vmatpush3.msra.mxu1 %v6260_v4  ;;  %3522 = vmatprep.subr.mxu0 %v6261_v14 }
 0x2c2   :  { %3744 = vset.pattern.permute.xlu0 %v6242_v45  ;;  %3478 = vmatprep.subr.mxu1 %v6262_v39 }
 0x2c3   :  { %3741 = vset.pattern.permute.xlu1 %v6242_v45  ;;  %1644 = vperm.xlu0 %3744, %v5434_v60   ;;  %v1465_v45 = vrot.slane %v5375_v34, 4 }
 0x2c4   :  { %1640 = vperm.xlu1 %3741, %v5398_v16   ;;  %3523 = vmatpush3.msra.mxu0 %v6263_v30 }
 0x2c5   :  { %3479 = vmatpush3.msra.mxu1 %v6264_v5  ;;  %3524 = vmatprep.subr.mxu0 %v6265_v8  ;;  %v1466_v55 = vsel %vm841_vm10, %v1464_v26, %v1465_v45  ;;  %v1533_v8 = vrot.slane %v5377_v29, 7 }
 0x2c6   :  { %3480 = vmatprep.subr.mxu1 %v6266_v46  ;;  %3525 = vmatpush3.msra.mxu0 %v6267_v38  ;;  %v1467_v46 = vrot.slane %v5377_v29, 4 }
 0x2c7   :  { %1648 = vperm.xlu0 %3744, %v5459_v35   ;;  %3481 = vmatpush3.msra.mxu1 %v6268_v9  ;;  %v1534_v9 = vsel %vm912_vm6, %v1531_v37, %v1533_v8 }
 0x2c8   :  { %3742 = vset.pattern.permute.xlu1 %v6243_v17  ;;  %3526 = vmatprep.subr.mxu0 %v6269_v19  ;;  %v1468_v19 = vsel %vm841_vm10, %v1465_v45, %v1467_v46 }
 0x2c9   :  { %1600 = vperm.xlu1 %3742, %v5398_v16   ;;  %3482 = vmatprep.subr.mxu1 %v6270_v33  ;;  %v1585_v33 = vrot.slane %v5377_v29, 1 }
 0x2ca   :  { %3527 = vmatpush3.msra.mxu0 %v6271_v27  ;;  %3483 = vmatpush3.msra.mxu1 %v6272_v51 }
 0x2cb   :  { %3747 = vset.pattern.permute.xlu0 %v6273_v12  ;;  %3528 = vmatprep.subr.mxu0 %v6274_v3 }
 0x2cc   :  { %1509 = vperm.xlu0 %3747, %v5403_v31   ;;  %3484 = vmatprep.subr.mxu1 %v6275_v50  ;;  %v1586_v50 = vsel %vm1581_vm15, %v1583_v13, %v1585_v33 }
 0x2cd   :  { %3743 = vset.pattern.permute.xlu1 %v6229_v61  ;;  %3529 = vmatpush3.msra.mxu0 %v6276_v24  ;;  %v6285_v61 = vld [vmem:[#allocation39_spill] sm:$0xff] }
 0x2ce   :  { %1554 = vperm.xlu1 %3743, %v5459_v35   ;;  %3485 = vmatpush3.msra.mxu1 %v6277_v6 }
 0x2cf   :  { %3530 = vmatprep.subr.mxu0 %v6278_v54  ;;  %3486 = vmatprep.subr.mxu1 %v6279_v25 }
 0x2d0   :  { %3750 = vset.pattern.permute.xlu0 %v6280_v20  ;;  %3531 = vmatpush3.msra.mxu0 %v6281_v10 }
 0x2d1   :  { %1616 = vperm.xlu0 %3750, %v5403_v31   ;;  %3487 = vmatpush3.msra.mxu1 %v6282_v53  ;;  %v1535_v53 = vsel %vm912_vm6, %v1533_v8, %v1528_v49  ;;  %v1497_v8 = vrot.slane %v5373_v21, 5 }
 0x2d2   :  { %3745 = vset.pattern.permute.xlu1 %v6250_v1  ;;  %3532 = vmatprep.subr.mxu0 %v6283_v43 }
 0x2d3   :  { %1488 = vperm.xlu1 %3745, %v5459_v35   ;;  %3488 = vmatprep.subr.mxu1 %v6284_v57 }
 0x2d4   :  { %3533 = vmatpush3.msra.mxu0 %v6285_v61  ;;  %3489 = vmatpush3.msra.mxu1 %v6286_v42 }
 0x2d5   :  { %1620 = vperm.xlu0 %3750, %v5398_v16   ;;  %3534 = vmatprep.subr.mxu0 %v6287_v59  ;;  %v1587_v59 = vrot.slane %v5379_v52, 1 }
 0x2d6   :  { %3490 = vmatprep.subr.mxu1 %v6288_v11  ;;  %3535 = vmatpush3.msra.mxu0 %v6289_v0 }
 0x2d7   :  { %3746 = vset.pattern.permute.xlu1 %v6243_v17  ;;  %3491 = vmatpush3.msra.mxu1 %v6290_v32  ;;  %v1588_v0 = vsel %vm1581_vm15, %v1585_v33, %v1587_v59 }
 0x2d8   :  { %1604 = vperm.xlu1 %3746, %v5434_v60   ;;  %3608 = vmatprep.subr.mxu1 %v6291_v15 }
 0x2d9   :  { %1624 = vperm.xlu0 %3750, %v5434_v60  }
 0x2dc   :  { %1608 = vperm.xlu1 %3746, %v5459_v35  }
 0x2dd   :  { %3756 = vset.pattern.permute.xlu0 %v6292_v47 }
 0x2de   :  { %1566 = vperm.xlu0 %3756, %v5398_v16  }
 0x2e0   :  { %3748 = vset.pattern.permute.xlu1 %v6293_v48 }
 0x2e1   :  { %1440 = vperm.xlu1 %3748, %v5403_v31  }
 0x2e2   :  { %1570 = vperm.xlu0 %3756, %v5434_v60  }
 0x2e5   :  { %3749 = vset.pattern.permute.xlu1 %v6273_v12 }
 0x2e6   :  { %1513 = vperm.xlu1 %3749, %v5398_v16   ;;  %3765 = vset.pattern.permute.xlu0 %v6294_v63 }
 0x2ea   :  { %3751 = vset.pattern.permute.xlu1 %v6293_v48 }
 0x2eb   :  { %1445 = vperm.xlu1 %3751, %v5398_v16  }
 0x2ef   :  { %3752 = vset.pattern.permute.xlu1 %v6292_v47 }
 0x2f0   :  { %1562 = vperm.xlu1 %3752, %v5403_v31  }
 0x2f4   :  { %3753 = vset.pattern.permute.xlu1 %v6273_v12 }
 0x2f5   :  { %1517 = vperm.xlu1 %3753, %v5434_v60  }
 0x2f9   :  { %3754 = vset.pattern.permute.xlu1 %v6293_v48 }
 0x2fa   :  { %1450 = vperm.xlu1 %3754, %v5434_v60  }
 0x2fe   :  { %3755 = vset.pattern.permute.xlu1 %v6273_v12 }
 0x2ff   :  { %1521 = vperm.xlu1 %3755, %v5459_v35  }
 0x303   :  { %3757 = vset.pattern.permute.xlu1 %v6293_v48 }
 0x304   :  { %1455 = vperm.xlu1 %3757, %v5459_v35  }
 0x308   :  { %3758 = vset.pattern.permute.xlu1 %v6280_v20  ;;  %v1469_v20 = vsel %vm841_vm10, %v1467_v46, %v1462_v23  ;;  %v1495_v46 = vrot.slane %v5379_v52, 5 }
 0x309   :  { %1628 = vperm.xlu1 %3758, %v5459_v35  }
 0x30d   :  { %3759 = vset.pattern.permute.xlu1 %v6292_v47 }
 0x30e   :  { %1574 = vperm.xlu1 %3759, %v5459_v35  }
 0x312   :  { %3766 = vset.pattern.permute.xlu1 %v6294_v63 }
 0x313   :  { %1660 = vperm.xlu1 %3766, %v5398_v16   ;;  %v1532_v16 = vsel %vm912_vm6, %v1530_v36, %v1531_v37 }
 0x317   :  { %1664 = vperm.xlu1 %3766, %v5434_v60   ;;  %v1540_v60 = vsel %vm912_vm6, %v1528_v49, %v1530_v36  ;;  %v1594_v36 = vsel %vm1581_vm15, %v1587_v59, %v1582_v28 }
 0x32b   :  { %v1547_v17 = vpop.permute.xlu1 %1546  ;;  %v1543_v18 = vpop.permute.xlu0 %1542 }
 0x32c   :  { %v1558_v7 = vmul.f32 %v1547_v17, %v1532_v16  ;;  %v1557_v40 = vmul.f32 %v1543_v18, %v1540_v60 }
 0x330   :  { %v1637_v1 = vpop.permute.xlu1 %1636  ;;  %v1597_v56 = vpop.permute.xlu0 %1596 }
 0x331   :  { %v1651_v41 = vmul.f32 %v1637_v1, %v1466_v55  ;;  %v1611_v44 = vmul.f32 %v1597_v56, %v1584_v2 }
 0x333   :  { %v3767_v58 = vpack.i.bf16 %v1651_v41, %v1558_v7 }
 0x335   :  { %3768 = vrot.lane.b32.xlu1 %v3767_v58, %s3821_s3  ;;  %v1481_v22 = vpop.permute.xlu1 %1480  ;;  %v1477_v4 = vpop.permute.xlu0 %1476 }
 0x336   :  { %v1492_v14 = vmul.f32 %v1481_v22, %v1466_v55  ;;  %v1491_v39 = vmul.f32 %v1477_v4, %v1474_v62  ;;  %v1427_v4 = vrot.slane %v5373_v21, 3 }
 0x338   :  { %v3772_v30 = vpack.i.bf16 %v1611_v44, %v1492_v14  ;;  %v3760_v5 = vpack.i.bf16 %v1491_v39, %v1557_v40  ;;  %v1428_v44 = vrot.slane %v5375_v34, 3  ;;  %v1422_v14 = vrot.slane %v5379_v52, 3 }
 0x339   :  { %v1485_v3 = vpop.permute.xlu0 %1484 }
 0x33a   :  { %v1551_v38 = vpop.permute.xlu1 %1550  ;;  %3773 = vrot.lane.b32.xlu1 %v3772_v30, %s3821_s3  ;;  %3761 = vrot.lane.b32.xlu0 %v3760_v5, %s3821_s3  ;;  %v1493_v54 = vmul.f32 %v1485_v3, %v1468_v19  ;;  %v1429_v39 = vsel %vm798_vm4, %v1427_v4, %v1428_v44  ;;  %v5592_v33 = vsel %vm798_vm4, %v1422_v14, %v1427_v4 }
 0x33b   :  { %v1559_v51 = vmul.f32 %v1551_v38, %v1534_v9  ;;  %v1498_v9 = vrot.slane %v5375_v34, 5 }
 0x33d   :  { %v5600_v3 = vsel %vm591_vm0, %v1497_v8, %v1498_v9 }
 0x33e   :  { %1656 = vperm.xlu0 %3765, %v5403_v31   ;;  %v1645_v10 = vpop.permute.xlu0 %1644 }
 0x33f   :  { %v1641_v27 = vpop.permute.xlu1 %1640  ;;  %v1653_v43 = vmul.f32 %v1645_v10, %v1469_v20 }
 0x340   :  { %v1652_v12 = vmul.f32 %v1641_v27, %v1468_v19  ;;  %v5595_v27 = vsel %vm591_vm0, %v1495_v46, %v1497_v8 }
 0x342   :  { %v3777_v24 = vpack.i.bf16 %v1652_v12, %v1559_v51  ;;  %v1649_v47 = vpop.permute.xlu0 %1648 }
 0x343   :  { %v1654_v37 = vmul.f32 %v1649_v47, %v1474_v62 }
 0x344   :  { %v1601_v6 = vpop.permute.xlu1 %1600  ;;  %3778 = vrot.lane.b32.xlu1 %v3777_v24, %s3821_s3 }
 0x345   :  { %v1612_v25 = vmul.f32 %v1601_v6, %v1586_v50 }
 0x347   :  { %v3782_v31 = vpack.i.bf16 %v1612_v25, %v1493_v54  ;;  %v1510_v28 = vpop.permute.xlu0 %1509 }
 0x348   :  { %v1524_v24 = vmul.f32 %v1510_v28, %v5595_v27  ;;  %v6299_v28 = vld [vmem:[#allocation68_spill] sm:$0xff] }
 0x349   :  { %v1555_v57 = vpop.permute.xlu1 %1554  ;;  %3783 = vrot.lane.b32.xlu0 %v3782_v31, %s3821_s3 }
 0x34a   :  { %v1560_v61 = vmul.f32 %v1555_v57, %v1535_v53 }
 0x34c   :  { %v3787_v42 = vpack.i.bf16 %v1653_v43, %v1560_v61  ;;  %v1617_v60 = vpop.permute.xlu0 %1616 }
 0x34d   :  { %v1631_v30 = vmul.f32 %v1617_v60, %v1429_v39 }
 0x34e   :  { %v1489_v11 = vpop.permute.xlu1 %1488  ;;  %3788 = vrot.lane.b32.xlu1 %v3787_v42, %s3821_s3  ;;  %v1500_v42 = vrot.slane %v5377_v29, 5 }
 0x34f   :  { %v1494_v48 = vmul.f32 %v1489_v11, %v1469_v20 }
 0x350   :  { %v1621_v2 = vpop.permute.xlu0 %1620  ;;  %v5614_v47 = vsel %vm591_vm0, %v1498_v9, %v1500_v42 }
 0x353   :  { %v1605_v32 = vpop.permute.xlu1 %1604 }
 0x354   :  { %v1613_v63 = vmul.f32 %v1605_v32, %v1588_v0  ;;  %v1430_v0 = vrot.slane %v5377_v29, 3  ;;  %v6295_v32 = vld [vmem:[#allocation72_spill] sm:$0xff] }
 0x356   :  { %v3792_v26 = vpack.i.bf16 %v1613_v63, %v1494_v48  ;;  %v6296_v63 = vld [vmem:[#allocation71_spill] sm:$0xff]  ;;  %v1432_v8 = vsel %vm798_vm4, %v1430_v0, %v1422_v14 }
 0x357   :  { %v1609_v45 = vpop.permute.xlu1 %1608 }
 0x358   :  { %v1614_v17 = vmul.f32 %v1609_v45, %v1594_v36  ;;  %3793 = vrot.lane.b32.xlu0 %v3792_v26, %s3821_s3  ;;  %v1431_v36 = vsel %vm798_vm4, %v1428_v44, %v1430_v0 }
 0x35a   :  { %v3797_v18 = vpack.i.bf16 %v1614_v17, %v1654_v37 }
 0x35c   :  { %1668 = vperm.xlu0 %3765, %v5459_v35   ;;  %3798 = vrot.lane.b32.xlu1 %v3797_v18, %s3821_s3  ;;  %v1441_v49 = vpop.permute.xlu1 %1440  ;;  %v5572_v35 = vpop.permute.xlu0 %1624  ;;  %v6297_v18 = vld [vmem:[#allocation70_spill] sm:$0xff] }
 0x35d   :  { %v1458_v12 = vmul.f32 %v1441_v49, %v5592_v33 }
 0x360   :  { %v5576_v40 = vpop.permute.xlu0 %1566 }
 0x361   :  { %v1514_v13 = vpop.permute.xlu1 %1513  ;;  %v1578_v44 = vmul.f32 %v5576_v40, %v5375_v34  ;;  %v1633_v34 = vmul.f32 %v5572_v35, %v1432_v8 }
 0x362   :  { %v1525_v31 = vmul.f32 %v1514_v13, %v5600_v3 }
 0x364   :  { %v5584_v5 = vpop.permute.xlu0 %1570 }
 0x366   :  { %v1446_v16 = vpop.permute.xlu1 %1445 }
 0x367   :  { %v1459_v11 = vmul.f32 %v1446_v16, %v1429_v39 }
 0x36b   :  { %v1563_v55 = vpop.permute.xlu1 %1562 }
 0x36c   :  { %v1577_v50 = vmul.f32 %v1563_v55, %v5373_v21  ;;  %v6298_v55 = vld [vmem:[#allocation69_spill] sm:$0xff] }
 0x370   :  { %v1518_v23 = vpop.permute.xlu1 %1517 }
 0x371   :  { %v1526_v26 = vmul.f32 %v1518_v23, %v5614_v47  ;;  %v1502_v23 = vsel %vm591_vm0, %v1500_v42, %v1495_v46 }
 0x375   :  { %v5562_v1 = vpop.permute.xlu1 %1450 }
 0x37a   :  { %v5564_v56 = vpop.permute.xlu1 %1521 }
 0x37f   :  { %v5566_v7 = vpop.permute.xlu1 %1455 }
 0x384   :  { %v5568_v41 = vpop.permute.xlu1 %1628 }
 0x389   :  { %v5570_v58 = vpop.permute.xlu1 %1574 }
 0x38e   :  { %v5574_v62 = vpop.permute.xlu1 %1660 }
 0x392   :  { %v5579_v22 = vpop.permute.xlu1 %1664 }
 0x3a7   :  { %v3769_v38 = vpop.permute.xlu1 %3768 }
 0x3a8   :  { %v3771_v19 = vunpack.i.h.bf16 %v3769_v38  ;;  %v3770_v25 = vunpack.i.l.bf16 %v3769_v38 }
 0x3aa   :  { %v1751_v51 = vsel %vm1162_vm8, %v1631_v30, %v3771_v19  ;;  %v1744_v21 = vsel %vm1162_vm8, %v1525_v31, %v3770_v25  ;;  %v6300_v30 = vld [vmem:[#allocation67_spill] sm:$0xff]  ;;  %v6301_v19 = vld [vmem:[#allocation66_spill] sm:$0xff] }
 0x3ab   :  { %1988 = vmatprep.mubr.f32.mxu0 %v1751_v51 }
 0x3ac   :  { %v3774_v6 = vpop.permute.xlu1 %3773  ;;  %v3762_v54 = vpop.permute.xlu0 %3761 }
 0x3ad   :  { %v3776_v20 = vunpack.i.h.bf16 %v3774_v6  ;;  %v3764_v10 = vunpack.i.h.bf16 %v3762_v54  ;;  %v3763_v53 = vunpack.i.l.bf16 %v3762_v54  ;;  %v3775_v59 = vunpack.i.l.bf16 %v3774_v6 }
 0x3af   :  { %v1743_v43 = vsel %vm1162_vm8, %v1524_v24, %v3763_v53  ;;  %v1747_v57 = vsel %vm1162_vm8, %v1577_v50, %v3776_v20  ;;  %v1739_v61 = vsel %vm1162_vm8, %v1458_v12, %v3764_v10  ;;  %v1740_v48 = vsel %vm1162_vm8, %v1459_v11, %v3775_v59 }
 0x3b0   :  { %1903 = vmatprep.mubr.f32.mxu1 %v1743_v43  ;;  %1989 = vmatmul.mubr.f32.vlgmr.msra.gmra.mxu0 %v1747_v57  ;;  %v1461_v24 = vmul.f32 %v5566_v7, %v1432_v8  ;;  %v1634_v53 = vmul.f32 %v5568_v41, %v5592_v33  ;;  %v1580_v7 = vmul.f32 %v5570_v58, %v5379_v52 }
 0x3b1   :  { %1904 = vmatmul.mubr.f32.vlgmr.msra.gmra.mxu1 %v1739_v61 }
 0x3b2   :  { %1908 = vmatprep.mubr.f32.mxu1 %v1744_v21  ;;  %3609 = vmatpush3.msra.mxu1 %v6291_v15  ;;  %v1632_v15 = vmul.f32 %v1621_v2, %v1431_v36  ;;  %v1460_v2 = vmul.f32 %v5562_v1, %v1431_v36  ;;  %v1527_v1 = vmul.f32 %v5564_v56, %v1502_v23 }
 0x3b3   :  { %3610 = vmatprep.subr.mxu1 %v6295_v32  ;;  %v1579_v56 = vmul.f32 %v5584_v5, %v5377_v29  ;;  %v1672_v29 = vmul.f32 %v5574_v62, %v5614_v47  ;;  %v1673_v5 = vmul.f32 %v5579_v22, %v1502_v23 }
 0x3b4   :  { %3611 = vmatpush3.msra.mxu1 %v6295_v32 }
 0x3b5   :  { %1909 = vmatmul.mubr.f32.gmra.mxu1 %v1740_v48  ;;  %3612 = vmatprep.subr.mxu1 %v6296_v63 }
 0x3b6   :  { %v3779_v37 = vpop.permute.xlu1 %3778  ;;  %3613 = vmatpush3.msra.mxu1 %v6296_v63 }
 0x3b7   :  { %v3781_v45 = vunpack.i.h.bf16 %v3779_v37  ;;  %v3780_v17 = vunpack.i.l.bf16 %v3779_v37  ;;  %3614 = vmatprep.subr.mxu1 %v6297_v18 }
 0x3b8   :  { %3615 = vmatpush3.msra.mxu1 %v6297_v18 }
 0x3b9   :  { %v1657_v49 = vpop.permute.xlu0 %1656  ;;  %v1745_v13 = vsel %vm1162_vm8, %v1526_v26, %v3780_v17  ;;  %v1752_v16 = vsel %vm1162_vm8, %v1632_v15, %v3781_v45  ;;  %3616 = vmatprep.subr.mxu1 %v6298_v55 }
 0x3ba   :  { %1913 = vmatprep.mubr.f32.mxu1 %v1745_v13  ;;  %1993 = vmatprep.mubr.f32.mxu0 %v1752_v16  ;;  %v1671_v54 = vmul.f32 %v1657_v49, %v5600_v3 }
 0x3bb   :  { %3617 = vmatpush3.msra.mxu1 %v6298_v55 }
 0x3bc   :  { %3618 = vmatprep.subr.mxu1 %v6299_v28 }
 0x3bd   :  { %v3784_v60 = vpop.permute.xlu0 %3783  ;;  %3619 = vmatpush3.msra.mxu1 %v6299_v28 }
 0x3be   :  { %v3786_v4 = vunpack.i.h.bf16 %v3784_v60  ;;  %v3785_v39 = vunpack.i.l.bf16 %v3784_v60  ;;  %3620 = vmatprep.subr.mxu1 %v6300_v30 }
 0x3bf   :  { %3621 = vmatpush3.msra.mxu1 %v6300_v30 }
 0x3c0   :  { %v3789_v38 = vpop.permute.xlu1 %3788  ;;  %v1741_v46 = vsel %vm1162_vm8, %v1460_v2, %v3785_v39  ;;  %v1748_v9 = vsel %vm1162_vm8, %v1578_v44, %v3786_v4  ;;  %3622 = vmatprep.subr.mxu1 %v6301_v19 }
 0x3c1   :  { %v3791_v40 = vunpack.i.h.bf16 %v3789_v38  ;;  %v3790_v51 = vunpack.i.l.bf16 %v3789_v38  ;;  %1914 = vmatmul.mubr.f32.gmra.mxu1 %v1741_v46  ;;  %1994 = vmatmul.mubr.f32.gmra.mxu0 %v1748_v9 }
 0x3c2   :  { %3623 = vmatpush3.msra.mxu1 %v6301_v19 }
 0x3c3   :  { %v1746_v12 = vsel %vm1162_vm8, %v1527_v1, %v3790_v51  ;;  %v1753_v14 = vsel %vm1162_vm8, %v1633_v34, %v3791_v40 }
 0x3c4   :  { %1918 = vmatprep.mubr.f32.mxu1 %v1746_v12  ;;  %1998 = vmatprep.mubr.f32.mxu0 %v1753_v14  ;;  %v6302_v14 = vld [vmem:[#allocation187_spill] sm:$0xff] }
 0x3c5   :  { %2266 = vmatprep.subr.mxu0 %v6302_v14 }
 0x3ca   :  { %v3794_v50 = vpop.permute.xlu0 %3793 }
 0x3cb   :  { %v3796_v6 = vunpack.i.h.bf16 %v3794_v50  ;;  %v3795_v35 = vunpack.i.l.bf16 %v3794_v50  ;;  %v6303_v50 = vld [vmem:[#allocation189_spill] sm:$0xff] }
 0x3cc   :  { %2353 = vmatprep.subr.mxu1 %v6303_v50 }
 0x3cd   :  { %v1742_v25 = vsel %vm1162_vm8, %v1461_v24, %v3795_v35  ;;  %v1749_v20 = vsel %vm1162_vm8, %v1579_v56, %v3796_v6 }
 0x3ce   :  { %v3799_v10 = vpop.permute.xlu1 %3798  ;;  %1919 = vmatmul.mubr.f32.gmra.mxu1 %v1742_v25  ;;  %1999 = vmatmul.mubr.f32.gmra.mxu0 %v1749_v20 }
 0x3cf   :  { %v3801_v31 = vunpack.i.h.bf16 %v3799_v10  ;;  %v3800_v43 = vunpack.i.l.bf16 %v3799_v10  ;;  %3624 = vmatprep.mubr.msk.f32.mxu1 %vm1162_vm8, %v1671_v54 }
 0x3d1   :  { %v1754_v3 = vsel %vm1162_vm8, %v1634_v53, %v3800_v43  ;;  %v1750_v57 = vsel %vm1162_vm8, %v1580_v7, %v3801_v31 }
 0x3d2   :  { %2003 = vmatprep.mubr.f32.mxu0 %v1754_v3  ;;  %3625 = vmatmul.mubr.msk.f32.vlgmr.msra.gmra.mxu1 %vm1162_vm8, %v1672_v29 }
 0x3d3   :  { %2004 = vmatmul.mubr.f32.gmra.mxu0 %v1750_v57  ;;  %3627 = vmatprep.mubr.msk.f32.mxu1 %vm1162_vm8, %v1673_v5 }
 0x3d7   :  { %v1669_v52 = vpop.permute.xlu0 %1668 }
 0x3d8   :  { %v1674_v41 = vmul.f32 %v1669_v52, %v5595_v27 }
 0x3da   :  { %3628 = vmatmul.mubr.msk.f32.gmra.mxu1 %vm1162_vm8, %v1674_v41 }
 0x470   :  { %v3536_v62 = vpop.f32.mrf.mxu0 }
 0x471   :  { %v3492_v58 = vpop.f32.mrf.mxu1 }
 0x472   :  { %v3537_v22 = vpop.f32.mrf.mxu0 }
 0x473   :  { %v3493_v33 = vpop.f32.mrf.mxu1  ;;  %v3538_v63 = vadd.f32 %v3537_v22, %v3536_v62 }
 0x474   :  { %v3494_v36 = vadd.f32 %v3493_v33, %v3492_v58 }
 0x475   :  { %v3495_v61 = vpop.f32.mrf.mxu1 }
 0x476   :  { %v1991_v49 = vadd.f32 %v3538_v63, %v3494_v36 }
 0x477   :  { %v3496_v42 = vpop.f32.mrf.mxu1 }
 0x478   :  { %v3497_v37 = vadd.f32 %v3496_v42, %v3495_v61 }
 0x481   :  { %v3539_v59 = vpop.f32.mrf.mxu0  ;;  %v3498_v21 = vpop.f32.mrf.mxu1 }
 0x483   :  { %v3540_v11 = vpop.f32.mrf.mxu0  ;;  %v3499_v0 = vpop.f32.mrf.mxu1 }
 0x484   :  { %v3541_v32 = vadd.f32 %v3540_v11, %v3539_v59  ;;  %v3500_v30 = vadd.f32 %v3499_v0, %v3498_v21 }
 0x486   :  { %v1996_v15 = vadd.f32 %v3541_v32, %v3497_v37 }
 0x48e   :  { %v3501_v47 = vpop.f32.mrf.mxu1  ;;  %v3542_v48 = vpop.f32.mrf.mxu0 }
 0x490   :  { %v3502_v26 = vpop.f32.mrf.mxu1  ;;  %v3543_v27 = vpop.f32.mrf.mxu0 }
 0x491   :  { %v3503_v23 = vadd.f32 %v3502_v26, %v3501_v47  ;;  %v3544_v2 = vadd.f32 %v3543_v27, %v3542_v48 }
 0x492   :  { %v3626_v45 = vpop.f32.mrf.mxu1 }
 0x493   :  { %v2081_v17 = vadd.f32 %v3626_v45, %v1996_v15  ;;  %v3545_v18 = vpop.f32.mrf.mxu0  ;;  %v2001_v9 = vadd.f32 %v3544_v2, %v3500_v30 }
 0x494   :  { %v2075_v13 = vpop.f32.mrf.mxu1 }
 0x495   :  { %vm2095_vm1 = vcmp.gt.f32.partialorder %v2081_v17, 0.0  ;;  %v2099_v16 = vmul.f32 0.2, %v2081_v17  ;;  %v2076_v55 = vadd.f32 %v2075_v13, %v1991_v49  ;;  %v3546_v28 = vpop.f32.mrf.mxu0 }
 0x496   :  { %v3547_v60 = vadd.f32 %v3546_v28, %v3545_v18 }
 0x497   :  { %v5667_v44 = vsel %vm2095_vm1, %v2081_v17, %v2099_v16  ;;  %vm2094_vm2 = vcmp.gt.f32.partialorder %v2076_v55, 0.0  ;;  %v2098_v4 = vmul.f32 0.2, %v2076_v55 }
 0x498   :  { %v2006_v39 = vadd.f32 %v3547_v60, %v3503_v23 }
 0x499   :  { %v5669_v8 = vsel %vm2094_vm2, %v2076_v55, %v2098_v4 }
 0x49a   :  { %v3629_v38 = vpop.f32.mrf.mxu1 }
 0x49b   :  { %v2091_v46 = vadd.f32 %v3629_v38, %v2006_v39 }
 0x49c   :  { %v2085_v19 = vpop.f32.mrf.mxu1 }
 0x49d   :  { %vm2097_vm3 = vcmp.gt.f32.partialorder %v2091_v46, 0.0  ;;  %v2101_v1 = vmul.f32 0.2, %v2091_v46  ;;  %v2086_v34 = vadd.f32 %v2085_v19, %v2001_v9 }
 0x49f   :  { %v5671_v40 = vsel %vm2097_vm3, %v2091_v46, %v2101_v1  ;;  %vm2096_vm5 = vcmp.gt.f32.partialorder %v2086_v34, 0.0  ;;  %v2100_v51 = vmul.f32 0.2, %v2086_v34 }
 0x4a1   :  { %v5673_v12 = vsel %vm2096_vm5, %v2086_v34, %v2100_v51 }
 0x4a2   :  { %3808 = dma.done.wait [#allocation4 + $0x1], 16384 }
 0x4a3   :  { %3809 = vsyncadd [#allocation4 + $0x1], 4294950912  ;;  %v6304_v24 = vld [vmem:[#allocation186_spill] sm:$0xff]  ;;  %v6305_v56 = vld [vmem:[#allocation188_spill] sm:$0xff]  ;;  %v3822_v47 = vmov 0.0   ;;  %vm3823_vm7 = vmmov 0  }
 0x4a4   :  { %2267 = vmatpush1.msra.mxu0 %v6304_v24  ;;  %2354 = vmatpush1.msra.mxu1 %v6305_v56  ;;  %v6306_v6 = vld [vmem:[#allocation171_spill] sm:$0xff]  ;;  %v6307_v35 = vld [vmem:[#allocation173_spill] sm:$0xff]  ;;  %v6308_v54 = vld [vmem:[#allocation170_spill] sm:$0xff]  ;;  %vm3171_vm9 = vcmask 39936   ;;  %vm3033_vm11 = vcmask 1041408  }
 0x4a5   :  { %2268 = vmatprep.subr.mxu0 %v6306_v6  ;;  %2355 = vmatprep.subr.mxu1 %v6307_v35  ;;  %v6309_v25 = vld [vmem:[#allocation172_spill] sm:$0xff]  ;;  %v6310_v20 = vld [vmem:[#allocation155_spill] sm:$0xff]  ;;  %v6311_v10 = vld [vmem:[#allocation157_spill] sm:$0xff] }
 0x4a6   :  { %2269 = vmatpush1.msra.mxu0 %v6308_v54  ;;  %2356 = vmatpush1.msra.mxu1 %v6309_v25  ;;  %v6312_v53 = vld [vmem:[#allocation154_spill] sm:$0xff]  ;;  %v6313_v7 = vld [vmem:[#allocation156_spill] sm:$0xff]  ;;  %v6314_v31 = vld [vmem:[#allocation139_spill] sm:$0xff] }
 0x4a7   :  { %2270 = vmatprep.subr.mxu0 %v6310_v20  ;;  %2357 = vmatprep.subr.mxu1 %v6311_v10  ;;  %v6315_v43 = vld [vmem:[#allocation141_spill] sm:$0xff]  ;;  %v6316_v29 = vld [vmem:[#allocation138_spill] sm:$0xff]  ;;  %v6317_v5 = vld [vmem:[#allocation140_spill] sm:$0xff] }
 0x4a8   :  { %2271 = vmatpush1.msra.mxu0 %v6312_v53  ;;  %2358 = vmatpush1.msra.mxu1 %v6313_v7  ;;  %v6318_v3 = vld [vmem:[#allocation123_spill] sm:$0xff]  ;;  %v6319_v57 = vld [vmem:[#allocation125_spill] sm:$0xff]  ;;  %v6320_v52 = vld [vmem:[#allocation122_spill] sm:$0xff] }
 0x4a9   :  { %2272 = vmatprep.subr.mxu0 %v6314_v31  ;;  %2359 = vmatprep.subr.mxu1 %v6315_v43  ;;  %v6321_v41 = vld [vmem:[#allocation124_spill] sm:$0xff]  ;;  %v6322_v58 = vld [vmem:[#allocation107_spill] sm:$0xff]  ;;  %v6323_v33 = vld [vmem:[#allocation109_spill] sm:$0xff] }
 0x4aa   :  { %2273 = vmatpush1.msra.mxu0 %v6316_v29  ;;  %2360 = vmatpush1.msra.mxu1 %v6317_v5  ;;  %v6324_v62 = vld [vmem:[#allocation106_spill] sm:$0xff]  ;;  %v6325_v61 = vld [vmem:[#allocation108_spill] sm:$0xff]  ;;  %v6326_v22 = vld [vmem:[#allocation91_spill] sm:$0xff] }
 0x4ab   :  { %2274 = vmatprep.subr.mxu0 %v6318_v3  ;;  %2361 = vmatprep.subr.mxu1 %v6319_v57  ;;  %v6327_v42 = vld [vmem:[#allocation93_spill] sm:$0xff]  ;;  %v6328_v59 = vld [vmem:[#allocation90_spill] sm:$0xff]  ;;  %v6329_v21 = vld [vmem:[#allocation92_spill] sm:$0xff] }
 0x4ac   :  { %2275 = vmatpush1.msra.mxu0 %v6320_v52  ;;  %2362 = vmatpush1.msra.mxu1 %v6321_v41  ;;  %v6330_v11 = vld [vmem:[#allocation75_spill] sm:$0xff]  ;;  %v6331_v0 = vld [vmem:[#allocation77_spill] sm:$0xff]  ;;  %v6332_v32 = vld [vmem:[#allocation74_spill] sm:$0xff] }
 0x4ad   :  { %2276 = vmatprep.subr.mxu0 %v6322_v58  ;;  %2363 = vmatprep.subr.mxu1 %v6323_v33  ;;  %v6333_v48 = vld [vmem:[#allocation76_spill] sm:$0xff]  ;;  %v6334_v63 = vld [vmem:[#allocation191_spill] sm:$0xff]  ;;  %v6335_v36 = vld [vmem:[#allocation193_spill] sm:$0xff] }
 0x4ae   :  { %2277 = vmatpush1.msra.mxu0 %v6324_v62  ;;  %2364 = vmatpush1.msra.mxu1 %v6325_v61  ;;  %v6336_v37 = vld [vmem:[#allocation190_spill] sm:$0xff]  ;;  %v6337_v26 = vld [vmem:[#allocation192_spill] sm:$0xff]  ;;  %v6338_v27 = vld [vmem:[#allocation175_spill] sm:$0xff] }
 0x4af   :  { %2278 = vmatprep.subr.mxu0 %v6326_v22  ;;  %2365 = vmatprep.subr.mxu1 %v6327_v42  ;;  %v6339_v15 = vld [vmem:[#allocation177_spill] sm:$0xff]  ;;  %v6340_v45 = vld [vmem:[#allocation174_spill] sm:$0xff]  ;;  %v6341_v17 = vld [vmem:[#allocation176_spill] sm:$0xff] }
 0x4b0   :  { %2279 = vmatpush1.msra.mxu0 %v6328_v59  ;;  %2366 = vmatpush1.msra.mxu1 %v6329_v21  ;;  %v6342_v18 = vld [vmem:[#allocation159_spill] sm:$0xff]  ;;  %v6343_v49 = vld [vmem:[#allocation161_spill] sm:$0xff]  ;;  %v6344_v13 = vld [vmem:[#allocation158_spill] sm:$0xff] }
 0x4b1   :  { %2280 = vmatprep.subr.mxu0 %v6330_v11  ;;  %2367 = vmatprep.subr.mxu1 %v6331_v0  ;;  %v6345_v16 = vld [vmem:[#allocation160_spill] sm:$0xff]  ;;  %v6346_v55 = vld [vmem:[#allocation143_spill] sm:$0xff]  ;;  %v6347_v28 = vld [vmem:[#allocation145_spill] sm:$0xff] }
 0x4b2   :  { %2281 = vmatpush1.msra.mxu0 %v6332_v32  ;;  %2314 = vmatprep.mubr.f32.mxu0 %v3822_v47  ;;  %v6348_v23 = vld [vmem:[#allocation142_spill] sm:$0xff]  ;;  %v6349_v60 = vld [vmem:[#allocation144_spill] sm:$0xff]  ;;  %v6350_v2 = vld [vmem:[#allocation127_spill] sm:$0xff] }
 0x4b3   :  { %2368 = vmatpush1.msra.mxu1 %v6333_v48  ;;  %2401 = vmatprep.mubr.f32.mxu1 %v3822_v47  ;;  %v6351_v4 = vld [vmem:[#allocation129_spill] sm:$0xff]  ;;  %v6352_v39 = vld [vmem:[#allocation126_spill] sm:$0xff]  ;;  %v6353_v30 = vld [vmem:[#allocation128_spill] sm:$0xff] }
 0x4b4   :  { %3349 = vmatmul.mubr.msk.f32.vlgmr.msra.gmra.mxu0 %vm1162_vm8, %v5669_v8  ;;  %3353 = vmatmul.mubr.msk.f32.vlgmr.msra.gmra.mxu1 %vm1162_vm8, %v5669_v8  ;;  %v6354_v38 = vld [vmem:[#allocation111_spill] sm:$0xff]  ;;  %v6355_v46 = vld [vmem:[#allocation113_spill] sm:$0xff]  ;;  %v6356_v9 = vld [vmem:[#allocation110_spill] sm:$0xff] }
 0x4b5   :  { %2442 = vmatprep.subr.mxu0 %v6334_v63  ;;  %2531 = vmatprep.subr.mxu1 %v6335_v36  ;;  %v6357_v19 = vld [vmem:[#allocation112_spill] sm:$0xff]  ;;  %v6358_v1 = vld [vmem:[#allocation95_spill] sm:$0xff]  ;;  %v6359_v34 = vld [vmem:[#allocation97_spill] sm:$0xff] }
 0x4b6   :  { %2443 = vmatpush1.msra.mxu0 %v6336_v37  ;;  %2532 = vmatpush1.msra.mxu1 %v6337_v26  ;;  %v6360_v51 = vld [vmem:[#allocation94_spill] sm:$0xff]  ;;  %v6361_v14 = vld [vmem:[#allocation96_spill] sm:$0xff]  ;;  %v6362_v50 = vld [vmem:[#allocation79_spill] sm:$0xff] }
 0x4b7   :  { %2444 = vmatprep.subr.mxu0 %v6338_v27  ;;  %2533 = vmatprep.subr.mxu1 %v6339_v15  ;;  %v6363_v24 = vld [vmem:[#allocation81_spill] sm:$0xff]  ;;  %v6364_v56 = vld [vmem:[#allocation78_spill] sm:$0xff]  ;;  %v6365_v6 = vld [vmem:[#allocation80_spill] sm:$0xff] }
 0x4b8   :  { %2320 = vmatprep.mubr.f32.mxu0 %v3822_v47  ;;  %2407 = vmatprep.mubr.f32.mxu1 %v3822_v47  ;;  %v6366_v35 = vld [vmem:[#allocation195_spill] sm:$0xff]  ;;  %v6367_v54 = vld [vmem:[#allocation197_spill] sm:$0xff]  ;;  %v6368_v25 = vld [vmem:[#allocation194_spill] sm:$0xff] }
 0x4b9   :  { %2445 = vmatpush1.msra.mxu0 %v6340_v45  ;;  %2534 = vmatpush1.msra.mxu1 %v6341_v17  ;;  %v6369_v20 = vld [vmem:[#allocation196_spill] sm:$0xff]  ;;  %v6370_v10 = vld [vmem:[#allocation179_spill] sm:$0xff]  ;;  %v6371_v53 = vld [vmem:[#allocation181_spill] sm:$0xff] }
 0x4ba   :  { %3350 = vmatmul.mubr.msk.f32.gmra.mxu0 %vm1162_vm8, %v5667_v44  ;;  %3354 = vmatmul.mubr.msk.f32.gmra.mxu1 %vm1162_vm8, %v5667_v44  ;;  %v6372_v7 = vld [vmem:[#allocation178_spill] sm:$0xff]  ;;  %v6373_v31 = vld [vmem:[#allocation180_spill] sm:$0xff]  ;;  %v6374_v43 = vld [vmem:[#allocation163_spill] sm:$0xff] }
 0x4bb   :  { %2446 = vmatprep.subr.mxu0 %v6342_v18  ;;  %2535 = vmatprep.subr.mxu1 %v6343_v49  ;;  %v6375_v29 = vld [vmem:[#allocation165_spill] sm:$0xff]  ;;  %v6376_v5 = vld [vmem:[#allocation162_spill] sm:$0xff]  ;;  %v6377_v3 = vld [vmem:[#allocation164_spill] sm:$0xff] }
 0x4bc   :  { %2447 = vmatpush1.msra.mxu0 %v6344_v13  ;;  %2536 = vmatpush1.msra.mxu1 %v6345_v16  ;;  %v6378_v57 = vld [vmem:[#allocation147_spill] sm:$0xff]  ;;  %v6379_v52 = vld [vmem:[#allocation149_spill] sm:$0xff]  ;;  %v6380_v41 = vld [vmem:[#allocation146_spill] sm:$0xff] }
 0x4bd   :  { %2448 = vmatprep.subr.mxu0 %v6346_v55  ;;  %2537 = vmatprep.subr.mxu1 %v6347_v28  ;;  %v6381_v58 = vld [vmem:[#allocation148_spill] sm:$0xff]  ;;  %v6382_v33 = vld [vmem:[#allocation131_spill] sm:$0xff]  ;;  %v6383_v62 = vld [vmem:[#allocation133_spill] sm:$0xff] }
 0x4be   :  { %2325 = vmatprep.mubr.f32.mxu0 %v3822_v47  ;;  %2413 = vmatprep.mubr.f32.mxu1 %v3822_v47  ;;  %v6384_v61 = vld [vmem:[#allocation130_spill] sm:$0xff]  ;;  %v6385_v22 = vld [vmem:[#allocation132_spill] sm:$0xff]  ;;  %v6386_v42 = vld [vmem:[#allocation115_spill] sm:$0xff] }
 0x4bf   :  { %2449 = vmatpush1.msra.mxu0 %v6348_v23  ;;  %2538 = vmatpush1.msra.mxu1 %v6349_v60  ;;  %v6387_v59 = vld [vmem:[#allocation117_spill] sm:$0xff]  ;;  %v6388_v21 = vld [vmem:[#allocation114_spill] sm:$0xff]  ;;  %v6389_v11 = vld [vmem:[#allocation116_spill] sm:$0xff] }
 0x4c0   :  { %3351 = vmatmul.mubr.msk.f32.gmra.mxu0 %vm1162_vm8, %v5673_v12  ;;  %3355 = vmatmul.mubr.msk.f32.gmra.mxu1 %vm1162_vm8, %v5673_v12  ;;  %v6390_v0 = vld [vmem:[#allocation99_spill] sm:$0xff]  ;;  %v6391_v32 = vld [vmem:[#allocation101_spill] sm:$0xff]  ;;  %v6392_v48 = vld [vmem:[#allocation98_spill] sm:$0xff] }
 0x4c1   :  { %2450 = vmatprep.subr.mxu0 %v6350_v2  ;;  %2539 = vmatprep.subr.mxu1 %v6351_v4  ;;  %v6393_v63 = vld [vmem:[#allocation100_spill] sm:$0xff]  ;;  %v6394_v36 = vld [vmem:[#allocation83_spill] sm:$0xff]  ;;  %v6395_v37 = vld [vmem:[#allocation85_spill] sm:$0xff] }
 0x4c2   :  { %2451 = vmatpush1.msra.mxu0 %v6352_v39  ;;  %2540 = vmatpush1.msra.mxu1 %v6353_v30  ;;  %v6396_v26 = vld [vmem:[#allocation82_spill] sm:$0xff]  ;;  %v6397_v27 = vld [vmem:[#allocation84_spill] sm:$0xff]  ;;  %v6398_v15 = vld [vmem:[#allocation199_spill] sm:$0xff] }
 0x4c3   :  { %2452 = vmatprep.subr.mxu0 %v6354_v38  ;;  %2541 = vmatprep.subr.mxu1 %v6355_v46  ;;  %v6399_v45 = vld [vmem:[#allocation201_spill] sm:$0xff]  ;;  %v6400_v17 = vld [vmem:[#allocation198_spill] sm:$0xff]  ;;  %v6401_v18 = vld [vmem:[#allocation200_spill] sm:$0xff] }
 0x4c4   :  { %2331 = vmatprep.mubr.f32.mxu0 %v3822_v47  ;;  %2419 = vmatprep.mubr.f32.mxu1 %v3822_v47  ;;  %v6402_v49 = vld [vmem:[#allocation183_spill] sm:$0xff]  ;;  %v6403_v13 = vld [vmem:[#allocation185_spill] sm:$0xff]  ;;  %v6404_v16 = vld [vmem:[#allocation182_spill] sm:$0xff] }
 0x4c5   :  { %2453 = vmatpush1.msra.mxu0 %v6356_v9  ;;  %2542 = vmatpush1.msra.mxu1 %v6357_v19  ;;  %v6405_v55 = vld [vmem:[#allocation184_spill] sm:$0xff]  ;;  %v6406_v28 = vld [vmem:[#allocation167_spill] sm:$0xff]  ;;  %v6407_v23 = vld [vmem:[#allocation169_spill] sm:$0xff] }
 0x4c6   :  { %3352 = vmatmul.mubr.msk.f32.gmra.mxu0 %vm1162_vm8, %v5671_v40  ;;  %3356 = vmatmul.mubr.msk.f32.gmra.mxu1 %vm1162_vm8, %v5671_v40  ;;  %v6408_v60 = vld [vmem:[#allocation166_spill] sm:$0xff]  ;;  %v6409_v2 = vld [vmem:[#allocation168_spill] sm:$0xff]  ;;  %v6410_v4 = vld [vmem:[#allocation151_spill] sm:$0xff] }
 0x4c7   :  { %2454 = vmatprep.subr.mxu0 %v6358_v1  ;;  %2543 = vmatprep.subr.mxu1 %v6359_v34  ;;  %v6411_v39 = vld [vmem:[#allocation153_spill] sm:$0xff]  ;;  %v6412_v30 = vld [vmem:[#allocation150_spill] sm:$0xff]  ;;  %v6413_v38 = vld [vmem:[#allocation152_spill] sm:$0xff] }
 0x4c8   :  { %2455 = vmatpush1.msra.mxu0 %v6360_v51  ;;  %2544 = vmatpush1.msra.mxu1 %v6361_v14  ;;  %v6414_v46 = vld [vmem:[#allocation135_spill] sm:$0xff]  ;;  %v6415_v9 = vld [vmem:[#allocation137_spill] sm:$0xff]  ;;  %v6416_v19 = vld [vmem:[#allocation134_spill] sm:$0xff] }
 0x4c9   :  { %2456 = vmatprep.subr.mxu0 %v6362_v50  ;;  %2545 = vmatprep.subr.mxu1 %v6363_v24  ;;  %v6417_v1 = vld [vmem:[#allocation136_spill] sm:$0xff]  ;;  %v6418_v34 = vld [vmem:[#allocation119_spill] sm:$0xff]  ;;  %v6419_v51 = vld [vmem:[#allocation121_spill] sm:$0xff] }
 0x4ca   :  { %2457 = vmatpush1.msra.mxu0 %v6364_v56  ;;  %2490 = vmatprep.mubr.f32.mxu0 %v3822_v47  ;;  %v6420_v14 = vld [vmem:[#allocation118_spill] sm:$0xff]  ;;  %v6421_v50 = vld [vmem:[#allocation120_spill] sm:$0xff]  ;;  %v6422_v24 = vld [vmem:[#allocation103_spill] sm:$0xff] }
 0x4cb   :  { %2546 = vmatpush1.msra.mxu1 %v6365_v6  ;;  %2579 = vmatprep.mubr.f32.mxu1 %v3822_v47  ;;  %v6423_v56 = vld [vmem:[#allocation105_spill] sm:$0xff]  ;;  %v6424_v6 = vld [vmem:[#allocation102_spill] sm:$0xff] }
 0x4cc   :  { %3357 = vmatmul.mubr.msk.f32.vlgmr.msra.gmra.mxu0 %vm1162_vm8, %v5669_v8  ;;  %3361 = vmatmul.mubr.msk.f32.vlgmr.msra.gmra.mxu1 %vm1162_vm8, %v5669_v8 }
 0x4cd   :  { %2620 = vmatprep.subr.mxu0 %v6366_v35  ;;  %2707 = vmatprep.subr.mxu1 %v6367_v54  ;;  %v6425_v35 = vld [vmem:[#allocation104_spill] sm:$0xff]  ;;  %v6426_v54 = vld [vmem:[#allocation87_spill] sm:$0xff] }
 0x4ce   :  { %2621 = vmatpush1.msra.mxu0 %v6368_v25  ;;  %2708 = vmatpush1.msra.mxu1 %v6369_v20  ;;  %v6427_v25 = vld [vmem:[#allocation89_spill] sm:$0xff]  ;;  %v6428_v20 = vld [vmem:[#allocation86_spill] sm:$0xff] }
 0x4cf   :  { %2622 = vmatprep.subr.mxu0 %v6370_v10  ;;  %2709 = vmatprep.subr.mxu1 %v6371_v53  ;;  %v6429_v10 = vld [vmem:[#allocation88_spill] sm:$0xff]  ;;  %v3170_v53 = vld [vmem:[%s5995_s6] sm:$0x1f] }
 0x4d0   :  { %2496 = vmatprep.mubr.f32.mxu0 %v3822_v47  ;;  %2585 = vmatprep.mubr.f32.mxu1 %v3822_v47 }
 0x4d1   :  { %2623 = vmatpush1.msra.mxu0 %v6372_v7  ;;  %2710 = vmatpush1.msra.mxu1 %v6373_v31 }
 0x4d2   :  { %3358 = vmatmul.mubr.msk.f32.gmra.mxu0 %vm1162_vm8, %v5667_v44  ;;  %3362 = vmatmul.mubr.msk.f32.gmra.mxu1 %vm1162_vm8, %v5667_v44 }
 0x4d3   :  { %2624 = vmatprep.subr.mxu0 %v6374_v43  ;;  %2711 = vmatprep.subr.mxu1 %v6375_v29 }
 0x4d4   :  { %2625 = vmatpush1.msra.mxu0 %v6376_v5  ;;  %2712 = vmatpush1.msra.mxu1 %v6377_v3 }
 0x4d5   :  { %2626 = vmatprep.subr.mxu0 %v6378_v57  ;;  %2713 = vmatprep.subr.mxu1 %v6379_v52 }
 0x4d6   :  { %2502 = vmatprep.mubr.f32.mxu0 %v3822_v47  ;;  %2591 = vmatprep.mubr.f32.mxu1 %v3822_v47 }
 0x4d7   :  { %2627 = vmatpush1.msra.mxu0 %v6380_v41  ;;  %2714 = vmatpush1.msra.mxu1 %v6381_v58 }
 0x4d8   :  { %3359 = vmatmul.mubr.msk.f32.gmra.mxu0 %vm1162_vm8, %v5673_v12  ;;  %3363 = vmatmul.mubr.msk.f32.gmra.mxu1 %vm1162_vm8, %v5673_v12 }
 0x4d9   :  { %2628 = vmatprep.subr.mxu0 %v6382_v33  ;;  %2715 = vmatprep.subr.mxu1 %v6383_v62 }
 0x4da   :  { %2629 = vmatpush1.msra.mxu0 %v6384_v61  ;;  %2716 = vmatpush1.msra.mxu1 %v6385_v22 }
 0x4db   :  { %2630 = vmatprep.subr.mxu0 %v6386_v42  ;;  %2717 = vmatprep.subr.mxu1 %v6387_v59 }
 0x4dc   :  { %2508 = vmatprep.mubr.f32.mxu0 %v3822_v47  ;;  %2597 = vmatprep.mubr.f32.mxu1 %v3822_v47 }
 0x4dd   :  { %2631 = vmatpush1.msra.mxu0 %v6388_v21  ;;  %2718 = vmatpush1.msra.mxu1 %v6389_v11 }
 0x4de   :  { %3360 = vmatmul.mubr.msk.f32.gmra.mxu0 %vm1162_vm8, %v5671_v40  ;;  %3364 = vmatmul.mubr.msk.f32.gmra.mxu1 %vm1162_vm8, %v5671_v40 }
 0x4df   :  { %2632 = vmatprep.subr.mxu0 %v6390_v0  ;;  %2719 = vmatprep.subr.mxu1 %v6391_v32 }
 0x4e0   :  { %2633 = vmatpush1.msra.mxu0 %v6392_v48  ;;  %2720 = vmatpush1.msra.mxu1 %v6393_v63 }
 0x4e1   :  { %2634 = vmatprep.subr.mxu0 %v6394_v36  ;;  %2721 = vmatprep.subr.mxu1 %v6395_v37 }
 0x4e2   :  { %2635 = vmatpush1.msra.mxu0 %v6396_v26  ;;  %2668 = vmatprep.mubr.f32.mxu0 %v3822_v47 }
 0x4e3   :  { %2722 = vmatpush1.msra.mxu1 %v6397_v27  ;;  %2755 = vmatprep.mubr.f32.mxu1 %v3822_v47 }
 0x4e4   :  { %3365 = vmatmul.mubr.msk.f32.vlgmr.msra.gmra.mxu0 %vm1162_vm8, %v5669_v8  ;;  %3369 = vmatmul.mubr.msk.f32.vlgmr.msra.gmra.mxu1 %vm1162_vm8, %v5669_v8 }
 0x4e5   :  { %2796 = vmatprep.subr.mxu0 %v6398_v15  ;;  %2885 = vmatprep.subr.mxu1 %v6399_v45 }
 0x4e6   :  { %2797 = vmatpush1.msra.mxu0 %v6400_v17  ;;  %2886 = vmatpush1.msra.mxu1 %v6401_v18 }
 0x4e7   :  { %2798 = vmatprep.subr.mxu0 %v6402_v49  ;;  %2887 = vmatprep.subr.mxu1 %v6403_v13 }
 0x4e8   :  { %2673 = vmatprep.mubr.f32.mxu0 %v3822_v47  ;;  %2761 = vmatprep.mubr.f32.mxu1 %v3822_v47 }
 0x4e9   :  { %2799 = vmatpush1.msra.mxu0 %v6404_v16  ;;  %2888 = vmatpush1.msra.mxu1 %v6405_v55 }
 0x4ea   :  { %3366 = vmatmul.mubr.msk.f32.gmra.mxu0 %vm1162_vm8, %v5667_v44  ;;  %3370 = vmatmul.mubr.msk.f32.gmra.mxu1 %vm1162_vm8, %v5667_v44 }
 0x4eb   :  { %2800 = vmatprep.subr.mxu0 %v6406_v28  ;;  %2889 = vmatprep.subr.mxu1 %v6407_v23 }
 0x4ec   :  { %2801 = vmatpush1.msra.mxu0 %v6408_v60  ;;  %2890 = vmatpush1.msra.mxu1 %v6409_v2 }
 0x4ed   :  { %2802 = vmatprep.subr.mxu0 %v6410_v4  ;;  %2891 = vmatprep.subr.mxu1 %v6411_v39 }
 0x4ee   :  { %2679 = vmatprep.mubr.f32.mxu0 %v3822_v47  ;;  %2767 = vmatprep.mubr.f32.mxu1 %v3822_v47 }
 0x4ef   :  { %2803 = vmatpush1.msra.mxu0 %v6412_v30  ;;  %2892 = vmatpush1.msra.mxu1 %v6413_v38 }
 0x4f0   :  { %3367 = vmatmul.mubr.msk.f32.gmra.mxu0 %vm1162_vm8, %v5673_v12  ;;  %3371 = vmatmul.mubr.msk.f32.gmra.mxu1 %vm1162_vm8, %v5673_v12 }
 0x4f1   :  { %2804 = vmatprep.subr.mxu0 %v6414_v46  ;;  %2893 = vmatprep.subr.mxu1 %v6415_v9 }
 0x4f2   :  { %2805 = vmatpush1.msra.mxu0 %v6416_v19  ;;  %2894 = vmatpush1.msra.mxu1 %v6417_v1 }
 0x4f3   :  { %2806 = vmatprep.subr.mxu0 %v6418_v34  ;;  %2895 = vmatprep.subr.mxu1 %v6419_v51 }
 0x4f4   :  { %2684 = vmatprep.mubr.f32.mxu0 %v3822_v47  ;;  %2773 = vmatprep.mubr.f32.mxu1 %v3822_v47 }
 0x4f5   :  { %2807 = vmatpush1.msra.mxu0 %v6420_v14  ;;  %2896 = vmatpush1.msra.mxu1 %v6421_v50 }
 0x4f6   :  { %3368 = vmatmul.mubr.msk.f32.gmra.mxu0 %vm1162_vm8, %v5671_v40  ;;  %3372 = vmatmul.mubr.msk.f32.gmra.mxu1 %vm1162_vm8, %v5671_v40 }
 0x4f7   :  { %2808 = vmatprep.subr.mxu0 %v6422_v24  ;;  %2897 = vmatprep.subr.mxu1 %v6423_v56 }
 0x4f8   :  { %2809 = vmatpush1.msra.mxu0 %v6424_v6  ;;  %2898 = vmatpush1.msra.mxu1 %v6425_v35 }
 0x4f9   :  { %2810 = vmatprep.subr.mxu0 %v6426_v54  ;;  %2899 = vmatprep.subr.mxu1 %v6427_v25 }
 0x4fa   :  { %2811 = vmatpush1.msra.mxu0 %v6428_v20  ;;  %2844 = vmatprep.mubr.f32.mxu0 %v3822_v47 }
 0x4fb   :  { %2900 = vmatpush1.msra.mxu1 %v6429_v10  ;;  %2933 = vmatprep.mubr.f32.mxu1 %v3822_v47 }
 0x4fc   :  { %3373 = vmatmul.mubr.msk.f32.vlgmr.msra.gmra.mxu0 %vm1162_vm8, %v5669_v8  ;;  %3377 = vmatmul.mubr.msk.f32.vlgmr.msra.gmra.mxu1 %vm1162_vm8, %v5669_v8 }
 0x4fd   :  { %2850 = vmatprep.mubr.f32.mxu0 %v3822_v47  ;;  %2939 = vmatprep.mubr.f32.mxu1 %v3822_v47 }
 0x4fe   :  { %3630 = vmatprep.subr.mxu0 %v3822_v47 }
 0x4ff   :  { %3631 = vmatpush3.msk.msra.mxu0 %vm798_vm4, %v3170_v53 }
 0x500   :  { %3374 = vmatmul.mubr.msk.f32.gmra.mxu0 %vm1162_vm8, %v5667_v44  ;;  %3378 = vmatmul.mubr.msk.f32.gmra.mxu1 %vm1162_vm8, %v5667_v44  ;;  %v3169_v44 = vld [vmem:[%s5990_s1] sm:$0x3] }
 0x501   :  { %2856 = vmatprep.mubr.f32.mxu0 %v3822_v47  ;;  %2945 = vmatprep.mubr.f32.mxu1 %v3822_v47 }
 0x504   :  { %3375 = vmatmul.mubr.msk.f32.gmra.mxu0 %vm1162_vm8, %v5673_v12  ;;  %3379 = vmatmul.mubr.msk.f32.gmra.mxu1 %vm1162_vm8, %v5673_v12 }
 0x505   :  { %2862 = vmatprep.mubr.f32.mxu0 %v3822_v47  ;;  %2951 = vmatprep.mubr.f32.mxu1 %v3822_v47 }
 0x508   :  { %3376 = vmatmul.mubr.msk.f32.gmra.mxu0 %vm1162_vm8, %v5671_v40  ;;  %3380 = vmatmul.mubr.msk.f32.gmra.mxu1 %vm1162_vm8, %v5671_v40  ;;  %vm2976_vm8 = vcmask 1045504  }
 0x509   :  { %3632 = vmatprep.mubr.msk.f32.mxu0 %vm3823_vm7, %v3822_v47 }
 0x50c   :  { %3633 = vmatmul.mubr.msk.f32.vlgmr.msra.gmra.mxu0 %vm3171_vm9, %v3169_v44 }
 0x574   :  { %v2316_v8 = vpop.f32.mrf.mxu0  ;;  %v2403_v12 = vpop.f32.mrf.mxu1 }
 0x575   :  { %v2977_v16 = vrot.slane %v2403_v12, 2 }
 0x576   :  { %v2318_v7 = vpop.f32.mrf.mxu0  ;;  %v2405_v31 = vpop.f32.mrf.mxu1 }
 0x577   :  { %v2962_v45 = vrot.slane %v2318_v7, 1  ;;  %v2991_v34 = vrot.slane %v2405_v31, 3 }
 0x57a   :  { %v2322_v43 = vpop.f32.mrf.mxu0  ;;  %v2409_v29 = vpop.f32.mrf.mxu1 }
 0x57b   :  { %v2978_v55 = vrot.slane %v2409_v29, 2 }
 0x57c   :  { %v2323_v5 = vpop.f32.mrf.mxu0  ;;  %v2411_v3 = vpop.f32.mrf.mxu1 }
 0x57d   :  { %v2963_v26 = vrot.slane %v2323_v5, 1  ;;  %v2992_v39 = vrot.slane %v2411_v3, 3  ;;  %v2979_v19 = vsel %vm2976_vm8, %v2977_v16, %v2978_v55 }
 0x57f   :  { %v2964_v49 = vsel %vm1581_vm15, %v2962_v45, %v2963_v26  ;;  %v2993_v24 = vsel %vm798_vm4, %v2991_v34, %v2992_v39 }
 0x580   :  { %v2327_v57 = vpop.f32.mrf.mxu0  ;;  %v2415_v52 = vpop.f32.mrf.mxu1  ;;  %v2970_v23 = vadd.f32 %v2964_v49, %v2316_v8 }
 0x581   :  { %v2980_v30 = vrot.slane %v2415_v52, 2 }
 0x582   :  { %v2329_v40 = vpop.f32.mrf.mxu0  ;;  %v2417_v41 = vpop.f32.mrf.mxu1  ;;  %v2985_v51 = vadd.f32 %v2979_v19, %v2970_v23 }
 0x583   :  { %v2965_v28 = vrot.slane %v2329_v40, 1  ;;  %v2994_v7 = vrot.slane %v2417_v41, 3 }
 0x584   :  { %v2999_v53 = vadd.f32 %v2993_v24, %v2985_v51 }
 0x586   :  { %v2333_v58 = vpop.f32.mrf.mxu0  ;;  %v2421_v47 = vpop.f32.mrf.mxu1 }
 0x587   :  { %v2981_v38 = vrot.slane %v2421_v47, 2 }
 0x588   :  { %v2334_v33 = vpop.f32.mrf.mxu0  ;;  %v2423_v62 = vpop.f32.mrf.mxu1 }
 0x589   :  { %v2966_v13 = vrot.slane %v2334_v33, 1  ;;  %v2982_v56 = vsel %vm2976_vm8, %v2980_v30, %v2981_v38  ;;  %v2995_v54 = vrot.slane %v2423_v62, 3 }
 0x58b   :  { %v2967_v4 = vsel %vm1581_vm15, %v2965_v28, %v2966_v13  ;;  %v2996_v5 = vsel %vm798_vm4, %v2994_v7, %v2995_v54 }
 0x58c   :  { %v2492_v61 = vpop.f32.mrf.mxu0  ;;  %v5908_v22 = vpop.f32.mrf.mxu1  ;;  %v2971_v14 = vadd.f32 %v2967_v4, %v2327_v57 }
 0x58d   :  { %v3005_v50 = vrot.slane %v2492_v61, 4  ;;  %v3034_v33 = vrot.slane %v5908_v22, 6 }
 0x58e   :  { %v2494_v42 = vpop.f32.mrf.mxu0  ;;  %v5910_v59 = vpop.f32.mrf.mxu1  ;;  %v2986_v44 = vadd.f32 %v2982_v56, %v2971_v14 }
 0x58f   :  { %v3019_v31 = vrot.slane %v2494_v42, 5 }
 0x590   :  { %v3000_v40 = vadd.f32 %v2996_v5, %v2986_v44 }
 0x592   :  { %v2498_v21 = vpop.f32.mrf.mxu0  ;;  %v5912_v11 = vpop.f32.mrf.mxu1 }
 0x593   :  { %v3006_v1 = vrot.slane %v2498_v21, 4  ;;  %v3035_v62 = vrot.slane %v5912_v11, 6 }
 0x594   :  { %v2500_v0 = vpop.f32.mrf.mxu0  ;;  %v5914_v32 = vpop.f32.mrf.mxu1 }
 0x595   :  { %v3007_v25 = vsel %vm841_vm10, %v3005_v50, %v3006_v1  ;;  %v3020_v20 = vrot.slane %v2500_v0, 5  ;;  %v3036_v26 = vsel %vm3033_vm11, %v3034_v33, %v3035_v62 }
 0x596   :  { %v3013_v29 = vadd.f32 %v3007_v25, %v2999_v53 }
 0x597   :  { %v3021_v3 = vsel %vm591_vm0, %v3019_v31, %v3020_v20 }
 0x598   :  { %v2504_v48 = vpop.f32.mrf.mxu0  ;;  %v5916_v63 = vpop.f32.mrf.mxu1  ;;  %v3027_v41 = vadd.f32 %v3021_v3, %v3013_v29 }
 0x599   :  { %v3008_v43 = vrot.slane %v2504_v48, 4  ;;  %v3037_v45 = vrot.slane %v5916_v63, 6 }
 0x59a   :  { %v2506_v36 = vpop.f32.mrf.mxu0  ;;  %v5918_v37 = vpop.f32.mrf.mxu1  ;;  %v3042_v22 = vadd.f32 %v3036_v26, %v3027_v41 }
 0x59b   :  { %v3022_v61 = vrot.slane %v2506_v36, 5  ;;  %v3048_v36 = vrot.slane %v5910_v59, 7 }
 0x59e   :  { %v2510_v27 = vpop.f32.mrf.mxu0  ;;  %v5920_v15 = vpop.f32.mrf.mxu1 }
 0x59f   :  { %v3009_v10 = vrot.slane %v2510_v27, 4  ;;  %v3049_v27 = vrot.slane %v5914_v32, 7 }
 0x5a0   :  { %v2512_v17 = vpop.f32.mrf.mxu0  ;;  %v5922_v18 = vpop.f32.mrf.mxu1 }
 0x5a1   :  { %v3010_v57 = vsel %vm841_vm10, %v3008_v43, %v3009_v10  ;;  %v3023_v52 = vrot.slane %v2512_v17, 5  ;;  %v3038_v17 = vrot.slane %v5920_v15, 6  ;;  %v3050_v23 = vsel %vm912_vm6, %v3048_v36, %v3049_v27 }
 0x5a2   :  { %v3014_v42 = vadd.f32 %v3010_v57, %v3000_v40  ;;  %v3052_v4 = vrot.slane %v5922_v18, 7  ;;  %v3056_v39 = vadd.f32 %v3050_v23, %v3042_v22  ;;  %v3051_v15 = vrot.slane %v5918_v37, 7 }
 0x5a3   :  { %v3024_v48 = vsel %vm591_vm0, %v3022_v61, %v3023_v52 }
 0x5a4   :  { %v2670_v60 = vpop.f32.mrf.mxu0  ;;  %v5925_v2 = vpop.f32.mrf.mxu1  ;;  %v3028_v49 = vadd.f32 %v3024_v48, %v3014_v42  ;;  %v3053_v34 = vsel %vm912_vm6, %v3051_v15, %v3052_v4 }
 0x5a5   :  { %v3039_v60 = vsel %vm3033_vm11, %v3037_v45, %v3038_v17  ;;  %v3085_v43 = vrot.slane %v5925_v2, 2 }
 0x5a6   :  { %v5928_v46 = vpop.f32.mrf.mxu0  ;;  %v5930_v9 = vpop.f32.mrf.mxu1  ;;  %v3043_v63 = vadd.f32 %v3039_v60, %v3028_v49 }
 0x5a7   :  { %v3070_v51 = vrot.slane %v5928_v46, 1 }
 0x5a8   :  { %v3057_v24 = vadd.f32 %v3053_v34, %v3043_v63 }
 0x5aa   :  { %v2675_v6 = vpop.f32.mrf.mxu0  ;;  %v5935_v35 = vpop.f32.mrf.mxu1 }
 0x5ab   :  { %v3058_v19 = vadd.f32 %v3056_v39, %v2675_v6  ;;  %v3078_v14 = vrot.slane %v5935_v35, 2 }
 0x5ac   :  { %v2677_v8 = vpop.f32.mrf.mxu0  ;;  %v5938_v12 = vpop.f32.mrf.mxu1 }
 0x5ad   :  { %v3063_v32 = vrot.slane %v2677_v8, 1  ;;  %v3093_v8 = vrot.slane %v5938_v12, 3  ;;  %v3100_v12 = vrot.slane %v5930_v9, 3 }
 0x5b0   :  { %v2681_v58 = vpop.f32.mrf.mxu0  ;;  %v2769_v47 = vpop.f32.mrf.mxu1 }
 0x5b1   :  { %v3079_v50 = vrot.slane %v2769_v47, 2 }
 0x5b2   :  { %v2682_v21 = vpop.f32.mrf.mxu0  ;;  %v2771_v0 = vpop.f32.mrf.mxu1 }
 0x5b3   :  { %v3064_v16 = vrot.slane %v2682_v21, 1  ;;  %v3094_v25 = vrot.slane %v2771_v0, 3  ;;  %v3080_v53 = vsel %vm2976_vm8, %v3078_v14, %v3079_v50 }
 0x5b5   :  { %v3065_v30 = vsel %vm1581_vm15, %v3063_v32, %v3064_v16  ;;  %v3095_v29 = vsel %vm798_vm4, %v3093_v8, %v3094_v25 }
 0x5b6   :  { %v2686_v13 = vpop.f32.mrf.mxu0  ;;  %v2775_v11 = vpop.f32.mrf.mxu1  ;;  %v3073_v18 = vadd.f32 %v3065_v30, %v3058_v19 }
 0x5b7   :  { %v3059_v20 = vadd.f32 %v3057_v24, %v2686_v13  ;;  %v3081_v44 = vrot.slane %v2775_v11, 2 }
 0x5b8   :  { %v2688_v55 = vpop.f32.mrf.mxu0  ;;  %v2777_v28 = vpop.f32.mrf.mxu1  ;;  %v3088_v7 = vadd.f32 %v3080_v53, %v3073_v18  ;;  %v3384_v53 = vld [vmem:[%s5997_s8] ss:$0 sm:$0xff] }
 0x5b9   :  { %v3066_v38 = vrot.slane %v2688_v55, 1  ;;  %v3087_v57 = vsel %vm2976_vm8, %v3081_v44, %v3085_v43  ;;  %v3096_v52 = vrot.slane %v2777_v28, 3 }
 0x5ba   :  { %v3103_v47 = vadd.f32 %v3095_v29, %v3088_v7 }
 0x5bb   :  { %v3072_v37 = vsel %vm1581_vm15, %v3066_v38, %v3070_v51  ;;  %v3102_v26 = vsel %vm798_vm4, %v3096_v52, %v3100_v12 }
 0x5bc   :  { %v2846_v1 = vpop.f32.mrf.mxu0  ;;  %v5956_v59 = vpop.f32.mrf.mxu1  ;;  %v3074_v46 = vadd.f32 %v3072_v37, %v3059_v20 }
 0x5bd   :  { %v3115_v27 = vrot.slane %v2846_v1, 4  ;;  %v3145_v32 = vrot.slane %v5956_v59, 6 }
 0x5be   :  { %v2848_v56 = vpop.f32.mrf.mxu0  ;;  %v2937_v54 = vpop.f32.mrf.mxu1  ;;  %v3089_v33 = vadd.f32 %v3087_v57, %v3074_v46  ;;  %v3385_v46 = vld [vmem:[#allocation5] ss:$0 sm:$0xff] }
 0x5bf   :  { %v3130_v22 = vrot.slane %v2848_v56, 5  ;;  %v3160_v38 = vrot.slane %v2937_v54, 7  ;;  %v3383_v54 = vld [vmem:[%s5996_s7] ss:$0 sm:$0xff] }
 0x5c0   :  { %v2852_v10 = vpop.f32.mrf.mxu0  ;;  %v2941_v6 = vpop.f32.mrf.mxu1  ;;  %v3104_v49 = vadd.f32 %v3102_v26, %v3089_v33 }
 0x5c1   :  { %v3108_v40 = vrot.slane %v2852_v10, 4  ;;  %v3138_v13 = vrot.slane %v2941_v6, 6 }
 0x5c2   :  { %v2854_v31 = vpop.f32.mrf.mxu0  ;;  %v2943_v35 = vpop.f32.mrf.mxu1 }
 0x5c3   :  { %v3123_v41 = vrot.slane %v2854_v31, 5  ;;  %v3153_v50 = vrot.slane %v2943_v35, 7 }
 0x5c4   :  { %v2858_v5 = vpop.f32.mrf.mxu0  ;;  %v2947_v3 = vpop.f32.mrf.mxu1 }
 0x5c5   :  { %v3109_v58 = vrot.slane %v2858_v5, 4  ;;  %v3139_v16 = vrot.slane %v2947_v3, 6 }
 0x5c6   :  { %v2860_v62 = vpop.f32.mrf.mxu0  ;;  %v2949_v61 = vpop.f32.mrf.mxu1 }
 0x5c7   :  { %v3110_v42 = vsel %vm841_vm10, %v3108_v40, %v3109_v58  ;;  %v3124_v21 = vrot.slane %v2860_v62, 5  ;;  %v3140_v19 = vsel %vm3033_vm11, %v3138_v13, %v3139_v16  ;;  %v3154_v1 = vrot.slane %v2949_v61, 7 }
 0x5c8   :  { %v3118_v2 = vadd.f32 %v3110_v42, %v3103_v47  ;;  %v2864_v0 = vpop.f32.mrf.mxu0  ;;  %v2953_v48 = vpop.f32.mrf.mxu1 }
 0x5c9   :  { %v3125_v45 = vsel %vm591_vm0, %v3123_v41, %v3124_v21  ;;  %v3111_v17 = vrot.slane %v2864_v0, 4  ;;  %v3141_v55 = vrot.slane %v2953_v48, 6  ;;  %v3155_v56 = vsel %vm912_vm6, %v3153_v50, %v3154_v1 }
 0x5ca   :  { %v2866_v11 = vpop.f32.mrf.mxu0  ;;  %v2955_v36 = vpop.f32.mrf.mxu1  ;;  %v3133_v23 = vadd.f32 %v3125_v45, %v3118_v2 }
 0x5cb   :  { %v3117_v9 = vsel %vm841_vm10, %v3111_v17, %v3115_v27  ;;  %v3126_v28 = vrot.slane %v2866_v11, 5  ;;  %v3156_v63 = vrot.slane %v2955_v36, 7  ;;  %v3147_v34 = vsel %vm3033_vm11, %v3141_v55, %v3145_v32 }
 0x5cc   :  { %v3119_v60 = vadd.f32 %v3117_v9, %v3104_v49  ;;  %v3244_v4 = vpop.f32.mrf.mxu0  ;;  %v3148_v14 = vadd.f32 %v3140_v19, %v3133_v23 }
 0x5cd   :  { %v3132_v39 = vsel %vm591_vm0, %v3126_v28, %v3130_v22  ;;  %v3162_v18 = vsel %vm912_vm6, %v3156_v63, %v3160_v38 }
 0x5ce   :  { %v3134_v15 = vadd.f32 %v3132_v39, %v3119_v60  ;;  %v3634_v30 = vpop.f32.mrf.mxu0  ;;  %v3163_v37 = vadd.f32 %v3155_v56, %v3148_v14 }
 0x5d0   :  { %v3149_v51 = vadd.f32 %v3147_v34, %v3134_v15 }
 0x5d2   :  { %v3164_v24 = vadd.f32 %v3162_v18, %v3149_v51 }
 0x5d4   :  { %v3166_v59 = vrot.slane %v3164_v24, 7 }
 0x5d6   :  { %v3168_v25 = vsel %vm912_vm6, %v3163_v37, %v3166_v59  ;;  %vm3289_vm6 = vcmask 1024  }
 0x5d7   :  { %v3248_v20 = vadd.f32 %v3244_v4, %v3168_v25 }
 0x5d9   :  { %v3256_v10 = vadd.f32 %v3383_v54, %v3248_v20 }
 0x5db   :  { %v3258_v6 = vmul.f32 0.2, %v3256_v10  ;;  %vm3257_vm0 = vcmp.gt.f32.partialorder %v3256_v10, 0.0 }
 0x5dd   :  { %v3259_v44 = vsel %vm3257_vm0, %v3256_v10, %v3258_v6 }
 0x5de   :  { %v3267_v8 = vmul.f32 %v3384_v53, %v3259_v44 }
 0x5e0   :  { %v3268_v7 = vsel %vm3033_vm11, %v3267_v8, 0.0 }
 0x5e1   :  { %3269 = vadd.xlane.f32.xlu0 %v3268_v7 }
 0x66a   :  { %v3270_v31 = vpop.xlane.xlu0 %3269 }
 0x66b   :  { %v3278_v35 = vadd.f32 %v3385_v46, %v3270_v31 }
 0x66d   :  { %v3279_v43 = vand.u32 2147483647, %v3278_v35  ;;  %vm3286_vm10 = vcmp.ge.f32.partialorder %v3278_v35, 0.0 }
 0x66f   :  { %v3280_v29 = vsub.f32 0.0, %v3279_v43 }
 0x671   :  { %v3281_v5 = vmul.f32 1.442695, %v3280_v29 }
 0x673   :  { %3802 = vpow2.f32 %v3281_v5 }
 0x680   :  { %v3803_v3 = vpop.eup %3802 }
 0x681   :  { %v3283_v57 = vadd.f32 1.0, %v3803_v3 }
 0x683   :  { %3804 = vrcp.f32 %v3283_v57 }
 0x690   :  { %v3805_v52 = vpop.eup %3804 }
 0x691   :  { %v3287_v40 = vmul.f32 %v3805_v52, %v3803_v3 }
 0x693   :  { %v3288_v58 = vsel %vm3286_vm10, %v3805_v52, %v3287_v40 }
 0x694   :  { %3290 = vst.msk [vmem:[%s6001_s12] sm:$0x3] %vm3289_vm6, %v3288_v58 }
 0x695   :  { %3295 = vsyncmov [#allocation4] }
 0x698   :  { %s3296_s2 = vpop.sfrf %3295 }
 0x699   :  { %p3386_p0 = scmp.ne.s32.totalorder %s3296_s2, 0 }
 0x69b   :  { %3300 = shalt.err (%p3386_p0)  }
 0x69c   :  { %3302 = vsyncmov [#allocation4 + $0x1] }
 0x69f   :  { %s3303_s25 = vpop.sfrf %3302 }
 0x6a0   :  { %p3387_p1 = scmp.ne.s32.totalorder %s3303_s25, 0 }
 0x6a2   :  { %3307 = shalt.err (%p3387_p1)  }

</bundles_post_ra>
